<compile_context>
chip_gen: v7x
topology: tpu7x:2x2x1
jax: 0.10.0
libtpu: 0.0.40
codegen_flags: <defaults>
</compile_context>

<pallas_src>
import functools

import jax
import jax.numpy as jnp
from jax import lax
from jax.experimental import pallas as pl
from jax.experimental.pallas import tpu as pltpu

LANE = 128           # vreg lane width
TILE_R_MAX = 4096    # rows per grid step -> 2 MiB f32 block (4 MiB double-buffered)


def _abs_pow(x, p):
    """|x|**p with cheap special cases (keeps the kernel on the VPU)."""
    if p == 2:
        return x * x
    if p == 1:
        return jnp.abs(x)
    if isinstance(p, int) and p > 0:
        a = jnp.abs(x)
        out = a
        for _ in range(p - 1):
            out = out * a
        return out
    return jnp.abs(x) ** p


def _sum_pow_kernel(x_ref, o_ref, *, p, rows, tile_r, need_mask):
    """Accumulate per-lane sum(|x|^p) over row-tiles of a (rows, 128) slab.

    The (1, 128) output block is revisited on every grid step and acts as the
    accumulator (stays resident in VMEM across the "arbitrary" axis).
    """
    i = pl.program_id(0)

    @pl.when(i == 0)
    def _init():
        o_ref[...] = jnp.zeros_like(o_ref)

    x = x_ref[...].astype(jnp.float32)
    if need_mask:
        # Last grid step may read past the end of the array (undefined data);
        # select them out before they enter the accumulation.
        row = lax.broadcasted_iota(jnp.int32, x.shape, 0) + i * tile_r
        x = jnp.where(row < rows, x, 0.0)

    # Per-tile reduce: mostly cross-vreg VALU adds, one sublane (XLU) reduce
    # per tile; all hidden behind the HBM DMA of the next input block.
    o_ref[...] += jnp.sum(_abs_pow(x, p), axis=0, keepdims=True)


def _sum_abs_pow_2d(x2d, p):
    """sum(|x|^p) of a (rows, 128) array via a tiled Pallas reduction."""
    rows, lane = x2d.shape
    assert lane == LANE
    tile_r = rows if rows <= TILE_R_MAX else TILE_R_MAX
    grid = pl.cdiv(rows, tile_r)
    need_mask = (grid * tile_r != rows)

    out = pl.pallas_call(
        functools.partial(_sum_pow_kernel, p=p, rows=rows, tile_r=tile_r,
                          need_mask=need_mask),
        out_shape=jax.ShapeDtypeStruct((1, LANE), jnp.float32),
        grid_spec=pltpu.PrefetchScalarGridSpec(
            num_scalar_prefetch=0,
            grid=(grid,),
            in_specs=[pl.BlockSpec((tile_r, LANE), lambda i: (i, 0))],
            out_specs=pl.BlockSpec((1, LANE), lambda i: (0, 0)),
        ),
        compiler_params=pltpu.CompilerParams(
            dimension_semantics=("arbitrary",)),   # reduction axis
    )(x2d)
    return jnp.sum(out)   # final 128-lane reduce (tiny) in plain JAX


def _pnorm(w, p):
    """||w||_p of an arbitrary-shape tensor, streamed in its native dtype."""
    flat = w.reshape(-1)
    n = flat.shape[0]
    rows = n // LANE
    total = jnp.float32(0.0)
    if rows > 0:
        main = flat if rows * LANE == n else flat[: rows * LANE]
        total = total + _sum_abs_pow_2d(main.reshape(rows, LANE), p)
    if rows * LANE < n:
        # Ragged tail (< 128 elements): summed in plain JAX, negligible.
        tail = flat[rows * LANE:].astype(jnp.float32)
        total = total + jnp.sum(_abs_pow(tail, p))
    if p == 2:
        return jnp.sqrt(total)
    if p == 1:
        return total
    return total ** (1.0 / p)


@functools.partial(jax.jit, static_argnames=("p",))
def _regularization_loss(weights, weight_decay, p):
    reg_loss = jnp.float32(0.0)
    for w in weights:
        reg_loss = reg_loss + _pnorm(w, p)
    return weight_decay.astype(jnp.float32) * reg_loss


def regularization_forward(weight_list, weight_decay, p=2):
    """Mirrors Regularization.forward: weight_decay * sum_w ||w||_p."""
    if weight_decay <= 0:
        raise ValueError("param weight_decay must be above 0!")
    weights = tuple(w for _, w in weight_list)
    return _regularization_loss(weights, jnp.float32(weight_decay), p=p)


if __name__ == "__main__":
    # Synthetic "model" parameters (deterministic). Only names containing
    # 'weight' participate, exactly like Regularization.get_weight.
    key = jax.random.PRNGKey(0)
    k1, k2, k3, k4, k5 = jax.random.split(key, 5)
    named_params = [
        ("fc.weight", jax.random.normal(k1, (32, 64), dtype=jnp.float32)),
        ("fc.bias", jax.random.normal(k2, (32,), dtype=jnp.float32)),        # skipped
        # Ragged-tail path (144 elements = 1 row + 16-element tail).
        ("conv.weight", jax.random.normal(k3, (4, 4, 3, 3), dtype=jnp.float32)),
        # Multi-block + masked last block path (4800 rows > 4096-row tile).
        ("encoder.weight", jax.random.normal(k4, (1200, 512), dtype=jnp.float32)),
        # Native-dtype streaming path (bf16 cast to f32 inside the kernel).
        ("decoder.weight",
         jax.random.normal(k5, (300, 384), dtype=jnp.float32).astype(jnp.bfloat16)),
    ]
    weight_list = [(n, w) for n, w in named_params if "weight" in n]

    weight_decay = 0.01
    p_norm = 2

    reg_loss = regularization_forward(weight_list, weight_decay, p=p_norm)
    reg_loss = jax.block_until_ready(reg_loss)

    # Reference in plain JAX (same semantics as torch.norm(w, p=2)).
    ref = jnp.float32(weight_decay) * sum(
        jnp.sqrt(jnp.sum(w.astype(jnp.float32) ** 2)) for _, w in weight_list
    )
    assert jnp.allclose(reg_loss, ref, rtol=5e-5, atol=1e-5), (reg_loss, ref)

    print("KERNEL_OK")
</pallas_src>

<mosaic_0001>
module attributes {stable_mosaic.version = 11 : i64} {
  func.func @_sum_pow_kernel(%arg0: i32, %arg1: memref<1x128xf32, #tpu.memory_space<vmem>>, %arg2: memref<1x128xf32, #tpu.memory_space<vmem>>) attributes {dimension_semantics = [#tpu.dimension_semantics<arbitrary>], iteration_bounds = array<i64: 1>, scalar_prefetch = 0 : i64, scratch_operands = 0 : i64, tpu.core_type = #tpu.core_type<tc>, window_params = [{transform_indices = @transform_0, window_bounds = array<i64: 1, 128>}, {pipeline_mode = #tpu.pipeline_mode<synchronous>, transform_indices = @transform_1, window_bounds = array<i64: 1, 128>}]} {
    %c0_i32 = arith.constant 0 : i32
    %0 = arith.cmpi eq, %arg0, %c0_i32 : i32
    %1 = arith.extui %0 : i1 to i32
    %c0_i32_0 = arith.constant 0 : i32
    %2 = arith.cmpi ne, %1, %c0_i32_0 : i32
    scf.if %2 {
      %cst_6 = arith.constant 0.000000e+00 : f32
      %10 = vector.broadcast %cst_6 : f32 to vector<1x128xf32>
      %c0_7 = arith.constant 0 : index
      %c0_8 = arith.constant 0 : index
      %11 = vector.load %arg2[%c0_7, %c0_8] : memref<1x128xf32, #tpu.memory_space<vmem>>, vector<1x128xf32>
      tpu.vector_store %arg2[%c0_7, %c0_8], %10 {strides = array<i32>} : memref<1x128xf32, #tpu.memory_space<vmem>>, vector<1x128xf32>,
    } else {
    }
    %c0 = arith.constant 0 : index
    %c0_1 = arith.constant 0 : index
    %3 = vector.load %arg1[%c0, %c0_1] : memref<1x128xf32, #tpu.memory_space<vmem>>, vector<1x128xf32>
    %c0_2 = arith.constant 0 : index
    %c0_3 = arith.constant 0 : index
    %4 = vector.load %arg2[%c0_2, %c0_3] : memref<1x128xf32, #tpu.memory_space<vmem>>, vector<1x128xf32>
    %5 = arith.mulf %3, %3 : vector<1x128xf32>
    %cst = arith.constant dense<0.000000e+00> : vector<128xf32>
    %6 = vector.multi_reduction <add>, %5, %cst [0] : vector<1x128xf32> to vector<128xf32>
    %7 = vector.shape_cast %6 : vector<128xf32> to vector<1x128xf32>
    %8 = arith.addf %4, %7 : vector<1x128xf32>
    %c0_4 = arith.constant 0 : index
    %c0_5 = arith.constant 0 : index
    %9 = vector.load %arg2[%c0_4, %c0_5] : memref<1x128xf32, #tpu.memory_space<vmem>>, vector<1x128xf32>
    tpu.vector_store %arg2[%c0_4, %c0_5], %8 {strides = array<i32>} : memref<1x128xf32, #tpu.memory_space<vmem>>, vector<1x128xf32>,
    return
  }
  func.func @transform_0(%arg0: i32) -> (i32, i32) {
    %c0_i32 = arith.constant 0 : i32
    %c0_i32_0 = arith.constant 0 : i32
    return %arg0, %c0_i32 : i32, i32
  }
  func.func @transform_1(%arg0: i32) -> (i32, i32) {
    %c0_i32 = arith.constant 0 : i32
    %c0_i32_0 = arith.constant 0 : i32
    %c0_i32_1 = arith.constant 0 : i32
    return %c0_i32, %c0_i32_0 : i32, i32
  }
}

module attributes {stable_mosaic.version = 11 : i64} {
  func.func @_sum_pow_kernel(%arg0: i32, %arg1: memref<16x128xf32, #tpu.memory_space<vmem>>, %arg2: memref<1x128xf32, #tpu.memory_space<vmem>>) attributes {dimension_semantics = [#tpu.dimension_semantics<arbitrary>], iteration_bounds = array<i64: 1>, scalar_prefetch = 0 : i64, scratch_operands = 0 : i64, tpu.core_type = #tpu.core_type<tc>, window_params = [{transform_indices = @transform_0, window_bounds = array<i64: 16, 128>}, {pipeline_mode = #tpu.pipeline_mode<synchronous>, transform_indices = @transform_1, window_bounds = array<i64: 1, 128>}]} {
    %c0_i32 = arith.constant 0 : i32
    %0 = arith.cmpi eq, %arg0, %c0_i32 : i32
    %1 = arith.extui %0 : i1 to i32
    %c0_i32_0 = arith.constant 0 : i32
    %2 = arith.cmpi ne, %1, %c0_i32_0 : i32
    scf.if %2 {
      %cst_6 = arith.constant 0.000000e+00 : f32
      %10 = vector.broadcast %cst_6 : f32 to vector<1x128xf32>
      %c0_7 = arith.constant 0 : index
      %c0_8 = arith.constant 0 : index
      %11 = vector.load %arg2[%c0_7, %c0_8] : memref<1x128xf32, #tpu.memory_space<vmem>>, vector<1x128xf32>
      tpu.vector_store %arg2[%c0_7, %c0_8], %10 {strides = array<i32>} : memref<1x128xf32, #tpu.memory_space<vmem>>, vector<1x128xf32>,
    } else {
    }
    %c0 = arith.constant 0 : index
    %c0_1 = arith.constant 0 : index
    %3 = vector.load %arg1[%c0, %c0_1] : memref<16x128xf32, #tpu.memory_space<vmem>>, vector<16x128xf32>
    %c0_2 = arith.constant 0 : index
    %c0_3 = arith.constant 0 : index
    %4 = vector.load %arg2[%c0_2, %c0_3] : memref<1x128xf32, #tpu.memory_space<vmem>>, vector<1x128xf32>
    %5 = arith.mulf %3, %3 : vector<16x128xf32>
    %cst = arith.constant dense<0.000000e+00> : vector<128xf32>
    %6 = vector.multi_reduction <add>, %5, %cst [0] : vector<16x128xf32> to vector<128xf32>
    %7 = vector.shape_cast %6 : vector<128xf32> to vector<1x128xf32>
    %8 = arith.addf %4, %7 : vector<1x128xf32>
    %c0_4 = arith.constant 0 : index
    %c0_5 = arith.constant 0 : index
    %9 = vector.load %arg2[%c0_4, %c0_5] : memref<1x128xf32, #tpu.memory_space<vmem>>, vector<1x128xf32>
    tpu.vector_store %arg2[%c0_4, %c0_5], %8 {strides = array<i32>} : memref<1x128xf32, #tpu.memory_space<vmem>>, vector<1x128xf32>,
    return
  }
  func.func @transform_0(%arg0: i32) -> (i32, i32) {
    %c0_i32 = arith.constant 0 : i32
    %c0_i32_0 = arith.constant 0 : i32
    return %arg0, %c0_i32 : i32, i32
  }
  func.func @transform_1(%arg0: i32) -> (i32, i32) {
    %c0_i32 = arith.constant 0 : i32
    %c0_i32_0 = arith.constant 0 : i32
    %c0_i32_1 = arith.constant 0 : i32
    return %c0_i32, %c0_i32_0 : i32, i32
  }
}

module attributes {stable_mosaic.version = 11 : i64} {
  func.func @_sum_pow_kernel(%arg0: i32, %arg1: memref<4096x128xf32, #tpu.memory_space<vmem>>, %arg2: memref<1x128xf32, #tpu.memory_space<vmem>>) attributes {dimension_semantics = [#tpu.dimension_semantics<arbitrary>], iteration_bounds = array<i64: 2>, scalar_prefetch = 0 : i64, scratch_operands = 0 : i64, tpu.core_type = #tpu.core_type<tc>, window_params = [{transform_indices = @transform_0, window_bounds = array<i64: 4096, 128>}, {pipeline_mode = #tpu.pipeline_mode<synchronous>, transform_indices = @transform_1, window_bounds = array<i64: 1, 128>}]} {
    %c0_i32 = arith.constant 0 : i32
    %0 = arith.cmpi eq, %arg0, %c0_i32 : i32
    %1 = arith.extui %0 : i1 to i32
    %c0_i32_0 = arith.constant 0 : i32
    %2 = arith.cmpi ne, %1, %c0_i32_0 : i32
    scf.if %2 {
      %cst_7 = arith.constant 0.000000e+00 : f32
      %18 = vector.broadcast %cst_7 : f32 to vector<1x128xf32>
      %c0_8 = arith.constant 0 : index
      %c0_9 = arith.constant 0 : index
      %19 = vector.load %arg2[%c0_8, %c0_9] : memref<1x128xf32, #tpu.memory_space<vmem>>, vector<1x128xf32>
      tpu.vector_store %arg2[%c0_8, %c0_9], %18 {strides = array<i32>} : memref<1x128xf32, #tpu.memory_space<vmem>>, vector<1x128xf32>,
    } else {
    }
    %c0 = arith.constant 0 : index
    %c0_1 = arith.constant 0 : index
    %3 = vector.load %arg1[%c0, %c0_1] : memref<4096x128xf32, #tpu.memory_space<vmem>>, vector<4096x128xf32>
    %4 = tpu.iota {dimensions = array<i32: 0>} : vector<4096x128xi32>
    %c4096_i32 = arith.constant 4096 : i32
    %5 = arith.muli %arg0, %c4096_i32 : i32
    %6 = vector.broadcast %5 : i32 to vector<4096x128xi32>
    %7 = arith.addi %4, %6 : vector<4096x128xi32>
    %c4800_i32 = arith.constant 4800 : i32
    %8 = vector.broadcast %c4800_i32 : i32 to vector<4096x128xi32>
    %9 = arith.cmpi slt, %7, %8 : vector<4096x128xi32>
    %cst = arith.constant 0.000000e+00 : f32
    %10 = vector.broadcast %cst : f32 to vector<4096x128xf32>
    %11 = arith.select %9, %3, %10 : vector<4096x128xi1>, vector<4096x128xf32>
    %c0_2 = arith.constant 0 : index
    %c0_3 = arith.constant 0 : index
    %12 = vector.load %arg2[%c0_2, %c0_3] : memref<1x128xf32, #tpu.memory_space<vmem>>, vector<1x128xf32>
    %13 = arith.mulf %11, %11 : vector<4096x128xf32>
    %cst_4 = arith.constant dense<0.000000e+00> : vector<128xf32>
    %14 = vector.multi_reduction <add>, %13, %cst_4 [0] : vector<4096x128xf32> to vector<128xf32>
    %15 = vector.shape_cast %14 : vector<128xf32> to vector<1x128xf32>
    %16 = arith.addf %12, %15 : vector<1x128xf32>
    %c0_5 = arith.constant 0 : index
    %c0_6 = arith.constant 0 : index
    %17 = vector.load %arg2[%c0_5, %c0_6] : memref<1x128xf32, #tpu.memory_space<vmem>>, vector<1x128xf32>
    tpu.vector_store %arg2[%c0_5, %c0_6], %16 {strides = array<i32>} : memref<1x128xf32, #tpu.memory_space<vmem>>, vector<1x128xf32>,
    return
  }
  func.func @transform_0(%arg0: i32) -> (i32, i32) {
    %c0_i32 = arith.constant 0 : i32
    %c0_i32_0 = arith.constant 0 : i32
    return %arg0, %c0_i32 : i32, i32
  }
  func.func @transform_1(%arg0: i32) -> (i32, i32) {
    %c0_i32 = arith.constant 0 : i32
    %c0_i32_0 = arith.constant 0 : i32
    %c0_i32_1 = arith.constant 0 : i32
    return %c0_i32, %c0_i32_0 : i32, i32
  }
}

module attributes {stable_mosaic.version = 11 : i64} {
  func.func @_sum_pow_kernel(%arg0: i32, %arg1: memref<900x128xbf16, #tpu.memory_space<vmem>>, %arg2: memref<1x128xf32, #tpu.memory_space<vmem>>) attributes {dimension_semantics = [#tpu.dimension_semantics<arbitrary>], iteration_bounds = array<i64: 1>, scalar_prefetch = 0 : i64, scratch_operands = 0 : i64, tpu.core_type = #tpu.core_type<tc>, window_params = [{transform_indices = @transform_0, window_bounds = array<i64: 900, 128>}, {pipeline_mode = #tpu.pipeline_mode<synchronous>, transform_indices = @transform_1, window_bounds = array<i64: 1, 128>}]} {
    %c0_i32 = arith.constant 0 : i32
    %0 = arith.cmpi eq, %arg0, %c0_i32 : i32
    %1 = arith.extui %0 : i1 to i32
    %c0_i32_0 = arith.constant 0 : i32
    %2 = arith.cmpi ne, %1, %c0_i32_0 : i32
    scf.if %2 {
      %cst_6 = arith.constant 0.000000e+00 : f32
      %11 = vector.broadcast %cst_6 : f32 to vector<1x128xf32>
      %c0_7 = arith.constant 0 : index
      %c0_8 = arith.constant 0 : index
      %12 = vector.load %arg2[%c0_7, %c0_8] : memref<1x128xf32, #tpu.memory_space<vmem>>, vector<1x128xf32>
      tpu.vector_store %arg2[%c0_7, %c0_8], %11 {strides = array<i32>} : memref<1x128xf32, #tpu.memory_space<vmem>>, vector<1x128xf32>,
    } else {
    }
    %c0 = arith.constant 0 : index
    %c0_1 = arith.constant 0 : index
    %3 = vector.load %arg1[%c0, %c0_1] : memref<900x128xbf16, #tpu.memory_space<vmem>>, vector<900x128xbf16>
    %4 = arith.extf %3 : vector<900x128xbf16> to vector<900x128xf32>
    %c0_2 = arith.constant 0 : index
    %c0_3 = arith.constant 0 : index
    %5 = vector.load %arg2[%c0_2, %c0_3] : memref<1x128xf32, #tpu.memory_space<vmem>>, vector<1x128xf32>
    %6 = arith.mulf %4, %4 : vector<900x128xf32>
    %cst = arith.constant dense<0.000000e+00> : vector<128xf32>
    %7 = vector.multi_reduction <add>, %6, %cst [0] : vector<900x128xf32> to vector<128xf32>
    %8 = vector.shape_cast %7 : vector<128xf32> to vector<1x128xf32>
    %9 = arith.addf %5, %8 : vector<1x128xf32>
    %c0_4 = arith.constant 0 : index
    %c0_5 = arith.constant 0 : index
    %10 = vector.load %arg2[%c0_4, %c0_5] : memref<1x128xf32, #tpu.memory_space<vmem>>, vector<1x128xf32>
    tpu.vector_store %arg2[%c0_4, %c0_5], %9 {strides = array<i32>} : memref<1x128xf32, #tpu.memory_space<vmem>>, vector<1x128xf32>,
    return
  }
  func.func @transform_0(%arg0: i32) -> (i32, i32) {
    %c0_i32 = arith.constant 0 : i32
    %c0_i32_0 = arith.constant 0 : i32
    return %arg0, %c0_i32 : i32, i32
  }
  func.func @transform_1(%arg0: i32) -> (i32, i32) {
    %c0_i32 = arith.constant 0 : i32
    %c0_i32_0 = arith.constant 0 : i32
    %c0_i32_1 = arith.constant 0 : i32
    return %c0_i32, %c0_i32_0 : i32, i32
  }
}

</mosaic_0001>

<bundles_post_ra>
// kernel: _regularization_loss.5
= control target key start
LH: loop header
LB: loop body
LE: loop exit
PB: predicated region body
PF: predicated region fallthrough
CT: control target
= control target key end

     0   :  { %v24_v0 = vmov 0.0   ;;  %s47_s1 = inlined_call_operand.vmem [shape: f32[1,128], index: 1, kind: output, shape index: {}]   ;;  %s48_s0 = inlined_call_operand.vmem [shape: f32[1,128], index: 0, kind: input, shape index: {}]  }
   0x1   :  { %12 = vst [vmem:[%s47_s1] sm:$0x1] %v24_v0  ;;  %v13_v1 = vld [vmem:[%s48_s0] sm:$0x1] }
   0x2   :  { %v15_v2 = vmul.f32 %v13_v1, %v13_v1 }
   0x8   :  { %v14_v3 = vld [vmem:[%s47_s1] sm:$0x1] }
   0x9   :  { %v17_v4 = vadd.f32 %v15_v2, %v14_v3 }
   0xb   :  { %18 = vst [vmem:[%s47_s1] sm:$0x1] %v17_v4 }

// kernel: _regularization_loss.4
= control target key start
LH: loop header
LB: loop body
LE: loop exit
PB: predicated region body
PF: predicated region fallthrough
CT: control target
= control target key end

     0   :  { %v32_v0 = vmov 0.0   ;;  %s58_s1 = inlined_call_operand.vmem [shape: f32[1,128], index: 1, kind: output, shape index: {}]   ;;  %s59_s0 = inlined_call_operand.vmem [shape: f32[16,128], index: 0, kind: input, shape index: {}]  }
   0x1   :  { %12 = vst [vmem:[%s58_s1] sm:$0x1] %v32_v0  ;;  %v13_v1 = vld [vmem:[%s59_s0] sm:$0xff]  ;;  %v14_v2 = vld [vmem:[%s59_s0 + $0x8] sm:$0xff] }
   0x2   :  { %v16_v3 = vmul.f32 %v13_v1, %v13_v1  ;;  %v17_v4 = vmul.f32 %v14_v2, %v14_v2 }
   0x4   :  { %v18_v5 = vadd.f32 %v17_v4, %v16_v3 }
   0x6   :  { %v19_v6 = vrot.slane %v18_v5, 4 }
   0x8   :  { %v20_v7 = vadd.f32 %v19_v6, %v18_v5  ;;  %v15_v11 = vld [vmem:[%s58_s1] sm:$0x1] }
   0xa   :  { %v21_v8 = vrot.slane %v20_v7, 2 }
   0xc   :  { %v22_v9 = vadd.f32 %v21_v8, %v20_v7 }
   0xe   :  { %v23_v10 = vrot.slane %v22_v9, 1 }
  0x10   :  { %v24_v12 = vadd.f32 %v23_v10, %v22_v9 }
  0x12   :  { %v25_v13 = vadd.f32 %v24_v12, %v15_v11 }
  0x14   :  { %26 = vst [vmem:[%s58_s1] sm:$0x1] %v25_v13 }

// kernel: _regularization_loss.7
= control target key start
LH: loop header
LB: loop body
LE: loop exit
PB: predicated region body
PF: predicated region fallthrough
CT: control target
= control target key end

     0   :  { %v759_v0 = vmov 0.0   ;;  %vm464_vm0 = vcmask 1043456   ;;  %s950_s1 = inlined_call_operand.vmem [shape: f32[1,128], index: 1, kind: output, shape index: {}]   ;;  %s951_s0 = inlined_call_operand.vmem [shape: bf16[900,128], index: 0, kind: input, shape index: {}]  }
   0x1   :  { %12 = vst [vmem:[%s950_s1] sm:$0x1] %v759_v0  ;;  %v480_v1 = vld [vmem:[%s951_s0] sm:$0xff]   ;;  %v703_v2 = vld [vmem:[%s951_s0 + $0x8] sm:$0xff]   ;;  %v704_v6 = vld [vmem:[%s951_s0 + $0x10] sm:$0xff]  }
   0x2   :  { %v481_v3 = vunpack.c.l.bf16 %v480_v1  ;;  %v482_v4 = vunpack.c.h.bf16 %v480_v1  ;;  %v485_v5 = vunpack.c.l.bf16 %v703_v2  ;;  %v486_v7 = vunpack.c.h.bf16 %v703_v2  ;;  %v705_v12 = vld [vmem:[%s951_s0 + $0x18] sm:$0xff]   ;;  %v706_v19 = vld [vmem:[%s951_s0 + $0x20] sm:$0xff]   ;;  %v707_v26 = vld [vmem:[%s951_s0 + $0x28] sm:$0xff]  }
   0x3   :  { %v489_v10 = vunpack.c.l.bf16 %v704_v6  ;;  %v490_v13 = vunpack.c.h.bf16 %v704_v6  ;;  %v493_v16 = vunpack.c.l.bf16 %v705_v12  ;;  %v494_v20 = vunpack.c.h.bf16 %v705_v12  ;;  %v708_v33 = vld [vmem:[%s951_s0 + $0x30] sm:$0xff]   ;;  %v709_v40 = vld [vmem:[%s951_s0 + $0x38] sm:$0xff]   ;;  %v710_v47 = vld [vmem:[%s951_s0 + $0x40] sm:$0xff]  }
   0x4   :  { %v240_v8 = vmul.f32 %v481_v3, %v481_v3  ;;  %v241_v9 = vmul.f32 %v482_v4, %v482_v4  ;;  %v242_v11 = vmul.f32 %v485_v5, %v485_v5  ;;  %v243_v14 = vmul.f32 %v486_v7, %v486_v7  ;;  %v711_v54 = vld [vmem:[%s951_s0 + $0x48] sm:$0xff]   ;;  %v712_v61 = vld [vmem:[%s951_s0 + $0x50] sm:$0xff]   ;;  %v713_v4 = vld [vmem:[%s951_s0 + $0x58] sm:$0xff]  }
   0x5   :  { %v244_v17 = vmul.f32 %v489_v10, %v489_v10  ;;  %v245_v21 = vmul.f32 %v490_v13, %v490_v13  ;;  %v497_v23 = vunpack.c.l.bf16 %v706_v19  ;;  %v246_v24 = vmul.f32 %v493_v16, %v493_v16 }
   0x6   :  { %v353_v15 = vadd.f32 %v241_v9, %v240_v8  ;;  %v498_v27 = vunpack.c.h.bf16 %v706_v19  ;;  %v247_v28 = vmul.f32 %v494_v20, %v494_v20  ;;  %v501_v30 = vunpack.c.l.bf16 %v707_v26 }
   0x7   :  { %v248_v31 = vmul.f32 %v497_v23, %v497_v23  ;;  %v502_v34 = vunpack.c.h.bf16 %v707_v26  ;;  %v505_v37 = vunpack.c.l.bf16 %v708_v33  ;;  %v506_v41 = vunpack.c.h.bf16 %v708_v33 }
   0x8   :  { %v354_v18 = vadd.f32 %v353_v15, %v242_v11  ;;  %v249_v35 = vmul.f32 %v498_v27, %v498_v27  ;;  %v250_v38 = vmul.f32 %v501_v30, %v501_v30  ;;  %v509_v44 = vunpack.c.l.bf16 %v709_v40  ;;  %v714_v11 = vld [vmem:[%s951_s0 + $0x60] sm:$0xff]  }
   0x9   :  { %v251_v42 = vmul.f32 %v502_v34, %v502_v34  ;;  %v252_v45 = vmul.f32 %v505_v37, %v505_v37  ;;  %v510_v48 = vunpack.c.h.bf16 %v709_v40  ;;  %v253_v49 = vmul.f32 %v506_v41, %v506_v41 }
   0xa   :  { %v355_v22 = vadd.f32 %v354_v18, %v243_v14  ;;  %v513_v51 = vunpack.c.l.bf16 %v710_v47  ;;  %v254_v52 = vmul.f32 %v509_v44, %v509_v44  ;;  %v514_v55 = vunpack.c.h.bf16 %v710_v47  ;;  %v715_v18 = vld [vmem:[%s951_s0 + $0x68] sm:$0xff]  }
   0xb   :  { %v255_v56 = vmul.f32 %v510_v48, %v510_v48  ;;  %v517_v58 = vunpack.c.l.bf16 %v711_v54  ;;  %v518_v62 = vunpack.c.h.bf16 %v711_v54  ;;  %v521_v1 = vunpack.c.l.bf16 %v712_v61 }
   0xc   :  { %v356_v25 = vadd.f32 %v355_v22, %v244_v17  ;;  %v256_v59 = vmul.f32 %v513_v51, %v513_v51  ;;  %v257_v63 = vmul.f32 %v514_v55, %v514_v55  ;;  %v522_v5 = vunpack.c.h.bf16 %v712_v61 }
   0xd   :  { %v258_v2 = vmul.f32 %v517_v58, %v517_v58  ;;  %v259_v6 = vmul.f32 %v518_v62, %v518_v62  ;;  %v525_v8 = vunpack.c.l.bf16 %v713_v4  ;;  %v260_v9 = vmul.f32 %v521_v1, %v521_v1 }
   0xe   :  { %v357_v29 = vadd.f32 %v356_v25, %v245_v21  ;;  %v526_v12 = vunpack.c.h.bf16 %v713_v4  ;;  %v261_v13 = vmul.f32 %v522_v5, %v522_v5  ;;  %v529_v15 = vunpack.c.l.bf16 %v714_v11  ;;  %v716_v25 = vld [vmem:[%s951_s0 + $0x70] sm:$0xff]  }
   0xf   :  { %v262_v16 = vmul.f32 %v525_v8, %v525_v8  ;;  %v530_v19 = vunpack.c.h.bf16 %v714_v11  ;;  %v533_v22 = vunpack.c.l.bf16 %v715_v18  ;;  %v534_v26 = vunpack.c.h.bf16 %v715_v18 }
  0x10   :  { %v358_v32 = vadd.f32 %v357_v29, %v246_v24  ;;  %v263_v20 = vmul.f32 %v526_v12, %v526_v12  ;;  %v264_v23 = vmul.f32 %v529_v15, %v529_v15  ;;  %v537_v29 = vunpack.c.l.bf16 %v716_v25 }
  0x11   :  { %v265_v27 = vmul.f32 %v530_v19, %v530_v19  ;;  %v266_v30 = vmul.f32 %v533_v22, %v533_v22  ;;  %v538_v33 = vunpack.c.h.bf16 %v716_v25  ;;  %v267_v34 = vmul.f32 %v534_v26, %v534_v26 }
  0x12   :  { %v359_v36 = vadd.f32 %v358_v32, %v247_v28  ;;  %v717_v32 = vld [vmem:[%s951_s0 + $0x78] sm:$0xff]   ;;  %v268_v37 = vmul.f32 %v537_v29, %v537_v29 }
  0x13   :  { %v542_v40 = vunpack.c.h.bf16 %v717_v32  ;;  %v269_v41 = vmul.f32 %v538_v33, %v538_v33 }
  0x14   :  { %v360_v39 = vadd.f32 %v359_v36, %v248_v31  ;;  %v541_v36 = vunpack.c.l.bf16 %v717_v32 }
  0x15   :  { %v271_v48 = vmul.f32 %v542_v40, %v542_v40 }
  0x16   :  { %v361_v43 = vadd.f32 %v360_v39, %v249_v35  ;;  %v718_v39 = vld [vmem:[%s951_s0 + $0x80] sm:$0xff]   ;;  %v270_v44 = vmul.f32 %v541_v36, %v541_v36 }
  0x17   :  { %v546_v47 = vunpack.c.h.bf16 %v718_v39 }
  0x18   :  { %v362_v46 = vadd.f32 %v361_v43, %v250_v38  ;;  %v545_v43 = vunpack.c.l.bf16 %v718_v39 }
  0x19   :  { %v273_v55 = vmul.f32 %v546_v47, %v546_v47 }
  0x1a   :  { %v363_v50 = vadd.f32 %v362_v46, %v251_v42  ;;  %v719_v46 = vld [vmem:[%s951_s0 + $0x88] sm:$0xff]   ;;  %v272_v51 = vmul.f32 %v545_v43, %v545_v43 }
  0x1b   :  { %v550_v54 = vunpack.c.h.bf16 %v719_v46 }
  0x1c   :  { %v364_v53 = vadd.f32 %v363_v50, %v252_v45  ;;  %v549_v50 = vunpack.c.l.bf16 %v719_v46 }
  0x1d   :  { %v275_v62 = vmul.f32 %v550_v54, %v550_v54 }
  0x1e   :  { %v365_v57 = vadd.f32 %v364_v53, %v253_v49  ;;  %v720_v53 = vld [vmem:[%s951_s0 + $0x90] sm:$0xff]   ;;  %v274_v58 = vmul.f32 %v549_v50, %v549_v50 }
  0x1f   :  { %v554_v61 = vunpack.c.h.bf16 %v720_v53 }
  0x20   :  { %v366_v60 = vadd.f32 %v365_v57, %v254_v52  ;;  %v553_v57 = vunpack.c.l.bf16 %v720_v53 }
  0x21   :  { %v277_v5 = vmul.f32 %v554_v61, %v554_v61 }
  0x22   :  { %v367_v0 = vadd.f32 %v366_v60, %v255_v56  ;;  %v721_v60 = vld [vmem:[%s951_s0 + $0x98] sm:$0xff]   ;;  %v276_v1 = vmul.f32 %v553_v57, %v553_v57 }
  0x23   :  { %v558_v4 = vunpack.c.h.bf16 %v721_v60 }
  0x24   :  { %v368_v3 = vadd.f32 %v367_v0, %v256_v59  ;;  %v557_v0 = vunpack.c.l.bf16 %v721_v60 }
  0x25   :  { %v279_v12 = vmul.f32 %v558_v4, %v558_v4 }
  0x26   :  { %v369_v7 = vadd.f32 %v368_v3, %v257_v63  ;;  %v722_v3 = vld [vmem:[%s951_s0 + $0xa0] sm:$0xff]   ;;  %v278_v8 = vmul.f32 %v557_v0, %v557_v0 }
  0x27   :  { %v562_v11 = vunpack.c.h.bf16 %v722_v3 }
  0x28   :  { %v370_v10 = vadd.f32 %v369_v7, %v258_v2  ;;  %v561_v7 = vunpack.c.l.bf16 %v722_v3 }
  0x29   :  { %v281_v19 = vmul.f32 %v562_v11, %v562_v11 }
  0x2a   :  { %v371_v14 = vadd.f32 %v370_v10, %v259_v6  ;;  %v723_v10 = vld [vmem:[%s951_s0 + $0xa8] sm:$0xff]   ;;  %v280_v15 = vmul.f32 %v561_v7, %v561_v7 }
  0x2b   :  { %v566_v18 = vunpack.c.h.bf16 %v723_v10 }
  0x2c   :  { %v372_v17 = vadd.f32 %v371_v14, %v260_v9  ;;  %v565_v14 = vunpack.c.l.bf16 %v723_v10 }
  0x2d   :  { %v283_v26 = vmul.f32 %v566_v18, %v566_v18 }
  0x2e   :  { %v373_v21 = vadd.f32 %v372_v17, %v261_v13  ;;  %v724_v17 = vld [vmem:[%s951_s0 + $0xb0] sm:$0xff]   ;;  %v282_v22 = vmul.f32 %v565_v14, %v565_v14 }
  0x2f   :  { %v570_v25 = vunpack.c.h.bf16 %v724_v17 }
  0x30   :  { %v374_v24 = vadd.f32 %v373_v21, %v262_v16  ;;  %v569_v21 = vunpack.c.l.bf16 %v724_v17 }
  0x31   :  { %v285_v33 = vmul.f32 %v570_v25, %v570_v25 }
  0x32   :  { %v375_v28 = vadd.f32 %v374_v24, %v263_v20  ;;  %v725_v24 = vld [vmem:[%s951_s0 + $0xb8] sm:$0xff]   ;;  %v284_v29 = vmul.f32 %v569_v21, %v569_v21 }
  0x33   :  { %v574_v32 = vunpack.c.h.bf16 %v725_v24 }
  0x34   :  { %v376_v31 = vadd.f32 %v375_v28, %v264_v23  ;;  %v573_v28 = vunpack.c.l.bf16 %v725_v24 }
  0x35   :  { %v287_v40 = vmul.f32 %v574_v32, %v574_v32 }
  0x36   :  { %v377_v35 = vadd.f32 %v376_v31, %v265_v27  ;;  %v726_v31 = vld [vmem:[%s951_s0 + $0xc0] sm:$0xff]   ;;  %v286_v36 = vmul.f32 %v573_v28, %v573_v28 }
  0x37   :  { %v578_v39 = vunpack.c.h.bf16 %v726_v31 }
  0x38   :  { %v378_v38 = vadd.f32 %v377_v35, %v266_v30  ;;  %v577_v35 = vunpack.c.l.bf16 %v726_v31 }
  0x39   :  { %v289_v47 = vmul.f32 %v578_v39, %v578_v39 }
  0x3a   :  { %v379_v42 = vadd.f32 %v378_v38, %v267_v34  ;;  %v727_v38 = vld [vmem:[%s951_s0 + $0xc8] sm:$0xff]   ;;  %v288_v43 = vmul.f32 %v577_v35, %v577_v35 }
  0x3b   :  { %v582_v46 = vunpack.c.h.bf16 %v727_v38 }
  0x3c   :  { %v380_v45 = vadd.f32 %v379_v42, %v268_v37  ;;  %v581_v42 = vunpack.c.l.bf16 %v727_v38 }
  0x3d   :  { %v291_v54 = vmul.f32 %v582_v46, %v582_v46 }
  0x3e   :  { %v381_v49 = vadd.f32 %v380_v45, %v269_v41  ;;  %v728_v45 = vld [vmem:[%s951_s0 + $0xd0] sm:$0xff]   ;;  %v290_v50 = vmul.f32 %v581_v42, %v581_v42 }
  0x3f   :  { %v586_v53 = vunpack.c.h.bf16 %v728_v45 }
  0x40   :  { %v382_v52 = vadd.f32 %v381_v49, %v270_v44  ;;  %v585_v49 = vunpack.c.l.bf16 %v728_v45 }
  0x41   :  { %v293_v61 = vmul.f32 %v586_v53, %v586_v53 }
  0x42   :  { %v383_v56 = vadd.f32 %v382_v52, %v271_v48  ;;  %v729_v52 = vld [vmem:[%s951_s0 + $0xd8] sm:$0xff]   ;;  %v292_v57 = vmul.f32 %v585_v49, %v585_v49 }
  0x43   :  { %v590_v60 = vunpack.c.h.bf16 %v729_v52 }
  0x44   :  { %v384_v59 = vadd.f32 %v383_v56, %v272_v51  ;;  %v589_v56 = vunpack.c.l.bf16 %v729_v52 }
  0x45   :  { %v295_v4 = vmul.f32 %v590_v60, %v590_v60 }
  0x46   :  { %v385_v63 = vadd.f32 %v384_v59, %v273_v55  ;;  %v730_v59 = vld [vmem:[%s951_s0 + $0xe0] sm:$0xff]   ;;  %v294_v0 = vmul.f32 %v589_v56, %v589_v56 }
  0x47   :  { %v594_v3 = vunpack.c.h.bf16 %v730_v59 }
  0x48   :  { %v386_v2 = vadd.f32 %v385_v63, %v274_v58  ;;  %v593_v63 = vunpack.c.l.bf16 %v730_v59 }
  0x49   :  { %v297_v11 = vmul.f32 %v594_v3, %v594_v3 }
  0x4a   :  { %v387_v6 = vadd.f32 %v386_v2, %v275_v62  ;;  %v731_v2 = vld [vmem:[%s951_s0 + $0xe8] sm:$0xff]   ;;  %v296_v7 = vmul.f32 %v593_v63, %v593_v63 }
  0x4b   :  { %v598_v10 = vunpack.c.h.bf16 %v731_v2 }
  0x4c   :  { %v388_v9 = vadd.f32 %v387_v6, %v276_v1  ;;  %v597_v6 = vunpack.c.l.bf16 %v731_v2 }
  0x4d   :  { %v299_v18 = vmul.f32 %v598_v10, %v598_v10 }
  0x4e   :  { %v389_v13 = vadd.f32 %v388_v9, %v277_v5  ;;  %v732_v9 = vld [vmem:[%s951_s0 + $0xf0] sm:$0xff]   ;;  %v298_v14 = vmul.f32 %v597_v6, %v597_v6 }
  0x4f   :  { %v602_v17 = vunpack.c.h.bf16 %v732_v9 }
  0x50   :  { %v390_v16 = vadd.f32 %v389_v13, %v278_v8  ;;  %v601_v13 = vunpack.c.l.bf16 %v732_v9 }
  0x51   :  { %v301_v25 = vmul.f32 %v602_v17, %v602_v17 }
  0x52   :  { %v391_v20 = vadd.f32 %v390_v16, %v279_v12  ;;  %v733_v16 = vld [vmem:[%s951_s0 + $0xf8] sm:$0xff]   ;;  %v300_v21 = vmul.f32 %v601_v13, %v601_v13 }
  0x53   :  { %v606_v24 = vunpack.c.h.bf16 %v733_v16 }
  0x54   :  { %v392_v23 = vadd.f32 %v391_v20, %v280_v15  ;;  %v605_v20 = vunpack.c.l.bf16 %v733_v16 }
  0x55   :  { %v303_v32 = vmul.f32 %v606_v24, %v606_v24 }
  0x56   :  { %v393_v27 = vadd.f32 %v392_v23, %v281_v19  ;;  %v734_v23 = vld [vmem:[%s951_s0 + $0x100] sm:$0xff]   ;;  %v302_v28 = vmul.f32 %v605_v20, %v605_v20 }
  0x57   :  { %v610_v31 = vunpack.c.h.bf16 %v734_v23 }
  0x58   :  { %v394_v30 = vadd.f32 %v393_v27, %v282_v22  ;;  %v609_v27 = vunpack.c.l.bf16 %v734_v23 }
  0x59   :  { %v305_v39 = vmul.f32 %v610_v31, %v610_v31 }
  0x5a   :  { %v395_v34 = vadd.f32 %v394_v30, %v283_v26  ;;  %v735_v30 = vld [vmem:[%s951_s0 + $0x108] sm:$0xff]   ;;  %v304_v35 = vmul.f32 %v609_v27, %v609_v27 }
  0x5b   :  { %v614_v38 = vunpack.c.h.bf16 %v735_v30 }
  0x5c   :  { %v396_v37 = vadd.f32 %v395_v34, %v284_v29  ;;  %v613_v34 = vunpack.c.l.bf16 %v735_v30 }
  0x5d   :  { %v307_v46 = vmul.f32 %v614_v38, %v614_v38 }
  0x5e   :  { %v397_v41 = vadd.f32 %v396_v37, %v285_v33  ;;  %v736_v37 = vld [vmem:[%s951_s0 + $0x110] sm:$0xff]   ;;  %v306_v42 = vmul.f32 %v613_v34, %v613_v34 }
  0x5f   :  { %v618_v45 = vunpack.c.h.bf16 %v736_v37 }
  0x60   :  { %v398_v44 = vadd.f32 %v397_v41, %v286_v36  ;;  %v617_v41 = vunpack.c.l.bf16 %v736_v37 }
  0x61   :  { %v309_v53 = vmul.f32 %v618_v45, %v618_v45 }
  0x62   :  { %v399_v48 = vadd.f32 %v398_v44, %v287_v40  ;;  %v737_v44 = vld [vmem:[%s951_s0 + $0x118] sm:$0xff]   ;;  %v308_v49 = vmul.f32 %v617_v41, %v617_v41 }
  0x63   :  { %v622_v52 = vunpack.c.h.bf16 %v737_v44 }
  0x64   :  { %v400_v51 = vadd.f32 %v399_v48, %v288_v43  ;;  %v621_v48 = vunpack.c.l.bf16 %v737_v44 }
  0x65   :  { %v311_v60 = vmul.f32 %v622_v52, %v622_v52 }
  0x66   :  { %v401_v55 = vadd.f32 %v400_v51, %v289_v47  ;;  %v738_v51 = vld [vmem:[%s951_s0 + $0x120] sm:$0xff]   ;;  %v310_v56 = vmul.f32 %v621_v48, %v621_v48 }
  0x67   :  { %v626_v59 = vunpack.c.h.bf16 %v738_v51 }
  0x68   :  { %v402_v58 = vadd.f32 %v401_v55, %v290_v50  ;;  %v625_v55 = vunpack.c.l.bf16 %v738_v51 }
  0x69   :  { %v313_v3 = vmul.f32 %v626_v59, %v626_v59 }
  0x6a   :  { %v403_v62 = vadd.f32 %v402_v58, %v291_v54  ;;  %v739_v58 = vld [vmem:[%s951_s0 + $0x128] sm:$0xff]   ;;  %v312_v63 = vmul.f32 %v625_v55, %v625_v55 }
  0x6b   :  { %v630_v2 = vunpack.c.h.bf16 %v739_v58 }
  0x6c   :  { %v404_v1 = vadd.f32 %v403_v62, %v292_v57  ;;  %v629_v62 = vunpack.c.l.bf16 %v739_v58 }
  0x6d   :  { %v315_v10 = vmul.f32 %v630_v2, %v630_v2 }
  0x6e   :  { %v405_v5 = vadd.f32 %v404_v1, %v293_v61  ;;  %v740_v1 = vld [vmem:[%s951_s0 + $0x130] sm:$0xff]   ;;  %v314_v6 = vmul.f32 %v629_v62, %v629_v62 }
  0x6f   :  { %v634_v9 = vunpack.c.h.bf16 %v740_v1 }
  0x70   :  { %v406_v8 = vadd.f32 %v405_v5, %v294_v0  ;;  %v633_v5 = vunpack.c.l.bf16 %v740_v1 }
  0x71   :  { %v317_v17 = vmul.f32 %v634_v9, %v634_v9 }
  0x72   :  { %v407_v12 = vadd.f32 %v406_v8, %v295_v4  ;;  %v741_v8 = vld [vmem:[%s951_s0 + $0x138] sm:$0xff]   ;;  %v316_v13 = vmul.f32 %v633_v5, %v633_v5 }
  0x73   :  { %v638_v16 = vunpack.c.h.bf16 %v741_v8 }
  0x74   :  { %v408_v15 = vadd.f32 %v407_v12, %v296_v7  ;;  %v637_v12 = vunpack.c.l.bf16 %v741_v8 }
  0x75   :  { %v319_v24 = vmul.f32 %v638_v16, %v638_v16 }
  0x76   :  { %v409_v19 = vadd.f32 %v408_v15, %v297_v11  ;;  %v742_v15 = vld [vmem:[%s951_s0 + $0x140] sm:$0xff]   ;;  %v318_v20 = vmul.f32 %v637_v12, %v637_v12 }
  0x77   :  { %v642_v23 = vunpack.c.h.bf16 %v742_v15 }
  0x78   :  { %v410_v22 = vadd.f32 %v409_v19, %v298_v14  ;;  %v641_v19 = vunpack.c.l.bf16 %v742_v15 }
  0x79   :  { %v321_v31 = vmul.f32 %v642_v23, %v642_v23 }
  0x7a   :  { %v411_v26 = vadd.f32 %v410_v22, %v299_v18  ;;  %v743_v22 = vld [vmem:[%s951_s0 + $0x148] sm:$0xff]   ;;  %v320_v27 = vmul.f32 %v641_v19, %v641_v19 }
  0x7b   :  { %v646_v30 = vunpack.c.h.bf16 %v743_v22 }
  0x7c   :  { %v412_v29 = vadd.f32 %v411_v26, %v300_v21  ;;  %v645_v26 = vunpack.c.l.bf16 %v743_v22 }
  0x7d   :  { %v323_v38 = vmul.f32 %v646_v30, %v646_v30 }
  0x7e   :  { %v413_v33 = vadd.f32 %v412_v29, %v301_v25  ;;  %v744_v29 = vld [vmem:[%s951_s0 + $0x150] sm:$0xff]   ;;  %v322_v34 = vmul.f32 %v645_v26, %v645_v26 }
  0x7f   :  { %v650_v37 = vunpack.c.h.bf16 %v744_v29 }
  0x80   :  { %v414_v36 = vadd.f32 %v413_v33, %v302_v28  ;;  %v649_v33 = vunpack.c.l.bf16 %v744_v29 }
  0x81   :  { %v325_v45 = vmul.f32 %v650_v37, %v650_v37 }
  0x82   :  { %v415_v40 = vadd.f32 %v414_v36, %v303_v32  ;;  %v745_v36 = vld [vmem:[%s951_s0 + $0x158] sm:$0xff]   ;;  %v324_v41 = vmul.f32 %v649_v33, %v649_v33 }
  0x83   :  { %v654_v44 = vunpack.c.h.bf16 %v745_v36 }
  0x84   :  { %v416_v43 = vadd.f32 %v415_v40, %v304_v35  ;;  %v653_v40 = vunpack.c.l.bf16 %v745_v36 }
  0x85   :  { %v327_v52 = vmul.f32 %v654_v44, %v654_v44 }
  0x86   :  { %v417_v47 = vadd.f32 %v416_v43, %v305_v39  ;;  %v746_v43 = vld [vmem:[%s951_s0 + $0x160] sm:$0xff]   ;;  %v326_v48 = vmul.f32 %v653_v40, %v653_v40 }
  0x87   :  { %v658_v51 = vunpack.c.h.bf16 %v746_v43 }
  0x88   :  { %v418_v50 = vadd.f32 %v417_v47, %v306_v42  ;;  %v657_v47 = vunpack.c.l.bf16 %v746_v43 }
  0x89   :  { %v329_v59 = vmul.f32 %v658_v51, %v658_v51 }
  0x8a   :  { %v419_v54 = vadd.f32 %v418_v50, %v307_v46  ;;  %v747_v50 = vld [vmem:[%s951_s0 + $0x168] sm:$0xff]   ;;  %v328_v55 = vmul.f32 %v657_v47, %v657_v47 }
  0x8b   :  { %v662_v58 = vunpack.c.h.bf16 %v747_v50 }
  0x8c   :  { %v420_v57 = vadd.f32 %v419_v54, %v308_v49  ;;  %v661_v54 = vunpack.c.l.bf16 %v747_v50 }
  0x8d   :  { %v331_v2 = vmul.f32 %v662_v58, %v662_v58  ;;  %v125_v58 = vld [vmem:[%s951_s0 + $0x1c0] sm:$0x3] }
  0x8e   :  { %v421_v61 = vadd.f32 %v420_v57, %v309_v53  ;;  %v748_v57 = vld [vmem:[%s951_s0 + $0x170] sm:$0xff]   ;;  %v330_v62 = vmul.f32 %v661_v54, %v661_v54 }
  0x8f   :  { %v666_v1 = vunpack.c.h.bf16 %v748_v57 }
  0x90   :  { %v422_v0 = vadd.f32 %v421_v61, %v310_v56  ;;  %v665_v61 = vunpack.c.l.bf16 %v748_v57 }
  0x91   :  { %v333_v9 = vmul.f32 %v666_v1, %v666_v1 }
  0x92   :  { %v423_v4 = vadd.f32 %v422_v0, %v311_v60  ;;  %v749_v0 = vld [vmem:[%s951_s0 + $0x178] sm:$0xff]   ;;  %v332_v5 = vmul.f32 %v665_v61, %v665_v61 }
  0x93   :  { %v670_v8 = vunpack.c.h.bf16 %v749_v0 }
  0x94   :  { %v424_v7 = vadd.f32 %v423_v4, %v312_v63  ;;  %v669_v4 = vunpack.c.l.bf16 %v749_v0  ;;  %v238_v0 = vunpack.c.l.bf16 %v125_v58 }
  0x95   :  { %v335_v16 = vmul.f32 %v670_v8, %v670_v8 }
  0x96   :  { %v425_v11 = vadd.f32 %v424_v7, %v313_v3  ;;  %v750_v7 = vld [vmem:[%s951_s0 + $0x180] sm:$0xff]   ;;  %v334_v12 = vmul.f32 %v669_v4, %v669_v4 }
  0x97   :  { %v674_v15 = vunpack.c.h.bf16 %v750_v7 }
  0x98   :  { %v426_v14 = vadd.f32 %v425_v11, %v314_v6  ;;  %v673_v11 = vunpack.c.l.bf16 %v750_v7 }
  0x99   :  { %v337_v23 = vmul.f32 %v674_v15, %v674_v15 }
  0x9a   :  { %v427_v18 = vadd.f32 %v426_v14, %v315_v10  ;;  %v751_v14 = vld [vmem:[%s951_s0 + $0x188] sm:$0xff]   ;;  %v336_v19 = vmul.f32 %v673_v11, %v673_v11 }
  0x9b   :  { %v678_v22 = vunpack.c.h.bf16 %v751_v14 }
  0x9c   :  { %v428_v21 = vadd.f32 %v427_v18, %v316_v13  ;;  %v677_v18 = vunpack.c.l.bf16 %v751_v14 }
  0x9d   :  { %v339_v30 = vmul.f32 %v678_v22, %v678_v22 }
  0x9e   :  { %v429_v25 = vadd.f32 %v428_v21, %v317_v17  ;;  %v752_v21 = vld [vmem:[%s951_s0 + $0x190] sm:$0xff]   ;;  %v338_v26 = vmul.f32 %v677_v18, %v677_v18  ;;  %v239_v18 = vld [vmem:[%s950_s1] sm:$0x1] }
  0x9f   :  { %v682_v29 = vunpack.c.h.bf16 %v752_v21 }
  0xa0   :  { %v430_v28 = vadd.f32 %v429_v25, %v318_v20  ;;  %v681_v25 = vunpack.c.l.bf16 %v752_v21 }
  0xa1   :  { %v341_v37 = vmul.f32 %v682_v29, %v682_v29 }
  0xa2   :  { %v431_v32 = vadd.f32 %v430_v28, %v319_v24  ;;  %v753_v28 = vld [vmem:[%s951_s0 + $0x198] sm:$0xff]   ;;  %v340_v33 = vmul.f32 %v681_v25, %v681_v25 }
  0xa3   :  { %v686_v36 = vunpack.c.h.bf16 %v753_v28 }
  0xa4   :  { %v432_v35 = vadd.f32 %v431_v32, %v320_v27  ;;  %v685_v32 = vunpack.c.l.bf16 %v753_v28 }
  0xa5   :  { %v343_v44 = vmul.f32 %v686_v36, %v686_v36 }
  0xa6   :  { %v433_v39 = vadd.f32 %v432_v35, %v321_v31  ;;  %v754_v35 = vld [vmem:[%s951_s0 + $0x1a0] sm:$0xff]   ;;  %v342_v40 = vmul.f32 %v685_v32, %v685_v32 }
  0xa7   :  { %v690_v43 = vunpack.c.h.bf16 %v754_v35 }
  0xa8   :  { %v434_v42 = vadd.f32 %v433_v39, %v322_v34  ;;  %v689_v39 = vunpack.c.l.bf16 %v754_v35 }
  0xa9   :  { %v345_v51 = vmul.f32 %v690_v43, %v690_v43 }
  0xaa   :  { %v435_v46 = vadd.f32 %v434_v42, %v323_v38  ;;  %v755_v42 = vld [vmem:[%s951_s0 + $0x1a8] sm:$0xff]   ;;  %v344_v47 = vmul.f32 %v689_v39, %v689_v39 }
  0xab   :  { %v694_v50 = vunpack.c.h.bf16 %v755_v42 }
  0xac   :  { %v436_v49 = vadd.f32 %v435_v46, %v324_v41  ;;  %v693_v46 = vunpack.c.l.bf16 %v755_v42 }
  0xae   :  { %v437_v53 = vadd.f32 %v436_v49, %v325_v45  ;;  %v756_v49 = vld [vmem:[%s951_s0 + $0x1b0] sm:$0xff]   ;;  %v346_v54 = vmul.f32 %v693_v46, %v693_v46 }
  0xaf   :  { %v698_v57 = vunpack.c.h.bf16 %v756_v49 }
  0xb0   :  { %v438_v56 = vadd.f32 %v437_v53, %v326_v48  ;;  %v697_v53 = vunpack.c.l.bf16 %v756_v49 }
  0xb2   :  { %v439_v60 = vadd.f32 %v438_v56, %v327_v52  ;;  %v757_v56 = vld [vmem:[%s951_s0 + $0x1b8] sm:$0xff]  }
  0xb3   :  { %v701_v61 = vunpack.c.l.bf16 %v757_v56  ;;  %v702_v1 = vunpack.c.h.bf16 %v757_v56 }
  0xb4   :  { %v440_v63 = vadd.f32 %v439_v60, %v328_v55 }
  0xb5   :  { %v350_v4 = vmul.f32 %v701_v61, %v701_v61  ;;  %v351_v7 = vmul.f32 %v702_v1, %v702_v1 }
  0xb6   :  { %v441_v3 = vadd.f32 %v440_v63, %v329_v59  ;;  %v347_v59 = vmul.f32 %v694_v50, %v694_v50 }
  0xb8   :  { %v442_v6 = vadd.f32 %v441_v3, %v330_v62  ;;  %v348_v62 = vmul.f32 %v697_v53, %v697_v53 }
  0xba   :  { %v443_v10 = vadd.f32 %v442_v6, %v331_v2  ;;  %v349_v2 = vmul.f32 %v698_v57, %v698_v57  ;;  %v352_v6 = vmul.f32 %v238_v0, %v238_v0 }
  0xbc   :  { %v444_v13 = vadd.f32 %v443_v10, %v332_v5  ;;  %v465_v10 = vsel %vm464_vm0, %v352_v6, 0.0 }
  0xbe   :  { %v445_v17 = vadd.f32 %v444_v13, %v333_v9 }
  0xc0   :  { %v446_v20 = vadd.f32 %v445_v17, %v334_v12 }
  0xc2   :  { %v447_v24 = vadd.f32 %v446_v20, %v335_v16 }
  0xc4   :  { %v448_v27 = vadd.f32 %v447_v24, %v336_v19 }
  0xc6   :  { %v449_v31 = vadd.f32 %v448_v27, %v337_v23 }
  0xc8   :  { %v450_v34 = vadd.f32 %v449_v31, %v338_v26 }
  0xca   :  { %v451_v38 = vadd.f32 %v450_v34, %v339_v30 }
  0xcc   :  { %v452_v41 = vadd.f32 %v451_v38, %v340_v33 }
  0xce   :  { %v453_v45 = vadd.f32 %v452_v41, %v341_v37 }
  0xd0   :  { %v454_v48 = vadd.f32 %v453_v45, %v342_v40 }
  0xd2   :  { %v455_v52 = vadd.f32 %v454_v48, %v343_v44 }
  0xd4   :  { %v456_v55 = vadd.f32 %v455_v52, %v344_v47 }
  0xd6   :  { %v457_v60 = vadd.f32 %v456_v55, %v345_v51 }
  0xd8   :  { %v458_v63 = vadd.f32 %v457_v60, %v346_v54 }
  0xda   :  { %v459_v3 = vadd.f32 %v458_v63, %v347_v59 }
  0xdc   :  { %v460_v5 = vadd.f32 %v459_v3, %v348_v62 }
  0xde   :  { %v461_v8 = vadd.f32 %v460_v5, %v349_v2 }
  0xe0   :  { %v462_v9 = vadd.f32 %v461_v8, %v350_v4 }
  0xe2   :  { %v463_v11 = vadd.f32 %v462_v9, %v351_v7 }
  0xe4   :  { %v466_v12 = vadd.f32 %v465_v10, %v463_v11 }
  0xe6   :  { %v467_v13 = vrot.slane %v466_v12, 4 }
  0xe8   :  { %v468_v14 = vadd.f32 %v467_v13, %v466_v12 }
  0xea   :  { %v469_v15 = vrot.slane %v468_v14, 2 }
  0xec   :  { %v470_v16 = vadd.f32 %v469_v15, %v468_v14 }
  0xee   :  { %v471_v17 = vrot.slane %v470_v16, 1 }
  0xf0   :  { %v472_v19 = vadd.f32 %v471_v17, %v470_v16 }
  0xf2   :  { %v473_v20 = vadd.f32 %v472_v19, %v239_v18 }
  0xf4   :  { %474 = vst [vmem:[%s950_s1] sm:$0x1] %v473_v20 }

// kernel: _regularization_loss.6
= control target key start
LH: loop header
LB: loop body
LE: loop exit
PB: predicated region body
PF: predicated region fallthrough
CT: control target
= control target key end

     0   :  { %s3790_s6 = smov 0   ;;  %s5355_s0 = inlined_call_operand.vmem [shape: f32[4800,128], index: 0, kind: input, shape index: {}]   ;;  %s5356_s1 = inlined_call_operand.vmem [shape: f32[1,128], index: 1, kind: output, shape index: {}]  }
   0x1 LB: > { %s3752_s7 = sadd.s32 4294967295, %s3777_s6   ;;  %p3755_p0 = scmp.ge.s32.totalorder %s3777_s6, 1  ;;  %s3777_s6 = sphi %s3790_s6, %s11_s6  }
   0x2   : > { %p91_p1 = scmp.lt.s32.totalorder %s3777_s6, 3 }
   0x4   : > { %p92_p2 = pnand %p3755_p0, %p91_p1 }
   0x5   : > { %s3756_s8 = sshll.u32 (!%p92_p2), %s3752_s7, 9  ;;  %p3758_p4 = scmp.ne.s32.totalorder (!%p92_p2), %s3752_s7, 0 }
   0x6   : > { %95 = sbr.rel (%p92_p2) target bundleno = 1069 (0x42d), region = 24  ;;  %p115_p3 = scmp.lt.s32.totalorder (!%p92_p2), %s3756_s8, 599 }
   0xd   : > { %s5358_s8 = smov (!%p115_p3, %s3756_s8), 599  ;;  %127 = sbr.rel (%p3758_p4) target bundleno = 20 (0x14), region = 28 }
   0xe   : > { %s3757_s9 = sshll.u32 %s5358_s8, 3  ;;  %v3779_v0 = vmov (!%p3758_p4), 0.0  }
   0xf   : > { %s3801_s12 = scalar_lea.vmem %s5355_s0, %s3757_s9  ;;  %128 = vst [vmem:[%s5356_s1] sm:$0x1] (!%p3758_p4), %v3779_v0 }
  0x14 PF: > { %v641_v1 = vlaneseq  ;;  %s3759_s15 = sshll.u32 %s3752_s7, 12  ;;  %v129_v11 = vld [vmem:[%s3801_s12] sm:$0xff]  ;;  %v130_v12 = vld [vmem:[%s3801_s12 + $0x8] sm:$0xff]  ;;  %v131_v15 = vld [vmem:[%s3801_s12 + $0x10] sm:$0xff] }
  0x15   : > { %v3809_v4 = vstv %s3759_s15  ;;  %v132_v20 = vld [vmem:[%s3801_s12 + $0x18] sm:$0xff]  ;;  %v133_v25 = vld [vmem:[%s3801_s12 + $0x20] sm:$0xff]  ;;  %v134_v30 = vld [vmem:[%s3801_s12 + $0x28] sm:$0xff] }
  0x16   : > { %v3806_v2 = vshrl.u32 %v641_v1, 7  ;;  %v135_v36 = vld [vmem:[%s3801_s12 + $0x30] sm:$0xff]  ;;  %v136_v42 = vld [vmem:[%s3801_s12 + $0x38] sm:$0xff]  ;;  %v137_v48 = vld [vmem:[%s3801_s12 + $0x40] sm:$0xff] }
  0x17   : > { %v138_v54 = vld [vmem:[%s3801_s12 + $0x48] sm:$0xff]  ;;  %v139_v60 = vld [vmem:[%s3801_s12 + $0x50] sm:$0xff] }
  0x18   : > { %v643_v3 = vadd.s32 8, %v3806_v2  ;;  %v644_v5 = vadd.s32 16, %v3806_v2  ;;  %v645_v6 = vadd.s32 24, %v3806_v2  ;;  %v1156_v7 = vadd.s32 %v3809_v4, %v3806_v2 }
  0x19   : > { %v646_v9 = vadd.s32 32, %v3806_v2  ;;  %v647_v13 = vadd.s32 40, %v3806_v2  ;;  %v648_v16 = vadd.s32 48, %v3806_v2  ;;  %v649_v21 = vadd.s32 56, %v3806_v2 }
  0x1a   : > { %v1157_v8 = vadd.s32 %v3809_v4, %v643_v3  ;;  %v1158_v10 = vadd.s32 %v3809_v4, %v644_v5  ;;  %v1159_v14 = vadd.s32 %v3809_v4, %v645_v6  ;;  %vm1668_vm0 = vcmp.lt.s32.totalorder %v1156_v7, 4800  ;;  %v140_v3 = vld [vmem:[%s3801_s12 + $0x58] sm:$0xff] }
  0x1b   : > { %v1160_v17 = vadd.s32 %v3809_v4, %v646_v9  ;;  %v2180_v18 = vsel %vm1668_vm0, %v129_v11, 0.0  ;;  %v1161_v22 = vadd.s32 %v3809_v4, %v647_v13  ;;  %v650_v23 = vadd.s32 64, %v3806_v2 }
  0x1c   : > { %vm1669_vm1 = vcmp.lt.s32.totalorder %v1157_v8, 4800  ;;  %vm1670_vm2 = vcmp.lt.s32.totalorder %v1158_v10, 4800  ;;  %vm1671_vm3 = vcmp.lt.s32.totalorder %v1159_v14, 4800  ;;  %v1162_v26 = vadd.s32 %v3809_v4, %v648_v16  ;;  %v141_v10 = vld [vmem:[%s3801_s12 + $0x60] sm:$0xff]  ;;  %v142_v16 = vld [vmem:[%s3801_s12 + $0x68] sm:$0xff] }
  0x1d   : > { %v2181_v19 = vsel %vm1669_vm1, %v130_v12, 0.0  ;;  %v2182_v24 = vsel %vm1670_vm2, %v131_v15, 0.0  ;;  %vm1672_vm4 = vcmp.lt.s32.totalorder %v1160_v17, 4800  ;;  %v2693_v27 = vmul.f32 %v2180_v18, %v2180_v18 }
  0x1e   : > { %v2694_v28 = vmul.f32 %v2181_v19, %v2181_v19  ;;  %v2183_v29 = vsel %vm1671_vm3, %v132_v20, 0.0  ;;  %v651_v31 = vadd.s32 72, %v3806_v2  ;;  %v1163_v32 = vadd.s32 %v3809_v4, %v649_v21 }
  0x1f   : > { %vm1673_vm5 = vcmp.lt.s32.totalorder %v1161_v22, 4800  ;;  %v2695_v33 = vmul.f32 %v2182_v24, %v2182_v24  ;;  %v652_v34 = vadd.s32 80, %v3806_v2  ;;  %v2184_v35 = vsel %vm1672_vm4, %v133_v25, 0.0  ;;  %v143_v22 = vld [vmem:[%s3801_s12 + $0x70] sm:$0xff] }
  0x20   : > { %v1164_v37 = vadd.s32 %v3809_v4, %v650_v23  ;;  %vm1674_vm6 = vcmp.lt.s32.totalorder %v1162_v26, 4800  ;;  %v2696_v38 = vmul.f32 %v2183_v29, %v2183_v29  ;;  %v3205_v39 = vadd.f32 %v2694_v28, %v2693_v27  ;;  %v144_v28 = vld [vmem:[%s3801_s12 + $0x78] sm:$0xff] }
  0x21   : > { %v653_v40 = vadd.s32 88, %v3806_v2  ;;  %v2185_v41 = vsel %vm1673_vm5, %v134_v30, 0.0  ;;  %v1165_v43 = vadd.s32 %v3809_v4, %v651_v31  ;;  %vm1675_vm7 = vcmp.lt.s32.totalorder %v1163_v32, 4800 }
  0x22   : > { %v2697_v44 = vmul.f32 %v2184_v35, %v2184_v35  ;;  %v3206_v45 = vadd.f32 %v3205_v39, %v2695_v33  ;;  %v654_v46 = vadd.s32 96, %v3806_v2  ;;  %v2186_v47 = vsel %vm1674_vm6, %v135_v36, 0.0 }
  0x23   : > { %v1166_v49 = vadd.s32 %v3809_v4, %v652_v34  ;;  %vm1676_vm8 = vcmp.lt.s32.totalorder %v1164_v37, 4800  ;;  %v2698_v50 = vmul.f32 %v2185_v41, %v2185_v41  ;;  %v655_v52 = vadd.s32 104, %v3806_v2  ;;  %v145_v34 = vld [vmem:[%s3801_s12 + $0x80] sm:$0xff] }
  0x24   : > { %v3207_v51 = vadd.f32 %v3206_v45, %v2696_v38  ;;  %v2187_v53 = vsel %vm1675_vm7, %v136_v42, 0.0  ;;  %v1167_v55 = vadd.s32 %v3809_v4, %v653_v40  ;;  %vm1677_vm9 = vcmp.lt.s32.totalorder %v1165_v43, 4800  ;;  %v146_v40 = vld [vmem:[%s3801_s12 + $0x88] sm:$0xff] }
  0x25   : > { %v2699_v56 = vmul.f32 %v2186_v47, %v2186_v47  ;;  %v656_v58 = vadd.s32 112, %v3806_v2  ;;  %v2188_v59 = vsel %vm1676_vm8, %v137_v48, 0.0  ;;  %v1168_v61 = vadd.s32 %v3809_v4, %v654_v46  ;;  %v147_v46 = vld [vmem:[%s3801_s12 + $0x90] sm:$0xff] }
  0x26   : > { %v3208_v57 = vadd.f32 %v3207_v51, %v2697_v44  ;;  %vm1678_vm10 = vcmp.lt.s32.totalorder %v1166_v49, 4800  ;;  %v2700_v62 = vmul.f32 %v2187_v53, %v2187_v53  ;;  %v657_v0 = vadd.s32 120, %v3806_v2 }
  0x27   : > { %v2189_v1 = vsel %vm1677_vm9, %v138_v54, 0.0  ;;  %v1169_v5 = vadd.s32 %v3809_v4, %v655_v52  ;;  %vm1679_vm11 = vcmp.lt.s32.totalorder %v1167_v55, 4800  ;;  %v2701_v6 = vmul.f32 %v2188_v59, %v2188_v59  ;;  %v148_v52 = vld [vmem:[%s3801_s12 + $0x98] sm:$0xff] }
  0x28   : > { %v3209_v63 = vadd.f32 %v3208_v57, %v2698_v50  ;;  %v658_v8 = vadd.s32 128, %v3806_v2  ;;  %v2190_v9 = vsel %vm1678_vm10, %v139_v60, 0.0  ;;  %v1170_v11 = vadd.s32 %v3809_v4, %v656_v58  ;;  %v149_v58 = vld [vmem:[%s3801_s12 + $0xa0] sm:$0xff] }
  0x29   : > { %vm1680_vm12 = vcmp.lt.s32.totalorder %v1168_v61, 4800  ;;  %v2702_v12 = vmul.f32 %v2189_v1, %v2189_v1  ;;  %v659_v14 = vadd.s32 136, %v3806_v2  ;;  %v2191_v15 = vsel %vm1679_vm11, %v140_v3, 0.0 }
  0x2a   : > { %v3210_v7 = vadd.f32 %v3209_v63, %v2699_v56  ;;  %v1171_v17 = vadd.s32 %v3809_v4, %v657_v0  ;;  %vm1681_vm13 = vcmp.lt.s32.totalorder %v1169_v5, 4800  ;;  %v2703_v18 = vmul.f32 %v2190_v9, %v2190_v9  ;;  %v150_v0 = vld [vmem:[%s3801_s12 + $0xa8] sm:$0xff] }
  0x2b   : > { %v660_v20 = vadd.s32 144, %v3806_v2  ;;  %v2192_v21 = vsel %vm1680_vm12, %v141_v10, 0.0  ;;  %v1172_v23 = vadd.s32 %v3809_v4, %v658_v8  ;;  %vm1682_vm14 = vcmp.lt.s32.totalorder %v1170_v11, 4800  ;;  %v151_v8 = vld [vmem:[%s3801_s12 + $0xb0] sm:$0xff] }
  0x2c   : > { %v3211_v13 = vadd.f32 %v3210_v7, %v2700_v62  ;;  %v2704_v24 = vmul.f32 %v2191_v15, %v2191_v15  ;;  %v661_v26 = vadd.s32 152, %v3806_v2  ;;  %v2193_v27 = vsel %vm1681_vm13, %v142_v16, 0.0 }
  0x2d   : > { %v1173_v29 = vadd.s32 %v3809_v4, %v659_v14  ;;  %vm1683_vm15 = vcmp.lt.s32.totalorder %v1171_v17, 4800  ;;  %v2705_v30 = vmul.f32 %v2192_v21, %v2192_v21  ;;  %v662_v32 = vadd.s32 160, %v3806_v2  ;;  %v152_v14 = vld [vmem:[%s3801_s12 + $0xb8] sm:$0xff] }
  0x2e   : > { %v3212_v19 = vadd.f32 %v3211_v13, %v2701_v6  ;;  %v2194_v33 = vsel %vm1682_vm14, %v143_v22, 0.0  ;;  %v1174_v35 = vadd.s32 %v3809_v4, %v660_v20  ;;  %vm1684_vm0 = vcmp.lt.s32.totalorder %v1172_v23, 4800  ;;  %v153_v20 = vld [vmem:[%s3801_s12 + $0xc0] sm:$0xff] }
  0x2f   : > { %v2706_v36 = vmul.f32 %v2193_v27, %v2193_v27  ;;  %v663_v38 = vadd.s32 168, %v3806_v2  ;;  %v2195_v39 = vsel %vm1683_vm15, %v144_v28, 0.0  ;;  %v1175_v41 = vadd.s32 %v3809_v4, %v661_v26  ;;  %v154_v26 = vld [vmem:[%s3801_s12 + $0xc8] sm:$0xff] }
  0x30   : > { %v3213_v25 = vadd.f32 %v3212_v19, %v2702_v12  ;;  %vm1685_vm1 = vcmp.lt.s32.totalorder %v1173_v29, 4800  ;;  %v2707_v42 = vmul.f32 %v2194_v33, %v2194_v33  ;;  %v664_v44 = vadd.s32 176, %v3806_v2 }
  0x31   : > { %v2196_v45 = vsel %vm1684_vm0, %v145_v34, 0.0  ;;  %v1176_v47 = vadd.s32 %v3809_v4, %v662_v32  ;;  %vm1686_vm2 = vcmp.lt.s32.totalorder %v1174_v35, 4800  ;;  %v2708_v48 = vmul.f32 %v2195_v39, %v2195_v39  ;;  %v155_v32 = vld [vmem:[%s3801_s12 + $0xd0] sm:$0xff] }
  0x32   : > { %v3214_v31 = vadd.f32 %v3213_v25, %v2703_v18  ;;  %v665_v50 = vadd.s32 184, %v3806_v2  ;;  %v2197_v51 = vsel %vm1685_vm1, %v146_v40, 0.0  ;;  %v1177_v53 = vadd.s32 %v3809_v4, %v663_v38  ;;  %v156_v38 = vld [vmem:[%s3801_s12 + $0xd8] sm:$0xff] }
  0x33   : > { %vm1687_vm3 = vcmp.lt.s32.totalorder %v1175_v41, 4800  ;;  %v2709_v54 = vmul.f32 %v2196_v45, %v2196_v45  ;;  %v666_v56 = vadd.s32 192, %v3806_v2  ;;  %v2198_v57 = vsel %vm1686_vm2, %v147_v46, 0.0 }
  0x34   : > { %v3215_v37 = vadd.f32 %v3214_v31, %v2704_v24  ;;  %v1178_v59 = vadd.s32 %v3809_v4, %v664_v44  ;;  %vm1688_vm4 = vcmp.lt.s32.totalorder %v1176_v47, 4800  ;;  %v2710_v60 = vmul.f32 %v2197_v51, %v2197_v51  ;;  %v157_v44 = vld [vmem:[%s3801_s12 + $0xe0] sm:$0xff] }
  0x35   : > { %v667_v62 = vadd.s32 200, %v3806_v2  ;;  %v2199_v63 = vsel %vm1687_vm3, %v148_v52, 0.0  ;;  %v1179_v1 = vadd.s32 %v3809_v4, %v665_v50  ;;  %vm1689_vm5 = vcmp.lt.s32.totalorder %v1177_v53, 4800  ;;  %v158_v50 = vld [vmem:[%s3801_s12 + $0xe8] sm:$0xff] }
  0x36   : > { %v3216_v43 = vadd.f32 %v3215_v37, %v2705_v30  ;;  %v2711_v3 = vmul.f32 %v2198_v57, %v2198_v57  ;;  %v668_v6 = vadd.s32 208, %v3806_v2  ;;  %v2200_v7 = vsel %vm1688_vm4, %v149_v58, 0.0 }
  0x37   : > { %v1180_v9 = vadd.s32 %v3809_v4, %v666_v56  ;;  %vm1690_vm6 = vcmp.lt.s32.totalorder %v1178_v59, 4800  ;;  %v2712_v10 = vmul.f32 %v2199_v63, %v2199_v63  ;;  %v669_v12 = vadd.s32 216, %v3806_v2  ;;  %v159_v56 = vld [vmem:[%s3801_s12 + $0xf0] sm:$0xff] }
  0x38   : > { %v3217_v49 = vadd.f32 %v3216_v43, %v2706_v36  ;;  %v2201_v13 = vsel %vm1689_vm5, %v150_v0, 0.0  ;;  %v1181_v15 = vadd.s32 %v3809_v4, %v667_v62  ;;  %vm1691_vm7 = vcmp.lt.s32.totalorder %v1179_v1, 4800  ;;  %v160_v62 = vld [vmem:[%s3801_s12 + $0xf8] sm:$0xff] }
  0x39   : > { %v2713_v16 = vmul.f32 %v2200_v7, %v2200_v7  ;;  %v670_v18 = vadd.s32 224, %v3806_v2  ;;  %v2202_v19 = vsel %vm1690_vm6, %v151_v8, 0.0  ;;  %v1182_v21 = vadd.s32 %v3809_v4, %v668_v6  ;;  %v161_v6 = vld [vmem:[%s3801_s12 + $0x100] sm:$0xff] }
  0x3a   : > { %v3218_v55 = vadd.f32 %v3217_v49, %v2707_v42  ;;  %vm1692_vm8 = vcmp.lt.s32.totalorder %v1180_v9, 4800  ;;  %v2714_v22 = vmul.f32 %v2201_v13, %v2201_v13  ;;  %v671_v24 = vadd.s32 232, %v3806_v2 }
  0x3b   : > { %v2203_v25 = vsel %vm1691_vm7, %v152_v14, 0.0  ;;  %v1183_v27 = vadd.s32 %v3809_v4, %v669_v12  ;;  %vm1693_vm9 = vcmp.lt.s32.totalorder %v1181_v15, 4800  ;;  %v2715_v28 = vmul.f32 %v2202_v19, %v2202_v19  ;;  %v162_v12 = vld [vmem:[%s3801_s12 + $0x108] sm:$0xff] }
  0x3c   : > { %v3219_v61 = vadd.f32 %v3218_v55, %v2708_v48  ;;  %v672_v30 = vadd.s32 240, %v3806_v2  ;;  %v2204_v31 = vsel %vm1692_vm8, %v153_v20, 0.0  ;;  %v1184_v33 = vadd.s32 %v3809_v4, %v670_v18  ;;  %v163_v18 = vld [vmem:[%s3801_s12 + $0x110] sm:$0xff] }
  0x3d   : > { %vm1694_vm10 = vcmp.lt.s32.totalorder %v1182_v21, 4800  ;;  %v2716_v34 = vmul.f32 %v2203_v25, %v2203_v25  ;;  %v673_v36 = vadd.s32 248, %v3806_v2  ;;  %v2205_v37 = vsel %vm1693_vm9, %v154_v26, 0.0 }
  0x3e   : > { %v3220_v5 = vadd.f32 %v3219_v61, %v2709_v54  ;;  %v1185_v39 = vadd.s32 %v3809_v4, %v671_v24  ;;  %vm1695_vm11 = vcmp.lt.s32.totalorder %v1183_v27, 4800  ;;  %v2717_v40 = vmul.f32 %v2204_v31, %v2204_v31  ;;  %v164_v24 = vld [vmem:[%s3801_s12 + $0x118] sm:$0xff] }
  0x3f   : > { %v674_v42 = vadd.s32 256, %v3806_v2  ;;  %v2206_v43 = vsel %vm1694_vm10, %v155_v32, 0.0  ;;  %v1186_v45 = vadd.s32 %v3809_v4, %v672_v30  ;;  %vm1696_vm12 = vcmp.lt.s32.totalorder %v1184_v33, 4800  ;;  %v165_v30 = vld [vmem:[%s3801_s12 + $0x120] sm:$0xff] }
  0x40   : > { %v3221_v11 = vadd.f32 %v3220_v5, %v2710_v60  ;;  %v2718_v46 = vmul.f32 %v2205_v37, %v2205_v37  ;;  %v675_v48 = vadd.s32 264, %v3806_v2  ;;  %v2207_v49 = vsel %vm1695_vm11, %v156_v38, 0.0 }
  0x41   : > { %v1187_v51 = vadd.s32 %v3809_v4, %v673_v36  ;;  %vm1697_vm13 = vcmp.lt.s32.totalorder %v1185_v39, 4800  ;;  %v2719_v52 = vmul.f32 %v2206_v43, %v2206_v43  ;;  %v676_v54 = vadd.s32 272, %v3806_v2  ;;  %v166_v36 = vld [vmem:[%s3801_s12 + $0x128] sm:$0xff] }
  0x42   : > { %v3222_v17 = vadd.f32 %v3221_v11, %v2711_v3  ;;  %v2208_v55 = vsel %vm1696_vm12, %v157_v44, 0.0  ;;  %v1188_v57 = vadd.s32 %v3809_v4, %v674_v42  ;;  %vm1698_vm14 = vcmp.lt.s32.totalorder %v1186_v45, 4800  ;;  %v167_v42 = vld [vmem:[%s3801_s12 + $0x130] sm:$0xff] }
  0x43   : > { %v2720_v58 = vmul.f32 %v2207_v49, %v2207_v49  ;;  %v677_v60 = vadd.s32 280, %v3806_v2  ;;  %v2209_v61 = vsel %vm1697_vm13, %v158_v50, 0.0  ;;  %v1189_v63 = vadd.s32 %v3809_v4, %v675_v48  ;;  %v168_v48 = vld [vmem:[%s3801_s12 + $0x138] sm:$0xff] }
  0x44   : > { %v3223_v23 = vadd.f32 %v3222_v17, %v2712_v10  ;;  %vm1699_vm15 = vcmp.lt.s32.totalorder %v1187_v51, 4800  ;;  %v2721_v0 = vmul.f32 %v2208_v55, %v2208_v55  ;;  %v678_v3 = vadd.s32 288, %v3806_v2 }
  0x45   : > { %v2210_v5 = vsel %vm1698_vm14, %v159_v56, 0.0  ;;  %v1190_v7 = vadd.s32 %v3809_v4, %v676_v54  ;;  %vm1700_vm0 = vcmp.lt.s32.totalorder %v1188_v57, 4800  ;;  %v2722_v8 = vmul.f32 %v2209_v61, %v2209_v61  ;;  %v169_v54 = vld [vmem:[%s3801_s12 + $0x140] sm:$0xff] }
  0x46   : > { %v3224_v29 = vadd.f32 %v3223_v23, %v2713_v16  ;;  %v679_v10 = vadd.s32 296, %v3806_v2  ;;  %v2211_v11 = vsel %vm1699_vm15, %v160_v62, 0.0  ;;  %v1191_v13 = vadd.s32 %v3809_v4, %v677_v60  ;;  %v170_v60 = vld [vmem:[%s3801_s12 + $0x148] sm:$0xff] }
  0x47   : > { %vm1701_vm1 = vcmp.lt.s32.totalorder %v1189_v63, 4800  ;;  %v2723_v14 = vmul.f32 %v2210_v5, %v2210_v5  ;;  %v680_v16 = vadd.s32 304, %v3806_v2  ;;  %v2212_v17 = vsel %vm1700_vm0, %v161_v6, 0.0 }
  0x48   : > { %v3225_v35 = vadd.f32 %v3224_v29, %v2714_v22  ;;  %v1192_v19 = vadd.s32 %v3809_v4, %v678_v3  ;;  %vm1702_vm2 = vcmp.lt.s32.totalorder %v1190_v7, 4800  ;;  %v2724_v20 = vmul.f32 %v2211_v11, %v2211_v11  ;;  %v171_v3 = vld [vmem:[%s3801_s12 + $0x150] sm:$0xff] }
  0x49   : > { %v681_v22 = vadd.s32 312, %v3806_v2  ;;  %v2213_v23 = vsel %vm1701_vm1, %v162_v12, 0.0  ;;  %v1193_v25 = vadd.s32 %v3809_v4, %v679_v10  ;;  %vm1703_vm3 = vcmp.lt.s32.totalorder %v1191_v13, 4800  ;;  %v172_v10 = vld [vmem:[%s3801_s12 + $0x158] sm:$0xff] }
  0x4a   : > { %v3226_v41 = vadd.f32 %v3225_v35, %v2715_v28  ;;  %v2725_v26 = vmul.f32 %v2212_v17, %v2212_v17  ;;  %v682_v28 = vadd.s32 320, %v3806_v2  ;;  %v2214_v29 = vsel %vm1702_vm2, %v163_v18, 0.0 }
  0x4b   : > { %v1194_v31 = vadd.s32 %v3809_v4, %v680_v16  ;;  %vm1704_vm4 = vcmp.lt.s32.totalorder %v1192_v19, 4800  ;;  %v2726_v32 = vmul.f32 %v2213_v23, %v2213_v23  ;;  %v2215_v35 = vsel %vm1703_vm3, %v164_v24, 0.0  ;;  %v173_v16 = vld [vmem:[%s3801_s12 + $0x160] sm:$0xff] }
  0x4c   : > { %v3227_v47 = vadd.f32 %v3226_v41, %v2716_v34  ;;  %v683_v34 = vadd.s32 328, %v3806_v2  ;;  %v1195_v37 = vadd.s32 %v3809_v4, %v681_v22  ;;  %vm1705_vm5 = vcmp.lt.s32.totalorder %v1193_v25, 4800  ;;  %v174_v22 = vld [vmem:[%s3801_s12 + $0x168] sm:$0xff] }
  0x4d   : > { %v2727_v38 = vmul.f32 %v2214_v29, %v2214_v29  ;;  %v2216_v41 = vsel %vm1704_vm4, %v165_v30, 0.0  ;;  %v1196_v43 = vadd.s32 %v3809_v4, %v682_v28  ;;  %vm1706_vm6 = vcmp.lt.s32.totalorder %v1194_v31, 4800  ;;  %v175_v28 = vld [vmem:[%s3801_s12 + $0x170] sm:$0xff] }
  0x4e   : > { %v3228_v53 = vadd.f32 %v3227_v47, %v2717_v40  ;;  %v684_v40 = vadd.s32 336, %v3806_v2  ;;  %v2728_v44 = vmul.f32 %v2215_v35, %v2215_v35  ;;  %v2217_v47 = vsel %vm1705_vm5, %v166_v36, 0.0 }
  0x4f   : > { %v1197_v49 = vadd.s32 %v3809_v4, %v683_v34  ;;  %vm1707_vm7 = vcmp.lt.s32.totalorder %v1195_v37, 4800  ;;  %v2729_v50 = vmul.f32 %v2216_v41, %v2216_v41  ;;  %vm1708_vm8 = vcmp.lt.s32.totalorder %v1196_v43, 4800  ;;  %v176_v34 = vld [vmem:[%s3801_s12 + $0x178] sm:$0xff] }
  0x50   : > { %v3229_v59 = vadd.f32 %v3228_v53, %v2718_v46  ;;  %v685_v46 = vadd.s32 344, %v3806_v2  ;;  %v2218_v53 = vsel %vm1706_vm6, %v167_v42, 0.0  ;;  %v1198_v55 = vadd.s32 %v3809_v4, %v684_v40  ;;  %v177_v40 = vld [vmem:[%s3801_s12 + $0x180] sm:$0xff] }
  0x51   : > { %v2730_v56 = vmul.f32 %v2217_v47, %v2217_v47  ;;  %vm1709_vm9 = vcmp.lt.s32.totalorder %v1197_v49, 4800  ;;  %v2731_v62 = vmul.f32 %v2218_v53, %v2218_v53 }
  0x52   : > { %v3230_v1 = vadd.f32 %v3229_v59, %v2719_v52  ;;  %v686_v52 = vadd.s32 352, %v3806_v2  ;;  %v2219_v59 = vsel %vm1707_vm7, %v168_v48, 0.0  ;;  %v1199_v61 = vadd.s32 %v3809_v4, %v685_v46  ;;  %v178_v46 = vld [vmem:[%s3801_s12 + $0x188] sm:$0xff] }
  0x53   : > { %vm1710_vm10 = vcmp.lt.s32.totalorder %v1198_v55, 4800  ;;  %v2732_v6 = vmul.f32 %v2219_v59, %v2219_v59 }
  0x54   : > { %v3231_v9 = vadd.f32 %v3230_v1, %v2720_v58  ;;  %v687_v58 = vadd.s32 360, %v3806_v2  ;;  %v2220_v1 = vsel %vm1708_vm8, %v169_v54, 0.0  ;;  %v1200_v5 = vadd.s32 %v3809_v4, %v686_v52  ;;  %v179_v52 = vld [vmem:[%s3801_s12 + $0x190] sm:$0xff] }
  0x55   : > { %vm1711_vm11 = vcmp.lt.s32.totalorder %v1199_v61, 4800  ;;  %v2733_v12 = vmul.f32 %v2220_v1, %v2220_v1 }
  0x56   : > { %v3232_v15 = vadd.f32 %v3231_v9, %v2721_v0  ;;  %v688_v0 = vadd.s32 368, %v3806_v2  ;;  %v2221_v9 = vsel %vm1709_vm9, %v170_v60, 0.0  ;;  %v1201_v11 = vadd.s32 %v3809_v4, %v687_v58  ;;  %v180_v58 = vld [vmem:[%s3801_s12 + $0x198] sm:$0xff] }
  0x57   : > { %vm1712_vm12 = vcmp.lt.s32.totalorder %v1200_v5, 4800  ;;  %v2734_v18 = vmul.f32 %v2221_v9, %v2221_v9 }
  0x58   : > { %v3233_v21 = vadd.f32 %v3232_v15, %v2722_v8  ;;  %v689_v8 = vadd.s32 376, %v3806_v2  ;;  %v2222_v15 = vsel %vm1710_vm10, %v171_v3, 0.0  ;;  %v1202_v17 = vadd.s32 %v3809_v4, %v688_v0  ;;  %v181_v0 = vld [vmem:[%s3801_s12 + $0x1a0] sm:$0xff] }
  0x59   : > { %vm1713_vm13 = vcmp.lt.s32.totalorder %v1201_v11, 4800  ;;  %v2735_v24 = vmul.f32 %v2222_v15, %v2222_v15 }
  0x5a   : > { %v3234_v27 = vadd.f32 %v3233_v21, %v2723_v14  ;;  %v690_v14 = vadd.s32 384, %v3806_v2  ;;  %v2223_v21 = vsel %vm1711_vm11, %v172_v10, 0.0  ;;  %v1203_v23 = vadd.s32 %v3809_v4, %v689_v8  ;;  %v182_v8 = vld [vmem:[%s3801_s12 + $0x1a8] sm:$0xff] }
  0x5b   : > { %vm1714_vm14 = vcmp.lt.s32.totalorder %v1202_v17, 4800  ;;  %v2736_v30 = vmul.f32 %v2223_v21, %v2223_v21 }
  0x5c   : > { %v3235_v33 = vadd.f32 %v3234_v27, %v2724_v20  ;;  %v691_v20 = vadd.s32 392, %v3806_v2  ;;  %v2224_v27 = vsel %vm1712_vm12, %v173_v16, 0.0  ;;  %v1204_v29 = vadd.s32 %v3809_v4, %v690_v14  ;;  %v183_v14 = vld [vmem:[%s3801_s12 + $0x1b0] sm:$0xff] }
  0x5d   : > { %vm1715_vm15 = vcmp.lt.s32.totalorder %v1203_v23, 4800  ;;  %v2737_v36 = vmul.f32 %v2224_v27, %v2224_v27 }
  0x5e   : > { %v3236_v39 = vadd.f32 %v3235_v33, %v2725_v26  ;;  %v692_v26 = vadd.s32 400, %v3806_v2  ;;  %v2225_v33 = vsel %vm1713_vm13, %v174_v22, 0.0  ;;  %v1205_v35 = vadd.s32 %v3809_v4, %v691_v20  ;;  %v184_v20 = vld [vmem:[%s3801_s12 + $0x1b8] sm:$0xff] }
  0x5f   : > { %vm1716_vm0 = vcmp.lt.s32.totalorder %v1204_v29, 4800  ;;  %v2738_v42 = vmul.f32 %v2225_v33, %v2225_v33 }
  0x60   : > { %v3237_v45 = vadd.f32 %v3236_v39, %v2726_v32  ;;  %v693_v32 = vadd.s32 408, %v3806_v2  ;;  %v2226_v39 = vsel %vm1714_vm14, %v175_v28, 0.0  ;;  %v1206_v41 = vadd.s32 %v3809_v4, %v692_v26  ;;  %v185_v26 = vld [vmem:[%s3801_s12 + $0x1c0] sm:$0xff] }
  0x61   : > { %vm1717_vm1 = vcmp.lt.s32.totalorder %v1205_v35, 4800  ;;  %v2739_v48 = vmul.f32 %v2226_v39, %v2226_v39 }
  0x62   : > { %v3238_v51 = vadd.f32 %v3237_v45, %v2727_v38  ;;  %v694_v38 = vadd.s32 416, %v3806_v2  ;;  %v2227_v45 = vsel %vm1715_vm15, %v176_v34, 0.0  ;;  %v1207_v47 = vadd.s32 %v3809_v4, %v693_v32  ;;  %v186_v32 = vld [vmem:[%s3801_s12 + $0x1c8] sm:$0xff] }
  0x63   : > { %vm1718_vm2 = vcmp.lt.s32.totalorder %v1206_v41, 4800  ;;  %v2740_v54 = vmul.f32 %v2227_v45, %v2227_v45 }
  0x64   : > { %v3239_v57 = vadd.f32 %v3238_v51, %v2728_v44  ;;  %v695_v44 = vadd.s32 424, %v3806_v2  ;;  %v2228_v51 = vsel %vm1716_vm0, %v177_v40, 0.0  ;;  %v1208_v53 = vadd.s32 %v3809_v4, %v694_v38  ;;  %v187_v38 = vld [vmem:[%s3801_s12 + $0x1d0] sm:$0xff] }
  0x65   : > { %vm1719_vm3 = vcmp.lt.s32.totalorder %v1207_v47, 4800  ;;  %v2741_v60 = vmul.f32 %v2228_v51, %v2228_v51 }
  0x66   : > { %v3240_v63 = vadd.f32 %v3239_v57, %v2729_v50  ;;  %v696_v50 = vadd.s32 432, %v3806_v2  ;;  %v2229_v57 = vsel %vm1717_vm1, %v178_v46, 0.0  ;;  %v1209_v59 = vadd.s32 %v3809_v4, %v695_v44  ;;  %v188_v44 = vld [vmem:[%s3801_s12 + $0x1d8] sm:$0xff] }
  0x67   : > { %vm1720_vm4 = vcmp.lt.s32.totalorder %v1208_v53, 4800  ;;  %v2742_v3 = vmul.f32 %v2229_v57, %v2229_v57 }
  0x68   : > { %v3241_v7 = vadd.f32 %v3240_v63, %v2730_v56  ;;  %v697_v56 = vadd.s32 440, %v3806_v2  ;;  %v2230_v63 = vsel %vm1718_vm2, %v179_v52, 0.0  ;;  %v1210_v1 = vadd.s32 %v3809_v4, %v696_v50  ;;  %v189_v50 = vld [vmem:[%s3801_s12 + $0x1e0] sm:$0xff] }
  0x69   : > { %vm1721_vm5 = vcmp.lt.s32.totalorder %v1209_v59, 4800  ;;  %v2743_v10 = vmul.f32 %v2230_v63, %v2230_v63 }
  0x6a   : > { %v3242_v13 = vadd.f32 %v3241_v7, %v2731_v62  ;;  %v698_v62 = vadd.s32 448, %v3806_v2  ;;  %v2231_v7 = vsel %vm1719_vm3, %v180_v58, 0.0  ;;  %v1211_v9 = vadd.s32 %v3809_v4, %v697_v56  ;;  %v190_v56 = vld [vmem:[%s3801_s12 + $0x1e8] sm:$0xff] }
  0x6b   : > { %vm1722_vm6 = vcmp.lt.s32.totalorder %v1210_v1, 4800  ;;  %v2744_v16 = vmul.f32 %v2231_v7, %v2231_v7 }
  0x6c   : > { %v3243_v19 = vadd.f32 %v3242_v13, %v2732_v6  ;;  %v699_v6 = vadd.s32 456, %v3806_v2  ;;  %v2232_v13 = vsel %vm1720_vm4, %v181_v0, 0.0  ;;  %v1212_v15 = vadd.s32 %v3809_v4, %v698_v62  ;;  %v191_v62 = vld [vmem:[%s3801_s12 + $0x1f0] sm:$0xff] }
  0x6d   : > { %vm1723_vm7 = vcmp.lt.s32.totalorder %v1211_v9, 4800  ;;  %v2745_v22 = vmul.f32 %v2232_v13, %v2232_v13 }
  0x6e   : > { %v3244_v25 = vadd.f32 %v3243_v19, %v2733_v12  ;;  %v700_v12 = vadd.s32 464, %v3806_v2  ;;  %v2233_v19 = vsel %vm1721_vm5, %v182_v8, 0.0  ;;  %v1213_v21 = vadd.s32 %v3809_v4, %v699_v6  ;;  %v192_v6 = vld [vmem:[%s3801_s12 + $0x1f8] sm:$0xff] }
  0x6f   : > { %vm1724_vm8 = vcmp.lt.s32.totalorder %v1212_v15, 4800  ;;  %v2746_v28 = vmul.f32 %v2233_v19, %v2233_v19 }
  0x70   : > { %v3245_v31 = vadd.f32 %v3244_v25, %v2734_v18  ;;  %v701_v18 = vadd.s32 472, %v3806_v2  ;;  %v2234_v25 = vsel %vm1722_vm6, %v183_v14, 0.0  ;;  %v1214_v27 = vadd.s32 %v3809_v4, %v700_v12  ;;  %v193_v12 = vld [vmem:[%s3801_s12 + $0x200] sm:$0xff] }
  0x71   : > { %vm1725_vm9 = vcmp.lt.s32.totalorder %v1213_v21, 4800  ;;  %v2747_v34 = vmul.f32 %v2234_v25, %v2234_v25 }
  0x72   : > { %v3246_v37 = vadd.f32 %v3245_v31, %v2735_v24  ;;  %v702_v24 = vadd.s32 480, %v3806_v2  ;;  %v2235_v31 = vsel %vm1723_vm7, %v184_v20, 0.0  ;;  %v1215_v33 = vadd.s32 %v3809_v4, %v701_v18  ;;  %v194_v18 = vld [vmem:[%s3801_s12 + $0x208] sm:$0xff] }
  0x73   : > { %vm1726_vm10 = vcmp.lt.s32.totalorder %v1214_v27, 4800  ;;  %v2748_v40 = vmul.f32 %v2235_v31, %v2235_v31 }
  0x74   : > { %v3247_v43 = vadd.f32 %v3246_v37, %v2736_v30  ;;  %v703_v30 = vadd.s32 488, %v3806_v2  ;;  %v2236_v37 = vsel %vm1724_vm8, %v185_v26, 0.0  ;;  %v1216_v39 = vadd.s32 %v3809_v4, %v702_v24  ;;  %v195_v24 = vld [vmem:[%s3801_s12 + $0x210] sm:$0xff] }
  0x75   : > { %vm1727_vm11 = vcmp.lt.s32.totalorder %v1215_v33, 4800  ;;  %v2749_v46 = vmul.f32 %v2236_v37, %v2236_v37 }
  0x76   : > { %v3248_v49 = vadd.f32 %v3247_v43, %v2737_v36  ;;  %v704_v36 = vadd.s32 496, %v3806_v2  ;;  %v2237_v43 = vsel %vm1725_vm9, %v186_v32, 0.0  ;;  %v1217_v45 = vadd.s32 %v3809_v4, %v703_v30  ;;  %v196_v30 = vld [vmem:[%s3801_s12 + $0x218] sm:$0xff] }
  0x77   : > { %vm1728_vm12 = vcmp.lt.s32.totalorder %v1216_v39, 4800  ;;  %v2750_v52 = vmul.f32 %v2237_v43, %v2237_v43 }
  0x78   : > { %v3249_v55 = vadd.f32 %v3248_v49, %v2738_v42  ;;  %v705_v42 = vadd.s32 504, %v3806_v2  ;;  %v2238_v49 = vsel %vm1726_vm10, %v187_v38, 0.0  ;;  %v1218_v51 = vadd.s32 %v3809_v4, %v704_v36  ;;  %v197_v36 = vld [vmem:[%s3801_s12 + $0x220] sm:$0xff] }
  0x79   : > { %vm1729_vm13 = vcmp.lt.s32.totalorder %v1217_v45, 4800  ;;  %v2751_v58 = vmul.f32 %v2238_v49, %v2238_v49 }
  0x7a   : > { %v3250_v61 = vadd.f32 %v3249_v55, %v2739_v48  ;;  %v706_v48 = vadd.s32 512, %v3806_v2  ;;  %v2239_v55 = vsel %vm1727_vm11, %v188_v44, 0.0  ;;  %v1219_v57 = vadd.s32 %v3809_v4, %v705_v42  ;;  %v198_v42 = vld [vmem:[%s3801_s12 + $0x228] sm:$0xff] }
  0x7b   : > { %vm1730_vm14 = vcmp.lt.s32.totalorder %v1218_v51, 4800  ;;  %v2752_v0 = vmul.f32 %v2239_v55, %v2239_v55 }
  0x7c   : > { %v3251_v5 = vadd.f32 %v3250_v61, %v2740_v54  ;;  %v707_v54 = vadd.s32 520, %v3806_v2  ;;  %v2240_v61 = vsel %vm1728_vm12, %v189_v50, 0.0  ;;  %v1220_v63 = vadd.s32 %v3809_v4, %v706_v48  ;;  %v199_v48 = vld [vmem:[%s3801_s12 + $0x230] sm:$0xff] }
  0x7d   : > { %vm1731_vm15 = vcmp.lt.s32.totalorder %v1219_v57, 4800  ;;  %v2753_v8 = vmul.f32 %v2240_v61, %v2240_v61 }
  0x7e   : > { %v3252_v11 = vadd.f32 %v3251_v5, %v2741_v60  ;;  %v708_v60 = vadd.s32 528, %v3806_v2  ;;  %v2241_v5 = vsel %vm1729_vm13, %v190_v56, 0.0  ;;  %v1221_v7 = vadd.s32 %v3809_v4, %v707_v54  ;;  %v200_v54 = vld [vmem:[%s3801_s12 + $0x238] sm:$0xff] }
  0x7f   : > { %vm1732_vm0 = vcmp.lt.s32.totalorder %v1220_v63, 4800  ;;  %v2754_v14 = vmul.f32 %v2241_v5, %v2241_v5 }
  0x80   : > { %v3253_v17 = vadd.f32 %v3252_v11, %v2742_v3  ;;  %v709_v3 = vadd.s32 536, %v3806_v2  ;;  %v2242_v11 = vsel %vm1730_vm14, %v191_v62, 0.0  ;;  %v1222_v13 = vadd.s32 %v3809_v4, %v708_v60  ;;  %v201_v60 = vld [vmem:[%s3801_s12 + $0x240] sm:$0xff] }
  0x81   : > { %vm1733_vm1 = vcmp.lt.s32.totalorder %v1221_v7, 4800  ;;  %v2755_v20 = vmul.f32 %v2242_v11, %v2242_v11 }
  0x82   : > { %v3254_v23 = vadd.f32 %v3253_v17, %v2743_v10  ;;  %v710_v10 = vadd.s32 544, %v3806_v2  ;;  %v2243_v17 = vsel %vm1731_vm15, %v192_v6, 0.0  ;;  %v1223_v19 = vadd.s32 %v3809_v4, %v709_v3  ;;  %v202_v3 = vld [vmem:[%s3801_s12 + $0x248] sm:$0xff] }
  0x83   : > { %vm1734_vm2 = vcmp.lt.s32.totalorder %v1222_v13, 4800  ;;  %v2756_v26 = vmul.f32 %v2243_v17, %v2243_v17 }
  0x84   : > { %v3255_v29 = vadd.f32 %v3254_v23, %v2744_v16  ;;  %v711_v16 = vadd.s32 552, %v3806_v2  ;;  %v2244_v23 = vsel %vm1732_vm0, %v193_v12, 0.0  ;;  %v1224_v25 = vadd.s32 %v3809_v4, %v710_v10  ;;  %v203_v10 = vld [vmem:[%s3801_s12 + $0x250] sm:$0xff] }
  0x85   : > { %vm1735_vm3 = vcmp.lt.s32.totalorder %v1223_v19, 4800  ;;  %v2757_v32 = vmul.f32 %v2244_v23, %v2244_v23 }
  0x86   : > { %v3256_v35 = vadd.f32 %v3255_v29, %v2745_v22  ;;  %v712_v22 = vadd.s32 560, %v3806_v2  ;;  %v2245_v29 = vsel %vm1733_vm1, %v194_v18, 0.0  ;;  %v1225_v31 = vadd.s32 %v3809_v4, %v711_v16  ;;  %v204_v16 = vld [vmem:[%s3801_s12 + $0x258] sm:$0xff] }
  0x87   : > { %vm1736_vm4 = vcmp.lt.s32.totalorder %v1224_v25, 4800  ;;  %v2758_v38 = vmul.f32 %v2245_v29, %v2245_v29 }
  0x88   : > { %v3257_v41 = vadd.f32 %v3256_v35, %v2746_v28  ;;  %v713_v28 = vadd.s32 568, %v3806_v2  ;;  %v2246_v35 = vsel %vm1734_vm2, %v195_v24, 0.0  ;;  %v1226_v37 = vadd.s32 %v3809_v4, %v712_v22  ;;  %v205_v22 = vld [vmem:[%s3801_s12 + $0x260] sm:$0xff] }
  0x89   : > { %vm1737_vm5 = vcmp.lt.s32.totalorder %v1225_v31, 4800  ;;  %v2759_v44 = vmul.f32 %v2246_v35, %v2246_v35 }
  0x8a   : > { %v3258_v47 = vadd.f32 %v3257_v41, %v2747_v34  ;;  %v714_v34 = vadd.s32 576, %v3806_v2  ;;  %v2247_v41 = vsel %vm1735_vm3, %v196_v30, 0.0  ;;  %v1227_v43 = vadd.s32 %v3809_v4, %v713_v28  ;;  %v206_v28 = vld [vmem:[%s3801_s12 + $0x268] sm:$0xff] }
  0x8b   : > { %vm1738_vm6 = vcmp.lt.s32.totalorder %v1226_v37, 4800  ;;  %v2760_v50 = vmul.f32 %v2247_v41, %v2247_v41 }
  0x8c   : > { %v3259_v53 = vadd.f32 %v3258_v47, %v2748_v40  ;;  %v715_v40 = vadd.s32 584, %v3806_v2  ;;  %v2248_v47 = vsel %vm1736_vm4, %v197_v36, 0.0  ;;  %v1228_v49 = vadd.s32 %v3809_v4, %v714_v34  ;;  %v207_v34 = vld [vmem:[%s3801_s12 + $0x270] sm:$0xff] }
  0x8d   : > { %vm1739_vm7 = vcmp.lt.s32.totalorder %v1227_v43, 4800  ;;  %v2761_v56 = vmul.f32 %v2248_v47, %v2248_v47 }
  0x8e   : > { %v3260_v59 = vadd.f32 %v3259_v53, %v2749_v46  ;;  %v716_v46 = vadd.s32 592, %v3806_v2  ;;  %v2249_v53 = vsel %vm1737_vm5, %v198_v42, 0.0  ;;  %v1229_v55 = vadd.s32 %v3809_v4, %v715_v40  ;;  %v208_v40 = vld [vmem:[%s3801_s12 + $0x278] sm:$0xff] }
  0x8f   : > { %vm1740_vm8 = vcmp.lt.s32.totalorder %v1228_v49, 4800  ;;  %v2762_v62 = vmul.f32 %v2249_v53, %v2249_v53 }
  0x90   : > { %v3261_v1 = vadd.f32 %v3260_v59, %v2750_v52  ;;  %v717_v52 = vadd.s32 600, %v3806_v2  ;;  %v2250_v59 = vsel %vm1738_vm6, %v199_v48, 0.0  ;;  %v1230_v61 = vadd.s32 %v3809_v4, %v716_v46  ;;  %v209_v46 = vld [vmem:[%s3801_s12 + $0x280] sm:$0xff] }
  0x91   : > { %vm1741_vm9 = vcmp.lt.s32.totalorder %v1229_v55, 4800  ;;  %v2763_v6 = vmul.f32 %v2250_v59, %v2250_v59 }
  0x92   : > { %v3262_v9 = vadd.f32 %v3261_v1, %v2751_v58  ;;  %v718_v58 = vadd.s32 608, %v3806_v2  ;;  %v2251_v1 = vsel %vm1739_vm7, %v200_v54, 0.0  ;;  %v1231_v5 = vadd.s32 %v3809_v4, %v717_v52  ;;  %v210_v52 = vld [vmem:[%s3801_s12 + $0x288] sm:$0xff] }
  0x93   : > { %vm1742_vm10 = vcmp.lt.s32.totalorder %v1230_v61, 4800  ;;  %v2764_v12 = vmul.f32 %v2251_v1, %v2251_v1 }
  0x94   : > { %v3263_v15 = vadd.f32 %v3262_v9, %v2752_v0  ;;  %v719_v0 = vadd.s32 616, %v3806_v2  ;;  %v2252_v9 = vsel %vm1740_vm8, %v201_v60, 0.0  ;;  %v1232_v11 = vadd.s32 %v3809_v4, %v718_v58  ;;  %v211_v58 = vld [vmem:[%s3801_s12 + $0x290] sm:$0xff] }
  0x95   : > { %vm1743_vm11 = vcmp.lt.s32.totalorder %v1231_v5, 4800  ;;  %v2765_v18 = vmul.f32 %v2252_v9, %v2252_v9 }
  0x96   : > { %v3264_v21 = vadd.f32 %v3263_v15, %v2753_v8  ;;  %v720_v8 = vadd.s32 624, %v3806_v2  ;;  %v2253_v15 = vsel %vm1741_vm9, %v202_v3, 0.0  ;;  %v1233_v17 = vadd.s32 %v3809_v4, %v719_v0  ;;  %v212_v0 = vld [vmem:[%s3801_s12 + $0x298] sm:$0xff] }
  0x97   : > { %vm1744_vm12 = vcmp.lt.s32.totalorder %v1232_v11, 4800  ;;  %v2766_v24 = vmul.f32 %v2253_v15, %v2253_v15 }
  0x98   : > { %v3265_v27 = vadd.f32 %v3264_v21, %v2754_v14  ;;  %v721_v14 = vadd.s32 632, %v3806_v2  ;;  %v2254_v21 = vsel %vm1742_vm10, %v203_v10, 0.0  ;;  %v1234_v23 = vadd.s32 %v3809_v4, %v720_v8  ;;  %v213_v8 = vld [vmem:[%s3801_s12 + $0x2a0] sm:$0xff] }
  0x99   : > { %vm1745_vm13 = vcmp.lt.s32.totalorder %v1233_v17, 4800  ;;  %v2767_v30 = vmul.f32 %v2254_v21, %v2254_v21 }
  0x9a   : > { %v3266_v33 = vadd.f32 %v3265_v27, %v2755_v20  ;;  %v722_v20 = vadd.s32 640, %v3806_v2  ;;  %v2255_v27 = vsel %vm1743_vm11, %v204_v16, 0.0  ;;  %v1235_v29 = vadd.s32 %v3809_v4, %v721_v14  ;;  %v214_v14 = vld [vmem:[%s3801_s12 + $0x2a8] sm:$0xff] }
  0x9b   : > { %vm1746_vm14 = vcmp.lt.s32.totalorder %v1234_v23, 4800  ;;  %v2768_v36 = vmul.f32 %v2255_v27, %v2255_v27 }
  0x9c   : > { %v3267_v39 = vadd.f32 %v3266_v33, %v2756_v26  ;;  %v723_v26 = vadd.s32 648, %v3806_v2  ;;  %v2256_v33 = vsel %vm1744_vm12, %v205_v22, 0.0  ;;  %v1236_v35 = vadd.s32 %v3809_v4, %v722_v20  ;;  %v215_v20 = vld [vmem:[%s3801_s12 + $0x2b0] sm:$0xff] }
  0x9d   : > { %vm1747_vm15 = vcmp.lt.s32.totalorder %v1235_v29, 4800  ;;  %v2769_v42 = vmul.f32 %v2256_v33, %v2256_v33 }
  0x9e   : > { %v3268_v45 = vadd.f32 %v3267_v39, %v2757_v32  ;;  %v724_v32 = vadd.s32 656, %v3806_v2  ;;  %v2257_v39 = vsel %vm1745_vm13, %v206_v28, 0.0  ;;  %v1237_v41 = vadd.s32 %v3809_v4, %v723_v26  ;;  %v216_v26 = vld [vmem:[%s3801_s12 + $0x2b8] sm:$0xff] }
  0x9f   : > { %vm1748_vm0 = vcmp.lt.s32.totalorder %v1236_v35, 4800  ;;  %v2770_v48 = vmul.f32 %v2257_v39, %v2257_v39 }
  0xa0   : > { %v3269_v51 = vadd.f32 %v3268_v45, %v2758_v38  ;;  %v725_v38 = vadd.s32 664, %v3806_v2  ;;  %v2258_v45 = vsel %vm1746_vm14, %v207_v34, 0.0  ;;  %v1238_v47 = vadd.s32 %v3809_v4, %v724_v32  ;;  %v217_v32 = vld [vmem:[%s3801_s12 + $0x2c0] sm:$0xff] }
  0xa1   : > { %vm1749_vm1 = vcmp.lt.s32.totalorder %v1237_v41, 4800  ;;  %v2771_v54 = vmul.f32 %v2258_v45, %v2258_v45 }
  0xa2   : > { %v3270_v57 = vadd.f32 %v3269_v51, %v2759_v44  ;;  %v726_v44 = vadd.s32 672, %v3806_v2  ;;  %v2259_v51 = vsel %vm1747_vm15, %v208_v40, 0.0  ;;  %v1239_v53 = vadd.s32 %v3809_v4, %v725_v38  ;;  %v218_v38 = vld [vmem:[%s3801_s12 + $0x2c8] sm:$0xff] }
  0xa3   : > { %vm1750_vm2 = vcmp.lt.s32.totalorder %v1238_v47, 4800  ;;  %v2772_v60 = vmul.f32 %v2259_v51, %v2259_v51 }
  0xa4   : > { %v3271_v63 = vadd.f32 %v3270_v57, %v2760_v50  ;;  %v727_v50 = vadd.s32 680, %v3806_v2  ;;  %v2260_v57 = vsel %vm1748_vm0, %v209_v46, 0.0  ;;  %v1240_v59 = vadd.s32 %v3809_v4, %v726_v44  ;;  %v219_v44 = vld [vmem:[%s3801_s12 + $0x2d0] sm:$0xff] }
  0xa5   : > { %vm1751_vm3 = vcmp.lt.s32.totalorder %v1239_v53, 4800  ;;  %v2773_v3 = vmul.f32 %v2260_v57, %v2260_v57 }
  0xa6   : > { %v3272_v7 = vadd.f32 %v3271_v63, %v2761_v56  ;;  %v728_v56 = vadd.s32 688, %v3806_v2  ;;  %v2261_v63 = vsel %vm1749_vm1, %v210_v52, 0.0  ;;  %v1241_v1 = vadd.s32 %v3809_v4, %v727_v50  ;;  %v220_v50 = vld [vmem:[%s3801_s12 + $0x2d8] sm:$0xff] }
  0xa7   : > { %vm1752_vm4 = vcmp.lt.s32.totalorder %v1240_v59, 4800  ;;  %v2774_v10 = vmul.f32 %v2261_v63, %v2261_v63 }
  0xa8   : > { %v3273_v13 = vadd.f32 %v3272_v7, %v2762_v62  ;;  %v729_v62 = vadd.s32 696, %v3806_v2  ;;  %v2262_v7 = vsel %vm1750_vm2, %v211_v58, 0.0  ;;  %v1242_v9 = vadd.s32 %v3809_v4, %v728_v56  ;;  %v221_v56 = vld [vmem:[%s3801_s12 + $0x2e0] sm:$0xff] }
  0xa9   : > { %vm1753_vm5 = vcmp.lt.s32.totalorder %v1241_v1, 4800  ;;  %v2775_v16 = vmul.f32 %v2262_v7, %v2262_v7 }
  0xaa   : > { %v3274_v19 = vadd.f32 %v3273_v13, %v2763_v6  ;;  %v730_v6 = vadd.s32 704, %v3806_v2  ;;  %v2263_v13 = vsel %vm1751_vm3, %v212_v0, 0.0  ;;  %v1243_v15 = vadd.s32 %v3809_v4, %v729_v62  ;;  %v222_v62 = vld [vmem:[%s3801_s12 + $0x2e8] sm:$0xff] }
  0xab   : > { %vm1754_vm6 = vcmp.lt.s32.totalorder %v1242_v9, 4800  ;;  %v2776_v22 = vmul.f32 %v2263_v13, %v2263_v13 }
  0xac   : > { %v3275_v25 = vadd.f32 %v3274_v19, %v2764_v12  ;;  %v731_v12 = vadd.s32 712, %v3806_v2  ;;  %v2264_v19 = vsel %vm1752_vm4, %v213_v8, 0.0  ;;  %v1244_v21 = vadd.s32 %v3809_v4, %v730_v6  ;;  %v223_v6 = vld [vmem:[%s3801_s12 + $0x2f0] sm:$0xff] }
  0xad   : > { %vm1755_vm7 = vcmp.lt.s32.totalorder %v1243_v15, 4800  ;;  %v2777_v28 = vmul.f32 %v2264_v19, %v2264_v19 }
  0xae   : > { %v3276_v31 = vadd.f32 %v3275_v25, %v2765_v18  ;;  %v732_v18 = vadd.s32 720, %v3806_v2  ;;  %v2265_v25 = vsel %vm1753_vm5, %v214_v14, 0.0  ;;  %v1245_v27 = vadd.s32 %v3809_v4, %v731_v12  ;;  %v224_v12 = vld [vmem:[%s3801_s12 + $0x2f8] sm:$0xff] }
  0xaf   : > { %vm1756_vm8 = vcmp.lt.s32.totalorder %v1244_v21, 4800  ;;  %v2778_v34 = vmul.f32 %v2265_v25, %v2265_v25 }
  0xb0   : > { %v3277_v37 = vadd.f32 %v3276_v31, %v2766_v24  ;;  %v733_v24 = vadd.s32 728, %v3806_v2  ;;  %v2266_v31 = vsel %vm1754_vm6, %v215_v20, 0.0  ;;  %v1246_v33 = vadd.s32 %v3809_v4, %v732_v18  ;;  %v225_v18 = vld [vmem:[%s3801_s12 + $0x300] sm:$0xff] }
  0xb1   : > { %vm1757_vm9 = vcmp.lt.s32.totalorder %v1245_v27, 4800  ;;  %v2779_v40 = vmul.f32 %v2266_v31, %v2266_v31 }
  0xb2   : > { %v3278_v43 = vadd.f32 %v3277_v37, %v2767_v30  ;;  %v734_v30 = vadd.s32 736, %v3806_v2  ;;  %v2267_v37 = vsel %vm1755_vm7, %v216_v26, 0.0  ;;  %v1247_v39 = vadd.s32 %v3809_v4, %v733_v24  ;;  %v226_v24 = vld [vmem:[%s3801_s12 + $0x308] sm:$0xff] }
  0xb3   : > { %vm1758_vm10 = vcmp.lt.s32.totalorder %v1246_v33, 4800  ;;  %v2780_v46 = vmul.f32 %v2267_v37, %v2267_v37 }
  0xb4   : > { %v3279_v49 = vadd.f32 %v3278_v43, %v2768_v36  ;;  %v735_v36 = vadd.s32 744, %v3806_v2  ;;  %v2268_v43 = vsel %vm1756_vm8, %v217_v32, 0.0  ;;  %v1248_v45 = vadd.s32 %v3809_v4, %v734_v30  ;;  %v227_v30 = vld [vmem:[%s3801_s12 + $0x310] sm:$0xff] }
  0xb5   : > { %vm1759_vm11 = vcmp.lt.s32.totalorder %v1247_v39, 4800  ;;  %v2781_v52 = vmul.f32 %v2268_v43, %v2268_v43 }
  0xb6   : > { %v3280_v55 = vadd.f32 %v3279_v49, %v2769_v42  ;;  %v736_v42 = vadd.s32 752, %v3806_v2  ;;  %v2269_v49 = vsel %vm1757_vm9, %v218_v38, 0.0  ;;  %v1249_v51 = vadd.s32 %v3809_v4, %v735_v36  ;;  %v228_v36 = vld [vmem:[%s3801_s12 + $0x318] sm:$0xff] }
  0xb7   : > { %vm1760_vm12 = vcmp.lt.s32.totalorder %v1248_v45, 4800  ;;  %v2782_v58 = vmul.f32 %v2269_v49, %v2269_v49 }
  0xb8   : > { %v3281_v61 = vadd.f32 %v3280_v55, %v2770_v48  ;;  %v737_v48 = vadd.s32 760, %v3806_v2  ;;  %v2270_v55 = vsel %vm1758_vm10, %v219_v44, 0.0  ;;  %v1250_v57 = vadd.s32 %v3809_v4, %v736_v42  ;;  %v229_v42 = vld [vmem:[%s3801_s12 + $0x320] sm:$0xff] }
  0xb9   : > { %vm1761_vm13 = vcmp.lt.s32.totalorder %v1249_v51, 4800  ;;  %v2783_v0 = vmul.f32 %v2270_v55, %v2270_v55 }
  0xba   : > { %v3282_v5 = vadd.f32 %v3281_v61, %v2771_v54  ;;  %v738_v54 = vadd.s32 768, %v3806_v2  ;;  %v2271_v61 = vsel %vm1759_vm11, %v220_v50, 0.0  ;;  %v1251_v63 = vadd.s32 %v3809_v4, %v737_v48  ;;  %v230_v48 = vld [vmem:[%s3801_s12 + $0x328] sm:$0xff] }
  0xbb   : > { %vm1762_vm14 = vcmp.lt.s32.totalorder %v1250_v57, 4800  ;;  %v2784_v8 = vmul.f32 %v2271_v61, %v2271_v61 }
  0xbc   : > { %v3283_v11 = vadd.f32 %v3282_v5, %v2772_v60  ;;  %v739_v60 = vadd.s32 776, %v3806_v2  ;;  %v2272_v5 = vsel %vm1760_vm12, %v221_v56, 0.0  ;;  %v1252_v7 = vadd.s32 %v3809_v4, %v738_v54  ;;  %v231_v54 = vld [vmem:[%s3801_s12 + $0x330] sm:$0xff] }
  0xbd   : > { %vm1763_vm15 = vcmp.lt.s32.totalorder %v1251_v63, 4800  ;;  %v2785_v14 = vmul.f32 %v2272_v5, %v2272_v5 }
  0xbe   : > { %v3284_v17 = vadd.f32 %v3283_v11, %v2773_v3  ;;  %v740_v3 = vadd.s32 784, %v3806_v2  ;;  %v2273_v11 = vsel %vm1761_vm13, %v222_v62, 0.0  ;;  %v1253_v13 = vadd.s32 %v3809_v4, %v739_v60  ;;  %v232_v60 = vld [vmem:[%s3801_s12 + $0x338] sm:$0xff] }
  0xbf   : > { %vm1764_vm0 = vcmp.lt.s32.totalorder %v1252_v7, 4800  ;;  %v2786_v20 = vmul.f32 %v2273_v11, %v2273_v11 }
  0xc0   : > { %v3285_v23 = vadd.f32 %v3284_v17, %v2774_v10  ;;  %v741_v10 = vadd.s32 792, %v3806_v2  ;;  %v2274_v17 = vsel %vm1762_vm14, %v223_v6, 0.0  ;;  %v1254_v19 = vadd.s32 %v3809_v4, %v740_v3  ;;  %v233_v3 = vld [vmem:[%s3801_s12 + $0x340] sm:$0xff] }
  0xc1   : > { %vm1765_vm1 = vcmp.lt.s32.totalorder %v1253_v13, 4800  ;;  %v2787_v26 = vmul.f32 %v2274_v17, %v2274_v17 }
  0xc2   : > { %v3286_v29 = vadd.f32 %v3285_v23, %v2775_v16  ;;  %v742_v16 = vadd.s32 800, %v3806_v2  ;;  %v2275_v23 = vsel %vm1763_vm15, %v224_v12, 0.0  ;;  %v1255_v25 = vadd.s32 %v3809_v4, %v741_v10  ;;  %v234_v10 = vld [vmem:[%s3801_s12 + $0x348] sm:$0xff] }
  0xc3   : > { %vm1766_vm2 = vcmp.lt.s32.totalorder %v1254_v19, 4800  ;;  %v2788_v32 = vmul.f32 %v2275_v23, %v2275_v23 }
  0xc4   : > { %v3287_v35 = vadd.f32 %v3286_v29, %v2776_v22  ;;  %v743_v22 = vadd.s32 808, %v3806_v2  ;;  %v2276_v29 = vsel %vm1764_vm0, %v225_v18, 0.0  ;;  %v1256_v31 = vadd.s32 %v3809_v4, %v742_v16  ;;  %v235_v16 = vld [vmem:[%s3801_s12 + $0x350] sm:$0xff] }
  0xc5   : > { %vm1767_vm3 = vcmp.lt.s32.totalorder %v1255_v25, 4800  ;;  %v2789_v38 = vmul.f32 %v2276_v29, %v2276_v29 }
  0xc6   : > { %v3288_v41 = vadd.f32 %v3287_v35, %v2777_v28  ;;  %v744_v28 = vadd.s32 816, %v3806_v2  ;;  %v2277_v35 = vsel %vm1765_vm1, %v226_v24, 0.0  ;;  %v1257_v37 = vadd.s32 %v3809_v4, %v743_v22  ;;  %v236_v22 = vld [vmem:[%s3801_s12 + $0x358] sm:$0xff] }
  0xc7   : > { %vm1768_vm4 = vcmp.lt.s32.totalorder %v1256_v31, 4800  ;;  %v2790_v44 = vmul.f32 %v2277_v35, %v2277_v35 }
  0xc8   : > { %v3289_v47 = vadd.f32 %v3288_v41, %v2778_v34  ;;  %v745_v34 = vadd.s32 824, %v3806_v2  ;;  %v2278_v41 = vsel %vm1766_vm2, %v227_v30, 0.0  ;;  %v1258_v43 = vadd.s32 %v3809_v4, %v744_v28  ;;  %v237_v28 = vld [vmem:[%s3801_s12 + $0x360] sm:$0xff] }
  0xc9   : > { %vm1769_vm5 = vcmp.lt.s32.totalorder %v1257_v37, 4800  ;;  %v2791_v50 = vmul.f32 %v2278_v41, %v2278_v41 }
  0xca   : > { %v3290_v53 = vadd.f32 %v3289_v47, %v2779_v40  ;;  %v746_v40 = vadd.s32 832, %v3806_v2  ;;  %v2279_v47 = vsel %vm1767_vm3, %v228_v36, 0.0  ;;  %v1259_v49 = vadd.s32 %v3809_v4, %v745_v34  ;;  %v238_v34 = vld [vmem:[%s3801_s12 + $0x368] sm:$0xff] }
  0xcb   : > { %vm1770_vm6 = vcmp.lt.s32.totalorder %v1258_v43, 4800  ;;  %v2792_v56 = vmul.f32 %v2279_v47, %v2279_v47 }
  0xcc   : > { %v3291_v59 = vadd.f32 %v3290_v53, %v2780_v46  ;;  %v747_v46 = vadd.s32 840, %v3806_v2  ;;  %v2280_v53 = vsel %vm1768_vm4, %v229_v42, 0.0  ;;  %v1260_v55 = vadd.s32 %v3809_v4, %v746_v40  ;;  %v239_v40 = vld [vmem:[%s3801_s12 + $0x370] sm:$0xff] }
  0xcd   : > { %vm1771_vm7 = vcmp.lt.s32.totalorder %v1259_v49, 4800  ;;  %v2793_v62 = vmul.f32 %v2280_v53, %v2280_v53 }
  0xce   : > { %v3292_v1 = vadd.f32 %v3291_v59, %v2781_v52  ;;  %v748_v52 = vadd.s32 848, %v3806_v2  ;;  %v2281_v59 = vsel %vm1769_vm5, %v230_v48, 0.0  ;;  %v1261_v61 = vadd.s32 %v3809_v4, %v747_v46  ;;  %v240_v46 = vld [vmem:[%s3801_s12 + $0x378] sm:$0xff] }
  0xcf   : > { %vm1772_vm8 = vcmp.lt.s32.totalorder %v1260_v55, 4800  ;;  %v2794_v6 = vmul.f32 %v2281_v59, %v2281_v59 }
  0xd0   : > { %v3293_v9 = vadd.f32 %v3292_v1, %v2782_v58  ;;  %v749_v58 = vadd.s32 856, %v3806_v2  ;;  %v2282_v1 = vsel %vm1770_vm6, %v231_v54, 0.0  ;;  %v1262_v5 = vadd.s32 %v3809_v4, %v748_v52  ;;  %v241_v52 = vld [vmem:[%s3801_s12 + $0x380] sm:$0xff] }
  0xd1   : > { %vm1773_vm9 = vcmp.lt.s32.totalorder %v1261_v61, 4800  ;;  %v2795_v12 = vmul.f32 %v2282_v1, %v2282_v1 }
  0xd2   : > { %v3294_v15 = vadd.f32 %v3293_v9, %v2783_v0  ;;  %v750_v0 = vadd.s32 864, %v3806_v2  ;;  %v2283_v9 = vsel %vm1771_vm7, %v232_v60, 0.0  ;;  %v1263_v11 = vadd.s32 %v3809_v4, %v749_v58  ;;  %v242_v58 = vld [vmem:[%s3801_s12 + $0x388] sm:$0xff] }
  0xd3   : > { %vm1774_vm10 = vcmp.lt.s32.totalorder %v1262_v5, 4800  ;;  %v2796_v18 = vmul.f32 %v2283_v9, %v2283_v9 }
  0xd4   : > { %v3295_v21 = vadd.f32 %v3294_v15, %v2784_v8  ;;  %v751_v8 = vadd.s32 872, %v3806_v2  ;;  %v2284_v15 = vsel %vm1772_vm8, %v233_v3, 0.0  ;;  %v1264_v17 = vadd.s32 %v3809_v4, %v750_v0  ;;  %v243_v0 = vld [vmem:[%s3801_s12 + $0x390] sm:$0xff] }
  0xd5   : > { %vm1775_vm11 = vcmp.lt.s32.totalorder %v1263_v11, 4800  ;;  %v2797_v24 = vmul.f32 %v2284_v15, %v2284_v15 }
  0xd6   : > { %v3296_v27 = vadd.f32 %v3295_v21, %v2785_v14  ;;  %v752_v14 = vadd.s32 880, %v3806_v2  ;;  %v2285_v21 = vsel %vm1773_vm9, %v234_v10, 0.0  ;;  %v1265_v23 = vadd.s32 %v3809_v4, %v751_v8  ;;  %v244_v8 = vld [vmem:[%s3801_s12 + $0x398] sm:$0xff] }
  0xd7   : > { %vm1776_vm12 = vcmp.lt.s32.totalorder %v1264_v17, 4800  ;;  %v2798_v30 = vmul.f32 %v2285_v21, %v2285_v21 }
  0xd8   : > { %v3297_v33 = vadd.f32 %v3296_v27, %v2786_v20  ;;  %v753_v20 = vadd.s32 888, %v3806_v2  ;;  %v2286_v27 = vsel %vm1774_vm10, %v235_v16, 0.0  ;;  %v1266_v29 = vadd.s32 %v3809_v4, %v752_v14  ;;  %v245_v14 = vld [vmem:[%s3801_s12 + $0x3a0] sm:$0xff] }
  0xd9   : > { %vm1777_vm13 = vcmp.lt.s32.totalorder %v1265_v23, 4800  ;;  %v2799_v36 = vmul.f32 %v2286_v27, %v2286_v27 }
  0xda   : > { %v3298_v39 = vadd.f32 %v3297_v33, %v2787_v26  ;;  %v754_v26 = vadd.s32 896, %v3806_v2  ;;  %v2287_v33 = vsel %vm1775_vm11, %v236_v22, 0.0  ;;  %v1267_v35 = vadd.s32 %v3809_v4, %v753_v20  ;;  %v246_v20 = vld [vmem:[%s3801_s12 + $0x3a8] sm:$0xff] }
  0xdb   : > { %vm1778_vm14 = vcmp.lt.s32.totalorder %v1266_v29, 4800  ;;  %v2800_v42 = vmul.f32 %v2287_v33, %v2287_v33 }
  0xdc   : > { %v3299_v45 = vadd.f32 %v3298_v39, %v2788_v32  ;;  %v755_v32 = vadd.s32 904, %v3806_v2  ;;  %v2288_v39 = vsel %vm1776_vm12, %v237_v28, 0.0  ;;  %v1268_v41 = vadd.s32 %v3809_v4, %v754_v26  ;;  %v247_v26 = vld [vmem:[%s3801_s12 + $0x3b0] sm:$0xff] }
  0xdd   : > { %vm1779_vm15 = vcmp.lt.s32.totalorder %v1267_v35, 4800  ;;  %v2801_v48 = vmul.f32 %v2288_v39, %v2288_v39 }
  0xde   : > { %v3300_v51 = vadd.f32 %v3299_v45, %v2789_v38  ;;  %v756_v38 = vadd.s32 912, %v3806_v2  ;;  %v2289_v45 = vsel %vm1777_vm13, %v238_v34, 0.0  ;;  %v1269_v47 = vadd.s32 %v3809_v4, %v755_v32  ;;  %v248_v32 = vld [vmem:[%s3801_s12 + $0x3b8] sm:$0xff] }
  0xdf   : > { %vm1780_vm0 = vcmp.lt.s32.totalorder %v1268_v41, 4800  ;;  %v2802_v54 = vmul.f32 %v2289_v45, %v2289_v45 }
  0xe0   : > { %v3301_v57 = vadd.f32 %v3300_v51, %v2790_v44  ;;  %v757_v44 = vadd.s32 920, %v3806_v2  ;;  %v2290_v51 = vsel %vm1778_vm14, %v239_v40, 0.0  ;;  %v1270_v53 = vadd.s32 %v3809_v4, %v756_v38  ;;  %v249_v38 = vld [vmem:[%s3801_s12 + $0x3c0] sm:$0xff] }
  0xe1   : > { %vm1781_vm1 = vcmp.lt.s32.totalorder %v1269_v47, 4800  ;;  %v2803_v60 = vmul.f32 %v2290_v51, %v2290_v51 }
  0xe2   : > { %v3302_v63 = vadd.f32 %v3301_v57, %v2791_v50  ;;  %v758_v50 = vadd.s32 928, %v3806_v2  ;;  %v2291_v57 = vsel %vm1779_vm15, %v240_v46, 0.0  ;;  %v1271_v59 = vadd.s32 %v3809_v4, %v757_v44  ;;  %v250_v44 = vld [vmem:[%s3801_s12 + $0x3c8] sm:$0xff] }
  0xe3   : > { %vm1782_vm2 = vcmp.lt.s32.totalorder %v1270_v53, 4800  ;;  %v2804_v3 = vmul.f32 %v2291_v57, %v2291_v57 }
  0xe4   : > { %v3303_v7 = vadd.f32 %v3302_v63, %v2792_v56  ;;  %v759_v56 = vadd.s32 936, %v3806_v2  ;;  %v2292_v63 = vsel %vm1780_vm0, %v241_v52, 0.0  ;;  %v1272_v1 = vadd.s32 %v3809_v4, %v758_v50  ;;  %v251_v50 = vld [vmem:[%s3801_s12 + $0x3d0] sm:$0xff] }
  0xe5   : > { %vm1783_vm3 = vcmp.lt.s32.totalorder %v1271_v59, 4800  ;;  %v2805_v10 = vmul.f32 %v2292_v63, %v2292_v63 }
  0xe6   : > { %v3304_v13 = vadd.f32 %v3303_v7, %v2793_v62  ;;  %v760_v62 = vadd.s32 944, %v3806_v2  ;;  %v2293_v7 = vsel %vm1781_vm1, %v242_v58, 0.0  ;;  %v1273_v9 = vadd.s32 %v3809_v4, %v759_v56  ;;  %v252_v56 = vld [vmem:[%s3801_s12 + $0x3d8] sm:$0xff] }
  0xe7   : > { %vm1784_vm4 = vcmp.lt.s32.totalorder %v1272_v1, 4800  ;;  %v2806_v16 = vmul.f32 %v2293_v7, %v2293_v7 }
  0xe8   : > { %v3305_v19 = vadd.f32 %v3304_v13, %v2794_v6  ;;  %v761_v6 = vadd.s32 952, %v3806_v2  ;;  %v2294_v13 = vsel %vm1782_vm2, %v243_v0, 0.0  ;;  %v1274_v15 = vadd.s32 %v3809_v4, %v760_v62  ;;  %v253_v62 = vld [vmem:[%s3801_s12 + $0x3e0] sm:$0xff] }
  0xe9   : > { %vm1785_vm5 = vcmp.lt.s32.totalorder %v1273_v9, 4800  ;;  %v2807_v22 = vmul.f32 %v2294_v13, %v2294_v13 }
  0xea   : > { %v3306_v25 = vadd.f32 %v3305_v19, %v2795_v12  ;;  %v762_v12 = vadd.s32 960, %v3806_v2  ;;  %v2295_v19 = vsel %vm1783_vm3, %v244_v8, 0.0  ;;  %v1275_v21 = vadd.s32 %v3809_v4, %v761_v6  ;;  %v254_v6 = vld [vmem:[%s3801_s12 + $0x3e8] sm:$0xff] }
  0xeb   : > { %vm1786_vm6 = vcmp.lt.s32.totalorder %v1274_v15, 4800  ;;  %v2808_v28 = vmul.f32 %v2295_v19, %v2295_v19 }
  0xec   : > { %v3307_v31 = vadd.f32 %v3306_v25, %v2796_v18  ;;  %v763_v18 = vadd.s32 968, %v3806_v2  ;;  %v2296_v25 = vsel %vm1784_vm4, %v245_v14, 0.0  ;;  %v1276_v27 = vadd.s32 %v3809_v4, %v762_v12  ;;  %v255_v12 = vld [vmem:[%s3801_s12 + $0x3f0] sm:$0xff] }
  0xed   : > { %vm1787_vm7 = vcmp.lt.s32.totalorder %v1275_v21, 4800  ;;  %v2809_v34 = vmul.f32 %v2296_v25, %v2296_v25 }
  0xee   : > { %v3308_v37 = vadd.f32 %v3307_v31, %v2797_v24  ;;  %v764_v24 = vadd.s32 976, %v3806_v2  ;;  %v2297_v31 = vsel %vm1785_vm5, %v246_v20, 0.0  ;;  %v1277_v33 = vadd.s32 %v3809_v4, %v763_v18  ;;  %v256_v18 = vld [vmem:[%s3801_s12 + $0x3f8] sm:$0xff] }
  0xef   : > { %vm1788_vm8 = vcmp.lt.s32.totalorder %v1276_v27, 4800  ;;  %v2810_v40 = vmul.f32 %v2297_v31, %v2297_v31 }
  0xf0   : > { %v3309_v43 = vadd.f32 %v3308_v37, %v2798_v30  ;;  %v765_v30 = vadd.s32 984, %v3806_v2  ;;  %v2298_v37 = vsel %vm1786_vm6, %v247_v26, 0.0  ;;  %v1278_v39 = vadd.s32 %v3809_v4, %v764_v24  ;;  %v257_v24 = vld [vmem:[%s3801_s12 + $0x400] sm:$0xff] }
  0xf1   : > { %vm1789_vm9 = vcmp.lt.s32.totalorder %v1277_v33, 4800  ;;  %v2811_v46 = vmul.f32 %v2298_v37, %v2298_v37 }
  0xf2   : > { %v3310_v49 = vadd.f32 %v3309_v43, %v2799_v36  ;;  %v766_v36 = vadd.s32 992, %v3806_v2  ;;  %v2299_v43 = vsel %vm1787_vm7, %v248_v32, 0.0  ;;  %v1279_v45 = vadd.s32 %v3809_v4, %v765_v30  ;;  %v258_v30 = vld [vmem:[%s3801_s12 + $0x408] sm:$0xff] }
  0xf3   : > { %vm1790_vm10 = vcmp.lt.s32.totalorder %v1278_v39, 4800  ;;  %v2812_v52 = vmul.f32 %v2299_v43, %v2299_v43 }
  0xf4   : > { %v3311_v55 = vadd.f32 %v3310_v49, %v2800_v42  ;;  %v767_v42 = vadd.s32 1000, %v3806_v2  ;;  %v2300_v49 = vsel %vm1788_vm8, %v249_v38, 0.0  ;;  %v1280_v51 = vadd.s32 %v3809_v4, %v766_v36  ;;  %v259_v36 = vld [vmem:[%s3801_s12 + $0x410] sm:$0xff] }
  0xf5   : > { %vm1791_vm11 = vcmp.lt.s32.totalorder %v1279_v45, 4800  ;;  %v2813_v58 = vmul.f32 %v2300_v49, %v2300_v49 }
  0xf6   : > { %v3312_v61 = vadd.f32 %v3311_v55, %v2801_v48  ;;  %v768_v48 = vadd.s32 1008, %v3806_v2  ;;  %v2301_v55 = vsel %vm1789_vm9, %v250_v44, 0.0  ;;  %v1281_v57 = vadd.s32 %v3809_v4, %v767_v42  ;;  %v260_v42 = vld [vmem:[%s3801_s12 + $0x418] sm:$0xff] }
  0xf7   : > { %vm1792_vm12 = vcmp.lt.s32.totalorder %v1280_v51, 4800  ;;  %v2814_v0 = vmul.f32 %v2301_v55, %v2301_v55 }
  0xf8   : > { %v3313_v5 = vadd.f32 %v3312_v61, %v2802_v54  ;;  %v769_v54 = vadd.s32 1016, %v3806_v2  ;;  %v2302_v61 = vsel %vm1790_vm10, %v251_v50, 0.0  ;;  %v1282_v63 = vadd.s32 %v3809_v4, %v768_v48  ;;  %v261_v48 = vld [vmem:[%s3801_s12 + $0x420] sm:$0xff] }
  0xf9   : > { %vm1793_vm13 = vcmp.lt.s32.totalorder %v1281_v57, 4800  ;;  %v2815_v8 = vmul.f32 %v2302_v61, %v2302_v61 }
  0xfa   : > { %v3314_v11 = vadd.f32 %v3313_v5, %v2803_v60  ;;  %v770_v60 = vadd.s32 1024, %v3806_v2  ;;  %v2303_v5 = vsel %vm1791_vm11, %v252_v56, 0.0  ;;  %v1283_v7 = vadd.s32 %v3809_v4, %v769_v54  ;;  %v262_v54 = vld [vmem:[%s3801_s12 + $0x428] sm:$0xff] }
  0xfb   : > { %vm1794_vm14 = vcmp.lt.s32.totalorder %v1282_v63, 4800  ;;  %v2816_v14 = vmul.f32 %v2303_v5, %v2303_v5 }
  0xfc   : > { %v3315_v17 = vadd.f32 %v3314_v11, %v2804_v3  ;;  %v771_v3 = vadd.s32 1032, %v3806_v2  ;;  %v2304_v11 = vsel %vm1792_vm12, %v253_v62, 0.0  ;;  %v1284_v13 = vadd.s32 %v3809_v4, %v770_v60  ;;  %v263_v60 = vld [vmem:[%s3801_s12 + $0x430] sm:$0xff] }
  0xfd   : > { %vm1795_vm15 = vcmp.lt.s32.totalorder %v1283_v7, 4800  ;;  %v2817_v20 = vmul.f32 %v2304_v11, %v2304_v11 }
  0xfe   : > { %v3316_v23 = vadd.f32 %v3315_v17, %v2805_v10  ;;  %v772_v10 = vadd.s32 1040, %v3806_v2  ;;  %v2305_v17 = vsel %vm1793_vm13, %v254_v6, 0.0  ;;  %v1285_v19 = vadd.s32 %v3809_v4, %v771_v3  ;;  %v264_v3 = vld [vmem:[%s3801_s12 + $0x438] sm:$0xff] }
  0xff   : > { %vm1796_vm0 = vcmp.lt.s32.totalorder %v1284_v13, 4800  ;;  %v2818_v26 = vmul.f32 %v2305_v17, %v2305_v17 }
 0x100   : > { %v3317_v29 = vadd.f32 %v3316_v23, %v2806_v16  ;;  %v773_v16 = vadd.s32 1048, %v3806_v2  ;;  %v2306_v23 = vsel %vm1794_vm14, %v255_v12, 0.0  ;;  %v1286_v25 = vadd.s32 %v3809_v4, %v772_v10  ;;  %v265_v10 = vld [vmem:[%s3801_s12 + $0x440] sm:$0xff] }
 0x101   : > { %vm1797_vm1 = vcmp.lt.s32.totalorder %v1285_v19, 4800  ;;  %v2819_v32 = vmul.f32 %v2306_v23, %v2306_v23 }
 0x102   : > { %v3318_v35 = vadd.f32 %v3317_v29, %v2807_v22  ;;  %v774_v22 = vadd.s32 1056, %v3806_v2  ;;  %v2307_v29 = vsel %vm1795_vm15, %v256_v18, 0.0  ;;  %v1287_v31 = vadd.s32 %v3809_v4, %v773_v16  ;;  %v266_v16 = vld [vmem:[%s3801_s12 + $0x448] sm:$0xff] }
 0x103   : > { %vm1798_vm2 = vcmp.lt.s32.totalorder %v1286_v25, 4800  ;;  %v2820_v38 = vmul.f32 %v2307_v29, %v2307_v29 }
 0x104   : > { %v3319_v41 = vadd.f32 %v3318_v35, %v2808_v28  ;;  %v775_v28 = vadd.s32 1064, %v3806_v2  ;;  %v2308_v35 = vsel %vm1796_vm0, %v257_v24, 0.0  ;;  %v1288_v37 = vadd.s32 %v3809_v4, %v774_v22  ;;  %v267_v22 = vld [vmem:[%s3801_s12 + $0x450] sm:$0xff] }
 0x105   : > { %vm1799_vm3 = vcmp.lt.s32.totalorder %v1287_v31, 4800  ;;  %v2821_v44 = vmul.f32 %v2308_v35, %v2308_v35 }
 0x106   : > { %v3320_v47 = vadd.f32 %v3319_v41, %v2809_v34  ;;  %v776_v34 = vadd.s32 1072, %v3806_v2  ;;  %v2309_v41 = vsel %vm1797_vm1, %v258_v30, 0.0  ;;  %v1289_v43 = vadd.s32 %v3809_v4, %v775_v28  ;;  %v268_v28 = vld [vmem:[%s3801_s12 + $0x458] sm:$0xff] }
 0x107   : > { %vm1800_vm4 = vcmp.lt.s32.totalorder %v1288_v37, 4800  ;;  %v2822_v50 = vmul.f32 %v2309_v41, %v2309_v41 }
 0x108   : > { %v3321_v53 = vadd.f32 %v3320_v47, %v2810_v40  ;;  %v777_v40 = vadd.s32 1080, %v3806_v2  ;;  %v2310_v47 = vsel %vm1798_vm2, %v259_v36, 0.0  ;;  %v1290_v49 = vadd.s32 %v3809_v4, %v776_v34  ;;  %v269_v34 = vld [vmem:[%s3801_s12 + $0x460] sm:$0xff] }
 0x109   : > { %vm1801_vm5 = vcmp.lt.s32.totalorder %v1289_v43, 4800  ;;  %v2823_v56 = vmul.f32 %v2310_v47, %v2310_v47 }
 0x10a   : > { %v3322_v59 = vadd.f32 %v3321_v53, %v2811_v46  ;;  %v778_v46 = vadd.s32 1088, %v3806_v2  ;;  %v2311_v53 = vsel %vm1799_vm3, %v260_v42, 0.0  ;;  %v1291_v55 = vadd.s32 %v3809_v4, %v777_v40  ;;  %v270_v40 = vld [vmem:[%s3801_s12 + $0x468] sm:$0xff] }
 0x10b   : > { %vm1802_vm6 = vcmp.lt.s32.totalorder %v1290_v49, 4800  ;;  %v2824_v62 = vmul.f32 %v2311_v53, %v2311_v53 }
 0x10c   : > { %v3323_v1 = vadd.f32 %v3322_v59, %v2812_v52  ;;  %v779_v52 = vadd.s32 1096, %v3806_v2  ;;  %v2312_v59 = vsel %vm1800_vm4, %v261_v48, 0.0  ;;  %v1292_v61 = vadd.s32 %v3809_v4, %v778_v46  ;;  %v271_v46 = vld [vmem:[%s3801_s12 + $0x470] sm:$0xff] }
 0x10d   : > { %vm1803_vm7 = vcmp.lt.s32.totalorder %v1291_v55, 4800  ;;  %v2825_v6 = vmul.f32 %v2312_v59, %v2312_v59 }
 0x10e   : > { %v3324_v9 = vadd.f32 %v3323_v1, %v2813_v58  ;;  %v780_v58 = vadd.s32 1104, %v3806_v2  ;;  %v2313_v1 = vsel %vm1801_vm5, %v262_v54, 0.0  ;;  %v1293_v5 = vadd.s32 %v3809_v4, %v779_v52  ;;  %v272_v52 = vld [vmem:[%s3801_s12 + $0x478] sm:$0xff] }
 0x10f   : > { %vm1804_vm8 = vcmp.lt.s32.totalorder %v1292_v61, 4800  ;;  %v2826_v12 = vmul.f32 %v2313_v1, %v2313_v1 }
 0x110   : > { %v3325_v15 = vadd.f32 %v3324_v9, %v2814_v0  ;;  %v781_v0 = vadd.s32 1112, %v3806_v2  ;;  %v2314_v9 = vsel %vm1802_vm6, %v263_v60, 0.0  ;;  %v1294_v11 = vadd.s32 %v3809_v4, %v780_v58  ;;  %v273_v58 = vld [vmem:[%s3801_s12 + $0x480] sm:$0xff] }
 0x111   : > { %vm1805_vm9 = vcmp.lt.s32.totalorder %v1293_v5, 4800  ;;  %v2827_v18 = vmul.f32 %v2314_v9, %v2314_v9 }
 0x112   : > { %v3326_v21 = vadd.f32 %v3325_v15, %v2815_v8  ;;  %v782_v8 = vadd.s32 1120, %v3806_v2  ;;  %v2315_v15 = vsel %vm1803_vm7, %v264_v3, 0.0  ;;  %v1295_v17 = vadd.s32 %v3809_v4, %v781_v0  ;;  %v274_v0 = vld [vmem:[%s3801_s12 + $0x488] sm:$0xff] }
 0x113   : > { %vm1806_vm10 = vcmp.lt.s32.totalorder %v1294_v11, 4800  ;;  %v2828_v24 = vmul.f32 %v2315_v15, %v2315_v15 }
 0x114   : > { %v3327_v27 = vadd.f32 %v3326_v21, %v2816_v14  ;;  %v783_v14 = vadd.s32 1128, %v3806_v2  ;;  %v2316_v21 = vsel %vm1804_vm8, %v265_v10, 0.0  ;;  %v1296_v23 = vadd.s32 %v3809_v4, %v782_v8  ;;  %v275_v8 = vld [vmem:[%s3801_s12 + $0x490] sm:$0xff] }
 0x115   : > { %vm1807_vm11 = vcmp.lt.s32.totalorder %v1295_v17, 4800  ;;  %v2829_v30 = vmul.f32 %v2316_v21, %v2316_v21 }
 0x116   : > { %v3328_v33 = vadd.f32 %v3327_v27, %v2817_v20  ;;  %v784_v20 = vadd.s32 1136, %v3806_v2  ;;  %v2317_v27 = vsel %vm1805_vm9, %v266_v16, 0.0  ;;  %v1297_v29 = vadd.s32 %v3809_v4, %v783_v14  ;;  %v276_v14 = vld [vmem:[%s3801_s12 + $0x498] sm:$0xff] }
 0x117   : > { %vm1808_vm12 = vcmp.lt.s32.totalorder %v1296_v23, 4800  ;;  %v2830_v36 = vmul.f32 %v2317_v27, %v2317_v27 }
 0x118   : > { %v3329_v39 = vadd.f32 %v3328_v33, %v2818_v26  ;;  %v785_v26 = vadd.s32 1144, %v3806_v2  ;;  %v2318_v33 = vsel %vm1806_vm10, %v267_v22, 0.0  ;;  %v1298_v35 = vadd.s32 %v3809_v4, %v784_v20  ;;  %v277_v20 = vld [vmem:[%s3801_s12 + $0x4a0] sm:$0xff] }
 0x119   : > { %vm1809_vm13 = vcmp.lt.s32.totalorder %v1297_v29, 4800  ;;  %v2831_v42 = vmul.f32 %v2318_v33, %v2318_v33 }
 0x11a   : > { %v3330_v45 = vadd.f32 %v3329_v39, %v2819_v32  ;;  %v786_v32 = vadd.s32 1152, %v3806_v2  ;;  %v2319_v39 = vsel %vm1807_vm11, %v268_v28, 0.0  ;;  %v1299_v41 = vadd.s32 %v3809_v4, %v785_v26  ;;  %v278_v26 = vld [vmem:[%s3801_s12 + $0x4a8] sm:$0xff] }
 0x11b   : > { %vm1810_vm14 = vcmp.lt.s32.totalorder %v1298_v35, 4800  ;;  %v2832_v48 = vmul.f32 %v2319_v39, %v2319_v39 }
 0x11c   : > { %v3331_v51 = vadd.f32 %v3330_v45, %v2820_v38  ;;  %v787_v38 = vadd.s32 1160, %v3806_v2  ;;  %v2320_v45 = vsel %vm1808_vm12, %v269_v34, 0.0  ;;  %v1300_v47 = vadd.s32 %v3809_v4, %v786_v32  ;;  %v279_v32 = vld [vmem:[%s3801_s12 + $0x4b0] sm:$0xff] }
 0x11d   : > { %vm1811_vm15 = vcmp.lt.s32.totalorder %v1299_v41, 4800  ;;  %v2833_v54 = vmul.f32 %v2320_v45, %v2320_v45 }
 0x11e   : > { %v3332_v57 = vadd.f32 %v3331_v51, %v2821_v44  ;;  %v788_v44 = vadd.s32 1168, %v3806_v2  ;;  %v2321_v51 = vsel %vm1809_vm13, %v270_v40, 0.0  ;;  %v1301_v53 = vadd.s32 %v3809_v4, %v787_v38  ;;  %v280_v38 = vld [vmem:[%s3801_s12 + $0x4b8] sm:$0xff] }
 0x11f   : > { %vm1812_vm0 = vcmp.lt.s32.totalorder %v1300_v47, 4800  ;;  %v2834_v60 = vmul.f32 %v2321_v51, %v2321_v51 }
 0x120   : > { %v3333_v63 = vadd.f32 %v3332_v57, %v2822_v50  ;;  %v789_v50 = vadd.s32 1176, %v3806_v2  ;;  %v2322_v57 = vsel %vm1810_vm14, %v271_v46, 0.0  ;;  %v1302_v59 = vadd.s32 %v3809_v4, %v788_v44  ;;  %v281_v44 = vld [vmem:[%s3801_s12 + $0x4c0] sm:$0xff] }
 0x121   : > { %vm1813_vm1 = vcmp.lt.s32.totalorder %v1301_v53, 4800  ;;  %v2835_v3 = vmul.f32 %v2322_v57, %v2322_v57 }
 0x122   : > { %v3334_v7 = vadd.f32 %v3333_v63, %v2823_v56  ;;  %v790_v56 = vadd.s32 1184, %v3806_v2  ;;  %v2323_v63 = vsel %vm1811_vm15, %v272_v52, 0.0  ;;  %v1303_v1 = vadd.s32 %v3809_v4, %v789_v50  ;;  %v282_v50 = vld [vmem:[%s3801_s12 + $0x4c8] sm:$0xff] }
 0x123   : > { %vm1814_vm2 = vcmp.lt.s32.totalorder %v1302_v59, 4800  ;;  %v2836_v10 = vmul.f32 %v2323_v63, %v2323_v63 }
 0x124   : > { %v3335_v13 = vadd.f32 %v3334_v7, %v2824_v62  ;;  %v791_v62 = vadd.s32 1192, %v3806_v2  ;;  %v2324_v7 = vsel %vm1812_vm0, %v273_v58, 0.0  ;;  %v1304_v9 = vadd.s32 %v3809_v4, %v790_v56  ;;  %v283_v56 = vld [vmem:[%s3801_s12 + $0x4d0] sm:$0xff] }
 0x125   : > { %vm1815_vm3 = vcmp.lt.s32.totalorder %v1303_v1, 4800  ;;  %v2837_v16 = vmul.f32 %v2324_v7, %v2324_v7 }
 0x126   : > { %v3336_v19 = vadd.f32 %v3335_v13, %v2825_v6  ;;  %v792_v6 = vadd.s32 1200, %v3806_v2  ;;  %v2325_v13 = vsel %vm1813_vm1, %v274_v0, 0.0  ;;  %v1305_v15 = vadd.s32 %v3809_v4, %v791_v62  ;;  %v284_v62 = vld [vmem:[%s3801_s12 + $0x4d8] sm:$0xff] }
 0x127   : > { %vm1816_vm4 = vcmp.lt.s32.totalorder %v1304_v9, 4800  ;;  %v2838_v22 = vmul.f32 %v2325_v13, %v2325_v13 }
 0x128   : > { %v3337_v25 = vadd.f32 %v3336_v19, %v2826_v12  ;;  %v793_v12 = vadd.s32 1208, %v3806_v2  ;;  %v2326_v19 = vsel %vm1814_vm2, %v275_v8, 0.0  ;;  %v1306_v21 = vadd.s32 %v3809_v4, %v792_v6  ;;  %v285_v6 = vld [vmem:[%s3801_s12 + $0x4e0] sm:$0xff] }
 0x129   : > { %vm1817_vm5 = vcmp.lt.s32.totalorder %v1305_v15, 4800  ;;  %v2839_v28 = vmul.f32 %v2326_v19, %v2326_v19 }
 0x12a   : > { %v3338_v31 = vadd.f32 %v3337_v25, %v2827_v18  ;;  %v794_v18 = vadd.s32 1216, %v3806_v2  ;;  %v2327_v25 = vsel %vm1815_vm3, %v276_v14, 0.0  ;;  %v1307_v27 = vadd.s32 %v3809_v4, %v793_v12  ;;  %v286_v12 = vld [vmem:[%s3801_s12 + $0x4e8] sm:$0xff] }
 0x12b   : > { %vm1818_vm6 = vcmp.lt.s32.totalorder %v1306_v21, 4800  ;;  %v2840_v34 = vmul.f32 %v2327_v25, %v2327_v25 }
 0x12c   : > { %v3339_v37 = vadd.f32 %v3338_v31, %v2828_v24  ;;  %v795_v24 = vadd.s32 1224, %v3806_v2  ;;  %v2328_v31 = vsel %vm1816_vm4, %v277_v20, 0.0  ;;  %v1308_v33 = vadd.s32 %v3809_v4, %v794_v18  ;;  %v287_v18 = vld [vmem:[%s3801_s12 + $0x4f0] sm:$0xff] }
 0x12d   : > { %vm1819_vm7 = vcmp.lt.s32.totalorder %v1307_v27, 4800  ;;  %v2841_v40 = vmul.f32 %v2328_v31, %v2328_v31 }
 0x12e   : > { %v3340_v43 = vadd.f32 %v3339_v37, %v2829_v30  ;;  %v796_v30 = vadd.s32 1232, %v3806_v2  ;;  %v2329_v37 = vsel %vm1817_vm5, %v278_v26, 0.0  ;;  %v1309_v39 = vadd.s32 %v3809_v4, %v795_v24  ;;  %v288_v24 = vld [vmem:[%s3801_s12 + $0x4f8] sm:$0xff] }
 0x12f   : > { %vm1820_vm8 = vcmp.lt.s32.totalorder %v1308_v33, 4800  ;;  %v2842_v46 = vmul.f32 %v2329_v37, %v2329_v37 }
 0x130   : > { %v3341_v49 = vadd.f32 %v3340_v43, %v2830_v36  ;;  %v797_v36 = vadd.s32 1240, %v3806_v2  ;;  %v2330_v43 = vsel %vm1818_vm6, %v279_v32, 0.0  ;;  %v1310_v45 = vadd.s32 %v3809_v4, %v796_v30  ;;  %v289_v30 = vld [vmem:[%s3801_s12 + $0x500] sm:$0xff] }
 0x131   : > { %vm1821_vm9 = vcmp.lt.s32.totalorder %v1309_v39, 4800  ;;  %v2843_v52 = vmul.f32 %v2330_v43, %v2330_v43 }
 0x132   : > { %v3342_v55 = vadd.f32 %v3341_v49, %v2831_v42  ;;  %v798_v42 = vadd.s32 1248, %v3806_v2  ;;  %v2331_v49 = vsel %vm1819_vm7, %v280_v38, 0.0  ;;  %v1311_v51 = vadd.s32 %v3809_v4, %v797_v36  ;;  %v290_v36 = vld [vmem:[%s3801_s12 + $0x508] sm:$0xff] }
 0x133   : > { %vm1822_vm10 = vcmp.lt.s32.totalorder %v1310_v45, 4800  ;;  %v2844_v58 = vmul.f32 %v2331_v49, %v2331_v49 }
 0x134   : > { %v3343_v61 = vadd.f32 %v3342_v55, %v2832_v48  ;;  %v799_v48 = vadd.s32 1256, %v3806_v2  ;;  %v2332_v55 = vsel %vm1820_vm8, %v281_v44, 0.0  ;;  %v1312_v57 = vadd.s32 %v3809_v4, %v798_v42  ;;  %v291_v42 = vld [vmem:[%s3801_s12 + $0x510] sm:$0xff] }
 0x135   : > { %vm1823_vm11 = vcmp.lt.s32.totalorder %v1311_v51, 4800  ;;  %v2845_v0 = vmul.f32 %v2332_v55, %v2332_v55 }
 0x136   : > { %v3344_v5 = vadd.f32 %v3343_v61, %v2833_v54  ;;  %v800_v54 = vadd.s32 1264, %v3806_v2  ;;  %v2333_v61 = vsel %vm1821_vm9, %v282_v50, 0.0  ;;  %v1313_v63 = vadd.s32 %v3809_v4, %v799_v48  ;;  %v292_v48 = vld [vmem:[%s3801_s12 + $0x518] sm:$0xff] }
 0x137   : > { %vm1824_vm12 = vcmp.lt.s32.totalorder %v1312_v57, 4800  ;;  %v2846_v8 = vmul.f32 %v2333_v61, %v2333_v61 }
 0x138   : > { %v3345_v11 = vadd.f32 %v3344_v5, %v2834_v60  ;;  %v801_v60 = vadd.s32 1272, %v3806_v2  ;;  %v2334_v5 = vsel %vm1822_vm10, %v283_v56, 0.0  ;;  %v1314_v7 = vadd.s32 %v3809_v4, %v800_v54  ;;  %v293_v54 = vld [vmem:[%s3801_s12 + $0x520] sm:$0xff] }
 0x139   : > { %vm1825_vm13 = vcmp.lt.s32.totalorder %v1313_v63, 4800  ;;  %v2847_v14 = vmul.f32 %v2334_v5, %v2334_v5 }
 0x13a   : > { %v3346_v17 = vadd.f32 %v3345_v11, %v2835_v3  ;;  %v802_v3 = vadd.s32 1280, %v3806_v2  ;;  %v2335_v11 = vsel %vm1823_vm11, %v284_v62, 0.0  ;;  %v1315_v13 = vadd.s32 %v3809_v4, %v801_v60  ;;  %v294_v60 = vld [vmem:[%s3801_s12 + $0x528] sm:$0xff] }
 0x13b   : > { %vm1826_vm14 = vcmp.lt.s32.totalorder %v1314_v7, 4800  ;;  %v2848_v20 = vmul.f32 %v2335_v11, %v2335_v11 }
 0x13c   : > { %v3347_v23 = vadd.f32 %v3346_v17, %v2836_v10  ;;  %v803_v10 = vadd.s32 1288, %v3806_v2  ;;  %v2336_v17 = vsel %vm1824_vm12, %v285_v6, 0.0  ;;  %v1316_v19 = vadd.s32 %v3809_v4, %v802_v3  ;;  %v295_v3 = vld [vmem:[%s3801_s12 + $0x530] sm:$0xff] }
 0x13d   : > { %vm1827_vm15 = vcmp.lt.s32.totalorder %v1315_v13, 4800  ;;  %v2849_v26 = vmul.f32 %v2336_v17, %v2336_v17 }
 0x13e   : > { %v3348_v29 = vadd.f32 %v3347_v23, %v2837_v16  ;;  %v804_v16 = vadd.s32 1296, %v3806_v2  ;;  %v2337_v23 = vsel %vm1825_vm13, %v286_v12, 0.0  ;;  %v1317_v25 = vadd.s32 %v3809_v4, %v803_v10  ;;  %v296_v10 = vld [vmem:[%s3801_s12 + $0x538] sm:$0xff] }
 0x13f   : > { %vm1828_vm0 = vcmp.lt.s32.totalorder %v1316_v19, 4800  ;;  %v2850_v32 = vmul.f32 %v2337_v23, %v2337_v23 }
 0x140   : > { %v3349_v35 = vadd.f32 %v3348_v29, %v2838_v22  ;;  %v805_v22 = vadd.s32 1304, %v3806_v2  ;;  %v2338_v29 = vsel %vm1826_vm14, %v287_v18, 0.0  ;;  %v1318_v31 = vadd.s32 %v3809_v4, %v804_v16  ;;  %v297_v16 = vld [vmem:[%s3801_s12 + $0x540] sm:$0xff] }
 0x141   : > { %vm1829_vm1 = vcmp.lt.s32.totalorder %v1317_v25, 4800  ;;  %v2851_v38 = vmul.f32 %v2338_v29, %v2338_v29 }
 0x142   : > { %v3350_v41 = vadd.f32 %v3349_v35, %v2839_v28  ;;  %v806_v28 = vadd.s32 1312, %v3806_v2  ;;  %v2339_v35 = vsel %vm1827_vm15, %v288_v24, 0.0  ;;  %v1319_v37 = vadd.s32 %v3809_v4, %v805_v22  ;;  %v298_v22 = vld [vmem:[%s3801_s12 + $0x548] sm:$0xff] }
 0x143   : > { %vm1830_vm2 = vcmp.lt.s32.totalorder %v1318_v31, 4800  ;;  %v2852_v44 = vmul.f32 %v2339_v35, %v2339_v35 }
 0x144   : > { %v3351_v47 = vadd.f32 %v3350_v41, %v2840_v34  ;;  %v807_v34 = vadd.s32 1320, %v3806_v2  ;;  %v2340_v41 = vsel %vm1828_vm0, %v289_v30, 0.0  ;;  %v1320_v43 = vadd.s32 %v3809_v4, %v806_v28  ;;  %v299_v28 = vld [vmem:[%s3801_s12 + $0x550] sm:$0xff] }
 0x145   : > { %vm1831_vm3 = vcmp.lt.s32.totalorder %v1319_v37, 4800  ;;  %v2853_v50 = vmul.f32 %v2340_v41, %v2340_v41 }
 0x146   : > { %v3352_v53 = vadd.f32 %v3351_v47, %v2841_v40  ;;  %v808_v40 = vadd.s32 1328, %v3806_v2  ;;  %v2341_v47 = vsel %vm1829_vm1, %v290_v36, 0.0  ;;  %v1321_v49 = vadd.s32 %v3809_v4, %v807_v34  ;;  %v300_v34 = vld [vmem:[%s3801_s12 + $0x558] sm:$0xff] }
 0x147   : > { %vm1832_vm4 = vcmp.lt.s32.totalorder %v1320_v43, 4800  ;;  %v2854_v56 = vmul.f32 %v2341_v47, %v2341_v47 }
 0x148   : > { %v3353_v59 = vadd.f32 %v3352_v53, %v2842_v46  ;;  %v809_v46 = vadd.s32 1336, %v3806_v2  ;;  %v2342_v53 = vsel %vm1830_vm2, %v291_v42, 0.0  ;;  %v1322_v55 = vadd.s32 %v3809_v4, %v808_v40  ;;  %v301_v40 = vld [vmem:[%s3801_s12 + $0x560] sm:$0xff] }
 0x149   : > { %vm1833_vm5 = vcmp.lt.s32.totalorder %v1321_v49, 4800  ;;  %v2855_v62 = vmul.f32 %v2342_v53, %v2342_v53 }
 0x14a   : > { %v3354_v1 = vadd.f32 %v3353_v59, %v2843_v52  ;;  %v810_v52 = vadd.s32 1344, %v3806_v2  ;;  %v2343_v59 = vsel %vm1831_vm3, %v292_v48, 0.0  ;;  %v1323_v61 = vadd.s32 %v3809_v4, %v809_v46  ;;  %v302_v46 = vld [vmem:[%s3801_s12 + $0x568] sm:$0xff] }
 0x14b   : > { %vm1834_vm6 = vcmp.lt.s32.totalorder %v1322_v55, 4800  ;;  %v2856_v6 = vmul.f32 %v2343_v59, %v2343_v59 }
 0x14c   : > { %v3355_v9 = vadd.f32 %v3354_v1, %v2844_v58  ;;  %v811_v58 = vadd.s32 1352, %v3806_v2  ;;  %v2344_v1 = vsel %vm1832_vm4, %v293_v54, 0.0  ;;  %v1324_v5 = vadd.s32 %v3809_v4, %v810_v52  ;;  %v303_v52 = vld [vmem:[%s3801_s12 + $0x570] sm:$0xff] }
 0x14d   : > { %vm1835_vm7 = vcmp.lt.s32.totalorder %v1323_v61, 4800  ;;  %v2857_v12 = vmul.f32 %v2344_v1, %v2344_v1 }
 0x14e   : > { %v3356_v15 = vadd.f32 %v3355_v9, %v2845_v0  ;;  %v812_v0 = vadd.s32 1360, %v3806_v2  ;;  %v2345_v9 = vsel %vm1833_vm5, %v294_v60, 0.0  ;;  %v1325_v11 = vadd.s32 %v3809_v4, %v811_v58  ;;  %v304_v58 = vld [vmem:[%s3801_s12 + $0x578] sm:$0xff] }
 0x14f   : > { %vm1836_vm8 = vcmp.lt.s32.totalorder %v1324_v5, 4800  ;;  %v2858_v18 = vmul.f32 %v2345_v9, %v2345_v9 }
 0x150   : > { %v3357_v21 = vadd.f32 %v3356_v15, %v2846_v8  ;;  %v813_v8 = vadd.s32 1368, %v3806_v2  ;;  %v2346_v15 = vsel %vm1834_vm6, %v295_v3, 0.0  ;;  %v1326_v17 = vadd.s32 %v3809_v4, %v812_v0  ;;  %v305_v0 = vld [vmem:[%s3801_s12 + $0x580] sm:$0xff] }
 0x151   : > { %vm1837_vm9 = vcmp.lt.s32.totalorder %v1325_v11, 4800  ;;  %v2859_v24 = vmul.f32 %v2346_v15, %v2346_v15 }
 0x152   : > { %v3358_v27 = vadd.f32 %v3357_v21, %v2847_v14  ;;  %v814_v14 = vadd.s32 1376, %v3806_v2  ;;  %v2347_v21 = vsel %vm1835_vm7, %v296_v10, 0.0  ;;  %v1327_v23 = vadd.s32 %v3809_v4, %v813_v8  ;;  %v306_v8 = vld [vmem:[%s3801_s12 + $0x588] sm:$0xff] }
 0x153   : > { %vm1838_vm10 = vcmp.lt.s32.totalorder %v1326_v17, 4800  ;;  %v2860_v30 = vmul.f32 %v2347_v21, %v2347_v21 }
 0x154   : > { %v3359_v33 = vadd.f32 %v3358_v27, %v2848_v20  ;;  %v815_v20 = vadd.s32 1384, %v3806_v2  ;;  %v2348_v27 = vsel %vm1836_vm8, %v297_v16, 0.0  ;;  %v1328_v29 = vadd.s32 %v3809_v4, %v814_v14  ;;  %v307_v14 = vld [vmem:[%s3801_s12 + $0x590] sm:$0xff] }
 0x155   : > { %vm1839_vm11 = vcmp.lt.s32.totalorder %v1327_v23, 4800  ;;  %v2861_v36 = vmul.f32 %v2348_v27, %v2348_v27 }
 0x156   : > { %v3360_v39 = vadd.f32 %v3359_v33, %v2849_v26  ;;  %v816_v26 = vadd.s32 1392, %v3806_v2  ;;  %v2349_v33 = vsel %vm1837_vm9, %v298_v22, 0.0  ;;  %v1329_v35 = vadd.s32 %v3809_v4, %v815_v20  ;;  %v308_v20 = vld [vmem:[%s3801_s12 + $0x598] sm:$0xff] }
 0x157   : > { %vm1840_vm12 = vcmp.lt.s32.totalorder %v1328_v29, 4800  ;;  %v2862_v42 = vmul.f32 %v2349_v33, %v2349_v33 }
 0x158   : > { %v3361_v45 = vadd.f32 %v3360_v39, %v2850_v32  ;;  %v817_v32 = vadd.s32 1400, %v3806_v2  ;;  %v2350_v39 = vsel %vm1838_vm10, %v299_v28, 0.0  ;;  %v1330_v41 = vadd.s32 %v3809_v4, %v816_v26  ;;  %v309_v26 = vld [vmem:[%s3801_s12 + $0x5a0] sm:$0xff] }
 0x159   : > { %vm1841_vm13 = vcmp.lt.s32.totalorder %v1329_v35, 4800  ;;  %v2863_v48 = vmul.f32 %v2350_v39, %v2350_v39 }
 0x15a   : > { %v3362_v51 = vadd.f32 %v3361_v45, %v2851_v38  ;;  %v818_v38 = vadd.s32 1408, %v3806_v2  ;;  %v2351_v45 = vsel %vm1839_vm11, %v300_v34, 0.0  ;;  %v1331_v47 = vadd.s32 %v3809_v4, %v817_v32  ;;  %v310_v32 = vld [vmem:[%s3801_s12 + $0x5a8] sm:$0xff] }
 0x15b   : > { %vm1842_vm14 = vcmp.lt.s32.totalorder %v1330_v41, 4800  ;;  %v2864_v54 = vmul.f32 %v2351_v45, %v2351_v45 }
 0x15c   : > { %v3363_v57 = vadd.f32 %v3362_v51, %v2852_v44  ;;  %v819_v44 = vadd.s32 1416, %v3806_v2  ;;  %v2352_v51 = vsel %vm1840_vm12, %v301_v40, 0.0  ;;  %v1332_v53 = vadd.s32 %v3809_v4, %v818_v38  ;;  %v311_v38 = vld [vmem:[%s3801_s12 + $0x5b0] sm:$0xff] }
 0x15d   : > { %vm1843_vm15 = vcmp.lt.s32.totalorder %v1331_v47, 4800  ;;  %v2865_v60 = vmul.f32 %v2352_v51, %v2352_v51 }
 0x15e   : > { %v3364_v63 = vadd.f32 %v3363_v57, %v2853_v50  ;;  %v820_v50 = vadd.s32 1424, %v3806_v2  ;;  %v2353_v57 = vsel %vm1841_vm13, %v302_v46, 0.0  ;;  %v1333_v59 = vadd.s32 %v3809_v4, %v819_v44  ;;  %v312_v44 = vld [vmem:[%s3801_s12 + $0x5b8] sm:$0xff] }
 0x15f   : > { %vm1844_vm0 = vcmp.lt.s32.totalorder %v1332_v53, 4800  ;;  %v2866_v3 = vmul.f32 %v2353_v57, %v2353_v57 }
 0x160   : > { %v3365_v7 = vadd.f32 %v3364_v63, %v2854_v56  ;;  %v821_v56 = vadd.s32 1432, %v3806_v2  ;;  %v2354_v63 = vsel %vm1842_vm14, %v303_v52, 0.0  ;;  %v1334_v1 = vadd.s32 %v3809_v4, %v820_v50  ;;  %v313_v50 = vld [vmem:[%s3801_s12 + $0x5c0] sm:$0xff] }
 0x161   : > { %vm1845_vm1 = vcmp.lt.s32.totalorder %v1333_v59, 4800  ;;  %v2867_v10 = vmul.f32 %v2354_v63, %v2354_v63 }
 0x162   : > { %v3366_v13 = vadd.f32 %v3365_v7, %v2855_v62  ;;  %v822_v62 = vadd.s32 1440, %v3806_v2  ;;  %v2355_v7 = vsel %vm1843_vm15, %v304_v58, 0.0  ;;  %v1335_v9 = vadd.s32 %v3809_v4, %v821_v56  ;;  %v314_v56 = vld [vmem:[%s3801_s12 + $0x5c8] sm:$0xff] }
 0x163   : > { %vm1846_vm2 = vcmp.lt.s32.totalorder %v1334_v1, 4800  ;;  %v2868_v16 = vmul.f32 %v2355_v7, %v2355_v7 }
 0x164   : > { %v3367_v19 = vadd.f32 %v3366_v13, %v2856_v6  ;;  %v823_v6 = vadd.s32 1448, %v3806_v2  ;;  %v2356_v13 = vsel %vm1844_vm0, %v305_v0, 0.0  ;;  %v1336_v15 = vadd.s32 %v3809_v4, %v822_v62  ;;  %v315_v62 = vld [vmem:[%s3801_s12 + $0x5d0] sm:$0xff] }
 0x165   : > { %vm1847_vm3 = vcmp.lt.s32.totalorder %v1335_v9, 4800  ;;  %v2869_v22 = vmul.f32 %v2356_v13, %v2356_v13 }
 0x166   : > { %v3368_v25 = vadd.f32 %v3367_v19, %v2857_v12  ;;  %v824_v12 = vadd.s32 1456, %v3806_v2  ;;  %v2357_v19 = vsel %vm1845_vm1, %v306_v8, 0.0  ;;  %v1337_v21 = vadd.s32 %v3809_v4, %v823_v6  ;;  %v316_v6 = vld [vmem:[%s3801_s12 + $0x5d8] sm:$0xff] }
 0x167   : > { %vm1848_vm4 = vcmp.lt.s32.totalorder %v1336_v15, 4800  ;;  %v2870_v28 = vmul.f32 %v2357_v19, %v2357_v19 }
 0x168   : > { %v3369_v31 = vadd.f32 %v3368_v25, %v2858_v18  ;;  %v825_v18 = vadd.s32 1464, %v3806_v2  ;;  %v2358_v25 = vsel %vm1846_vm2, %v307_v14, 0.0  ;;  %v1338_v27 = vadd.s32 %v3809_v4, %v824_v12  ;;  %v317_v12 = vld [vmem:[%s3801_s12 + $0x5e0] sm:$0xff] }
 0x169   : > { %vm1849_vm5 = vcmp.lt.s32.totalorder %v1337_v21, 4800  ;;  %v2871_v34 = vmul.f32 %v2358_v25, %v2358_v25 }
 0x16a   : > { %v3370_v37 = vadd.f32 %v3369_v31, %v2859_v24  ;;  %v826_v24 = vadd.s32 1472, %v3806_v2  ;;  %v2359_v31 = vsel %vm1847_vm3, %v308_v20, 0.0  ;;  %v1339_v33 = vadd.s32 %v3809_v4, %v825_v18  ;;  %v318_v18 = vld [vmem:[%s3801_s12 + $0x5e8] sm:$0xff] }
 0x16b   : > { %vm1850_vm6 = vcmp.lt.s32.totalorder %v1338_v27, 4800  ;;  %v2872_v40 = vmul.f32 %v2359_v31, %v2359_v31 }
 0x16c   : > { %v3371_v43 = vadd.f32 %v3370_v37, %v2860_v30  ;;  %v827_v30 = vadd.s32 1480, %v3806_v2  ;;  %v2360_v37 = vsel %vm1848_vm4, %v309_v26, 0.0  ;;  %v1340_v39 = vadd.s32 %v3809_v4, %v826_v24  ;;  %v319_v24 = vld [vmem:[%s3801_s12 + $0x5f0] sm:$0xff] }
 0x16d   : > { %vm1851_vm7 = vcmp.lt.s32.totalorder %v1339_v33, 4800  ;;  %v2873_v46 = vmul.f32 %v2360_v37, %v2360_v37 }
 0x16e   : > { %v3372_v49 = vadd.f32 %v3371_v43, %v2861_v36  ;;  %v828_v36 = vadd.s32 1488, %v3806_v2  ;;  %v2361_v43 = vsel %vm1849_vm5, %v310_v32, 0.0  ;;  %v1341_v45 = vadd.s32 %v3809_v4, %v827_v30  ;;  %v320_v30 = vld [vmem:[%s3801_s12 + $0x5f8] sm:$0xff] }
 0x16f   : > { %vm1852_vm8 = vcmp.lt.s32.totalorder %v1340_v39, 4800  ;;  %v2874_v52 = vmul.f32 %v2361_v43, %v2361_v43 }
 0x170   : > { %v3373_v55 = vadd.f32 %v3372_v49, %v2862_v42  ;;  %v829_v42 = vadd.s32 1496, %v3806_v2  ;;  %v2362_v49 = vsel %vm1850_vm6, %v311_v38, 0.0  ;;  %v1342_v51 = vadd.s32 %v3809_v4, %v828_v36  ;;  %v321_v36 = vld [vmem:[%s3801_s12 + $0x600] sm:$0xff] }
 0x171   : > { %vm1853_vm9 = vcmp.lt.s32.totalorder %v1341_v45, 4800  ;;  %v2875_v58 = vmul.f32 %v2362_v49, %v2362_v49 }
 0x172   : > { %v3374_v61 = vadd.f32 %v3373_v55, %v2863_v48  ;;  %v830_v48 = vadd.s32 1504, %v3806_v2  ;;  %v2363_v55 = vsel %vm1851_vm7, %v312_v44, 0.0  ;;  %v1343_v57 = vadd.s32 %v3809_v4, %v829_v42  ;;  %v322_v42 = vld [vmem:[%s3801_s12 + $0x608] sm:$0xff] }
 0x173   : > { %vm1854_vm10 = vcmp.lt.s32.totalorder %v1342_v51, 4800  ;;  %v2876_v0 = vmul.f32 %v2363_v55, %v2363_v55 }
 0x174   : > { %v3375_v5 = vadd.f32 %v3374_v61, %v2864_v54  ;;  %v831_v54 = vadd.s32 1512, %v3806_v2  ;;  %v2364_v61 = vsel %vm1852_vm8, %v313_v50, 0.0  ;;  %v1344_v63 = vadd.s32 %v3809_v4, %v830_v48  ;;  %v323_v48 = vld [vmem:[%s3801_s12 + $0x610] sm:$0xff] }
 0x175   : > { %vm1855_vm11 = vcmp.lt.s32.totalorder %v1343_v57, 4800  ;;  %v2877_v8 = vmul.f32 %v2364_v61, %v2364_v61 }
 0x176   : > { %v3376_v11 = vadd.f32 %v3375_v5, %v2865_v60  ;;  %v832_v60 = vadd.s32 1520, %v3806_v2  ;;  %v2365_v5 = vsel %vm1853_vm9, %v314_v56, 0.0  ;;  %v1345_v7 = vadd.s32 %v3809_v4, %v831_v54  ;;  %v324_v54 = vld [vmem:[%s3801_s12 + $0x618] sm:$0xff] }
 0x177   : > { %vm1856_vm12 = vcmp.lt.s32.totalorder %v1344_v63, 4800  ;;  %v2878_v14 = vmul.f32 %v2365_v5, %v2365_v5 }
 0x178   : > { %v3377_v17 = vadd.f32 %v3376_v11, %v2866_v3  ;;  %v833_v3 = vadd.s32 1528, %v3806_v2  ;;  %v2366_v11 = vsel %vm1854_vm10, %v315_v62, 0.0  ;;  %v1346_v13 = vadd.s32 %v3809_v4, %v832_v60  ;;  %v325_v60 = vld [vmem:[%s3801_s12 + $0x620] sm:$0xff] }
 0x179   : > { %vm1857_vm13 = vcmp.lt.s32.totalorder %v1345_v7, 4800  ;;  %v2879_v20 = vmul.f32 %v2366_v11, %v2366_v11 }
 0x17a   : > { %v3378_v23 = vadd.f32 %v3377_v17, %v2867_v10  ;;  %v834_v10 = vadd.s32 1536, %v3806_v2  ;;  %v2367_v17 = vsel %vm1855_vm11, %v316_v6, 0.0  ;;  %v1347_v19 = vadd.s32 %v3809_v4, %v833_v3  ;;  %v326_v3 = vld [vmem:[%s3801_s12 + $0x628] sm:$0xff] }
 0x17b   : > { %vm1858_vm14 = vcmp.lt.s32.totalorder %v1346_v13, 4800  ;;  %v2880_v26 = vmul.f32 %v2367_v17, %v2367_v17 }
 0x17c   : > { %v3379_v29 = vadd.f32 %v3378_v23, %v2868_v16  ;;  %v835_v16 = vadd.s32 1544, %v3806_v2  ;;  %v2368_v23 = vsel %vm1856_vm12, %v317_v12, 0.0  ;;  %v1348_v25 = vadd.s32 %v3809_v4, %v834_v10  ;;  %v327_v10 = vld [vmem:[%s3801_s12 + $0x630] sm:$0xff] }
 0x17d   : > { %vm1859_vm15 = vcmp.lt.s32.totalorder %v1347_v19, 4800  ;;  %v2881_v32 = vmul.f32 %v2368_v23, %v2368_v23 }
 0x17e   : > { %v3380_v35 = vadd.f32 %v3379_v29, %v2869_v22  ;;  %v836_v22 = vadd.s32 1552, %v3806_v2  ;;  %v2369_v29 = vsel %vm1857_vm13, %v318_v18, 0.0  ;;  %v1349_v31 = vadd.s32 %v3809_v4, %v835_v16  ;;  %v328_v16 = vld [vmem:[%s3801_s12 + $0x638] sm:$0xff] }
 0x17f   : > { %vm1860_vm0 = vcmp.lt.s32.totalorder %v1348_v25, 4800  ;;  %v2882_v38 = vmul.f32 %v2369_v29, %v2369_v29 }
 0x180   : > { %v3381_v41 = vadd.f32 %v3380_v35, %v2870_v28  ;;  %v837_v28 = vadd.s32 1560, %v3806_v2  ;;  %v2370_v35 = vsel %vm1858_vm14, %v319_v24, 0.0  ;;  %v1350_v37 = vadd.s32 %v3809_v4, %v836_v22  ;;  %v329_v22 = vld [vmem:[%s3801_s12 + $0x640] sm:$0xff] }
 0x181   : > { %vm1861_vm1 = vcmp.lt.s32.totalorder %v1349_v31, 4800  ;;  %v2883_v44 = vmul.f32 %v2370_v35, %v2370_v35 }
 0x182   : > { %v3382_v47 = vadd.f32 %v3381_v41, %v2871_v34  ;;  %v838_v34 = vadd.s32 1568, %v3806_v2  ;;  %v2371_v41 = vsel %vm1859_vm15, %v320_v30, 0.0  ;;  %v1351_v43 = vadd.s32 %v3809_v4, %v837_v28  ;;  %v330_v28 = vld [vmem:[%s3801_s12 + $0x648] sm:$0xff] }
 0x183   : > { %vm1862_vm2 = vcmp.lt.s32.totalorder %v1350_v37, 4800  ;;  %v2884_v50 = vmul.f32 %v2371_v41, %v2371_v41 }
 0x184   : > { %v3383_v53 = vadd.f32 %v3382_v47, %v2872_v40  ;;  %v839_v40 = vadd.s32 1576, %v3806_v2  ;;  %v2372_v47 = vsel %vm1860_vm0, %v321_v36, 0.0  ;;  %v1352_v49 = vadd.s32 %v3809_v4, %v838_v34  ;;  %v331_v34 = vld [vmem:[%s3801_s12 + $0x650] sm:$0xff] }
 0x185   : > { %vm1863_vm3 = vcmp.lt.s32.totalorder %v1351_v43, 4800  ;;  %v2885_v56 = vmul.f32 %v2372_v47, %v2372_v47 }
 0x186   : > { %v3384_v59 = vadd.f32 %v3383_v53, %v2873_v46  ;;  %v840_v46 = vadd.s32 1584, %v3806_v2  ;;  %v2373_v53 = vsel %vm1861_vm1, %v322_v42, 0.0  ;;  %v1353_v55 = vadd.s32 %v3809_v4, %v839_v40  ;;  %v332_v40 = vld [vmem:[%s3801_s12 + $0x658] sm:$0xff] }
 0x187   : > { %vm1864_vm4 = vcmp.lt.s32.totalorder %v1352_v49, 4800  ;;  %v2886_v62 = vmul.f32 %v2373_v53, %v2373_v53 }
 0x188   : > { %v3385_v1 = vadd.f32 %v3384_v59, %v2874_v52  ;;  %v841_v52 = vadd.s32 1592, %v3806_v2  ;;  %v2374_v59 = vsel %vm1862_vm2, %v323_v48, 0.0  ;;  %v1354_v61 = vadd.s32 %v3809_v4, %v840_v46  ;;  %v333_v46 = vld [vmem:[%s3801_s12 + $0x660] sm:$0xff] }
 0x189   : > { %vm1865_vm5 = vcmp.lt.s32.totalorder %v1353_v55, 4800  ;;  %v2887_v6 = vmul.f32 %v2374_v59, %v2374_v59 }
 0x18a   : > { %v3386_v9 = vadd.f32 %v3385_v1, %v2875_v58  ;;  %v842_v58 = vadd.s32 1600, %v3806_v2  ;;  %v2375_v1 = vsel %vm1863_vm3, %v324_v54, 0.0  ;;  %v1355_v5 = vadd.s32 %v3809_v4, %v841_v52  ;;  %v334_v52 = vld [vmem:[%s3801_s12 + $0x668] sm:$0xff] }
 0x18b   : > { %vm1866_vm6 = vcmp.lt.s32.totalorder %v1354_v61, 4800  ;;  %v2888_v12 = vmul.f32 %v2375_v1, %v2375_v1 }
 0x18c   : > { %v3387_v15 = vadd.f32 %v3386_v9, %v2876_v0  ;;  %v843_v0 = vadd.s32 1608, %v3806_v2  ;;  %v2376_v9 = vsel %vm1864_vm4, %v325_v60, 0.0  ;;  %v1356_v11 = vadd.s32 %v3809_v4, %v842_v58  ;;  %v335_v58 = vld [vmem:[%s3801_s12 + $0x670] sm:$0xff] }
 0x18d   : > { %vm1867_vm7 = vcmp.lt.s32.totalorder %v1355_v5, 4800  ;;  %v2889_v18 = vmul.f32 %v2376_v9, %v2376_v9 }
 0x18e   : > { %v3388_v21 = vadd.f32 %v3387_v15, %v2877_v8  ;;  %v844_v8 = vadd.s32 1616, %v3806_v2  ;;  %v2377_v15 = vsel %vm1865_vm5, %v326_v3, 0.0  ;;  %v1357_v17 = vadd.s32 %v3809_v4, %v843_v0  ;;  %v336_v0 = vld [vmem:[%s3801_s12 + $0x678] sm:$0xff] }
 0x18f   : > { %vm1868_vm8 = vcmp.lt.s32.totalorder %v1356_v11, 4800  ;;  %v2890_v24 = vmul.f32 %v2377_v15, %v2377_v15 }
 0x190   : > { %v3389_v27 = vadd.f32 %v3388_v21, %v2878_v14  ;;  %v845_v14 = vadd.s32 1624, %v3806_v2  ;;  %v2378_v21 = vsel %vm1866_vm6, %v327_v10, 0.0  ;;  %v1358_v23 = vadd.s32 %v3809_v4, %v844_v8  ;;  %v337_v8 = vld [vmem:[%s3801_s12 + $0x680] sm:$0xff] }
 0x191   : > { %vm1869_vm9 = vcmp.lt.s32.totalorder %v1357_v17, 4800  ;;  %v2891_v30 = vmul.f32 %v2378_v21, %v2378_v21 }
 0x192   : > { %v3390_v33 = vadd.f32 %v3389_v27, %v2879_v20  ;;  %v846_v20 = vadd.s32 1632, %v3806_v2  ;;  %v2379_v27 = vsel %vm1867_vm7, %v328_v16, 0.0  ;;  %v1359_v29 = vadd.s32 %v3809_v4, %v845_v14  ;;  %v338_v14 = vld [vmem:[%s3801_s12 + $0x688] sm:$0xff] }
 0x193   : > { %vm1870_vm10 = vcmp.lt.s32.totalorder %v1358_v23, 4800  ;;  %v2892_v36 = vmul.f32 %v2379_v27, %v2379_v27 }
 0x194   : > { %v3391_v39 = vadd.f32 %v3390_v33, %v2880_v26  ;;  %v847_v26 = vadd.s32 1640, %v3806_v2  ;;  %v2380_v33 = vsel %vm1868_vm8, %v329_v22, 0.0  ;;  %v1360_v35 = vadd.s32 %v3809_v4, %v846_v20  ;;  %v339_v20 = vld [vmem:[%s3801_s12 + $0x690] sm:$0xff] }
 0x195   : > { %vm1871_vm11 = vcmp.lt.s32.totalorder %v1359_v29, 4800  ;;  %v2893_v42 = vmul.f32 %v2380_v33, %v2380_v33 }
 0x196   : > { %v3392_v45 = vadd.f32 %v3391_v39, %v2881_v32  ;;  %v848_v32 = vadd.s32 1648, %v3806_v2  ;;  %v2381_v39 = vsel %vm1869_vm9, %v330_v28, 0.0  ;;  %v1361_v41 = vadd.s32 %v3809_v4, %v847_v26  ;;  %v340_v26 = vld [vmem:[%s3801_s12 + $0x698] sm:$0xff] }
 0x197   : > { %vm1872_vm12 = vcmp.lt.s32.totalorder %v1360_v35, 4800  ;;  %v2894_v48 = vmul.f32 %v2381_v39, %v2381_v39 }
 0x198   : > { %v3393_v51 = vadd.f32 %v3392_v45, %v2882_v38  ;;  %v849_v38 = vadd.s32 1656, %v3806_v2  ;;  %v2382_v45 = vsel %vm1870_vm10, %v331_v34, 0.0  ;;  %v1362_v47 = vadd.s32 %v3809_v4, %v848_v32  ;;  %v341_v32 = vld [vmem:[%s3801_s12 + $0x6a0] sm:$0xff] }
 0x199   : > { %vm1873_vm13 = vcmp.lt.s32.totalorder %v1361_v41, 4800  ;;  %v2895_v54 = vmul.f32 %v2382_v45, %v2382_v45 }
 0x19a   : > { %v3394_v57 = vadd.f32 %v3393_v51, %v2883_v44  ;;  %v850_v44 = vadd.s32 1664, %v3806_v2  ;;  %v2383_v51 = vsel %vm1871_vm11, %v332_v40, 0.0  ;;  %v1363_v53 = vadd.s32 %v3809_v4, %v849_v38  ;;  %v342_v38 = vld [vmem:[%s3801_s12 + $0x6a8] sm:$0xff] }
 0x19b   : > { %vm1874_vm14 = vcmp.lt.s32.totalorder %v1362_v47, 4800  ;;  %v2896_v60 = vmul.f32 %v2383_v51, %v2383_v51 }
 0x19c   : > { %v3395_v63 = vadd.f32 %v3394_v57, %v2884_v50  ;;  %v851_v50 = vadd.s32 1672, %v3806_v2  ;;  %v2384_v57 = vsel %vm1872_vm12, %v333_v46, 0.0  ;;  %v1364_v59 = vadd.s32 %v3809_v4, %v850_v44  ;;  %v343_v44 = vld [vmem:[%s3801_s12 + $0x6b0] sm:$0xff] }
 0x19d   : > { %vm1875_vm15 = vcmp.lt.s32.totalorder %v1363_v53, 4800  ;;  %v2897_v3 = vmul.f32 %v2384_v57, %v2384_v57 }
 0x19e   : > { %v3396_v7 = vadd.f32 %v3395_v63, %v2885_v56  ;;  %v852_v56 = vadd.s32 1680, %v3806_v2  ;;  %v2385_v63 = vsel %vm1873_vm13, %v334_v52, 0.0  ;;  %v1365_v1 = vadd.s32 %v3809_v4, %v851_v50  ;;  %v344_v50 = vld [vmem:[%s3801_s12 + $0x6b8] sm:$0xff] }
 0x19f   : > { %vm1876_vm0 = vcmp.lt.s32.totalorder %v1364_v59, 4800  ;;  %v2898_v10 = vmul.f32 %v2385_v63, %v2385_v63 }
 0x1a0   : > { %v3397_v13 = vadd.f32 %v3396_v7, %v2886_v62  ;;  %v853_v62 = vadd.s32 1688, %v3806_v2  ;;  %v2386_v7 = vsel %vm1874_vm14, %v335_v58, 0.0  ;;  %v1366_v9 = vadd.s32 %v3809_v4, %v852_v56  ;;  %v345_v56 = vld [vmem:[%s3801_s12 + $0x6c0] sm:$0xff] }
 0x1a1   : > { %vm1877_vm1 = vcmp.lt.s32.totalorder %v1365_v1, 4800  ;;  %v2899_v16 = vmul.f32 %v2386_v7, %v2386_v7 }
 0x1a2   : > { %v3398_v19 = vadd.f32 %v3397_v13, %v2887_v6  ;;  %v854_v6 = vadd.s32 1696, %v3806_v2  ;;  %v2387_v13 = vsel %vm1875_vm15, %v336_v0, 0.0  ;;  %v1367_v15 = vadd.s32 %v3809_v4, %v853_v62  ;;  %v346_v62 = vld [vmem:[%s3801_s12 + $0x6c8] sm:$0xff] }
 0x1a3   : > { %vm1878_vm2 = vcmp.lt.s32.totalorder %v1366_v9, 4800  ;;  %v2900_v22 = vmul.f32 %v2387_v13, %v2387_v13 }
 0x1a4   : > { %v3399_v25 = vadd.f32 %v3398_v19, %v2888_v12  ;;  %v855_v12 = vadd.s32 1704, %v3806_v2  ;;  %v2388_v19 = vsel %vm1876_vm0, %v337_v8, 0.0  ;;  %v1368_v21 = vadd.s32 %v3809_v4, %v854_v6  ;;  %v347_v6 = vld [vmem:[%s3801_s12 + $0x6d0] sm:$0xff] }
 0x1a5   : > { %vm1879_vm3 = vcmp.lt.s32.totalorder %v1367_v15, 4800  ;;  %v2901_v28 = vmul.f32 %v2388_v19, %v2388_v19 }
 0x1a6   : > { %v3400_v31 = vadd.f32 %v3399_v25, %v2889_v18  ;;  %v856_v18 = vadd.s32 1712, %v3806_v2  ;;  %v2389_v25 = vsel %vm1877_vm1, %v338_v14, 0.0  ;;  %v1369_v27 = vadd.s32 %v3809_v4, %v855_v12  ;;  %v348_v12 = vld [vmem:[%s3801_s12 + $0x6d8] sm:$0xff] }
 0x1a7   : > { %vm1880_vm4 = vcmp.lt.s32.totalorder %v1368_v21, 4800  ;;  %v2902_v34 = vmul.f32 %v2389_v25, %v2389_v25 }
 0x1a8   : > { %v3401_v37 = vadd.f32 %v3400_v31, %v2890_v24  ;;  %v857_v24 = vadd.s32 1720, %v3806_v2  ;;  %v2390_v31 = vsel %vm1878_vm2, %v339_v20, 0.0  ;;  %v1370_v33 = vadd.s32 %v3809_v4, %v856_v18  ;;  %v349_v18 = vld [vmem:[%s3801_s12 + $0x6e0] sm:$0xff] }
 0x1a9   : > { %vm1881_vm5 = vcmp.lt.s32.totalorder %v1369_v27, 4800  ;;  %v2903_v40 = vmul.f32 %v2390_v31, %v2390_v31 }
 0x1aa   : > { %v3402_v43 = vadd.f32 %v3401_v37, %v2891_v30  ;;  %v858_v30 = vadd.s32 1728, %v3806_v2  ;;  %v2391_v37 = vsel %vm1879_vm3, %v340_v26, 0.0  ;;  %v1371_v39 = vadd.s32 %v3809_v4, %v857_v24  ;;  %v350_v24 = vld [vmem:[%s3801_s12 + $0x6e8] sm:$0xff] }
 0x1ab   : > { %vm1882_vm6 = vcmp.lt.s32.totalorder %v1370_v33, 4800  ;;  %v2904_v46 = vmul.f32 %v2391_v37, %v2391_v37 }
 0x1ac   : > { %v3403_v49 = vadd.f32 %v3402_v43, %v2892_v36  ;;  %v859_v36 = vadd.s32 1736, %v3806_v2  ;;  %v2392_v43 = vsel %vm1880_vm4, %v341_v32, 0.0  ;;  %v1372_v45 = vadd.s32 %v3809_v4, %v858_v30  ;;  %v351_v30 = vld [vmem:[%s3801_s12 + $0x6f0] sm:$0xff] }
 0x1ad   : > { %vm1883_vm7 = vcmp.lt.s32.totalorder %v1371_v39, 4800  ;;  %v2905_v52 = vmul.f32 %v2392_v43, %v2392_v43 }
 0x1ae   : > { %v3404_v55 = vadd.f32 %v3403_v49, %v2893_v42  ;;  %v860_v42 = vadd.s32 1744, %v3806_v2  ;;  %v2393_v49 = vsel %vm1881_vm5, %v342_v38, 0.0  ;;  %v1373_v51 = vadd.s32 %v3809_v4, %v859_v36  ;;  %v352_v36 = vld [vmem:[%s3801_s12 + $0x6f8] sm:$0xff] }
 0x1af   : > { %vm1884_vm8 = vcmp.lt.s32.totalorder %v1372_v45, 4800  ;;  %v2906_v58 = vmul.f32 %v2393_v49, %v2393_v49 }
 0x1b0   : > { %v3405_v61 = vadd.f32 %v3404_v55, %v2894_v48  ;;  %v861_v48 = vadd.s32 1752, %v3806_v2  ;;  %v2394_v55 = vsel %vm1882_vm6, %v343_v44, 0.0  ;;  %v1374_v57 = vadd.s32 %v3809_v4, %v860_v42  ;;  %v353_v42 = vld [vmem:[%s3801_s12 + $0x700] sm:$0xff] }
 0x1b1   : > { %vm1885_vm9 = vcmp.lt.s32.totalorder %v1373_v51, 4800  ;;  %v2907_v0 = vmul.f32 %v2394_v55, %v2394_v55 }
 0x1b2   : > { %v3406_v5 = vadd.f32 %v3405_v61, %v2895_v54  ;;  %v862_v54 = vadd.s32 1760, %v3806_v2  ;;  %v2395_v61 = vsel %vm1883_vm7, %v344_v50, 0.0  ;;  %v1375_v63 = vadd.s32 %v3809_v4, %v861_v48  ;;  %v354_v48 = vld [vmem:[%s3801_s12 + $0x708] sm:$0xff] }
 0x1b3   : > { %vm1886_vm10 = vcmp.lt.s32.totalorder %v1374_v57, 4800  ;;  %v2908_v8 = vmul.f32 %v2395_v61, %v2395_v61 }
 0x1b4   : > { %v3407_v11 = vadd.f32 %v3406_v5, %v2896_v60  ;;  %v863_v60 = vadd.s32 1768, %v3806_v2  ;;  %v2396_v5 = vsel %vm1884_vm8, %v345_v56, 0.0  ;;  %v1376_v7 = vadd.s32 %v3809_v4, %v862_v54  ;;  %v355_v54 = vld [vmem:[%s3801_s12 + $0x710] sm:$0xff] }
 0x1b5   : > { %vm1887_vm11 = vcmp.lt.s32.totalorder %v1375_v63, 4800  ;;  %v2909_v14 = vmul.f32 %v2396_v5, %v2396_v5 }
 0x1b6   : > { %v3408_v17 = vadd.f32 %v3407_v11, %v2897_v3  ;;  %v864_v3 = vadd.s32 1776, %v3806_v2  ;;  %v2397_v11 = vsel %vm1885_vm9, %v346_v62, 0.0  ;;  %v1377_v13 = vadd.s32 %v3809_v4, %v863_v60  ;;  %v356_v60 = vld [vmem:[%s3801_s12 + $0x718] sm:$0xff] }
 0x1b7   : > { %vm1888_vm12 = vcmp.lt.s32.totalorder %v1376_v7, 4800  ;;  %v2910_v20 = vmul.f32 %v2397_v11, %v2397_v11 }
 0x1b8   : > { %v3409_v23 = vadd.f32 %v3408_v17, %v2898_v10  ;;  %v865_v10 = vadd.s32 1784, %v3806_v2  ;;  %v2398_v17 = vsel %vm1886_vm10, %v347_v6, 0.0  ;;  %v1378_v19 = vadd.s32 %v3809_v4, %v864_v3  ;;  %v357_v3 = vld [vmem:[%s3801_s12 + $0x720] sm:$0xff] }
 0x1b9   : > { %vm1889_vm13 = vcmp.lt.s32.totalorder %v1377_v13, 4800  ;;  %v2911_v26 = vmul.f32 %v2398_v17, %v2398_v17 }
 0x1ba   : > { %v3410_v29 = vadd.f32 %v3409_v23, %v2899_v16  ;;  %v866_v16 = vadd.s32 1792, %v3806_v2  ;;  %v2399_v23 = vsel %vm1887_vm11, %v348_v12, 0.0  ;;  %v1379_v25 = vadd.s32 %v3809_v4, %v865_v10  ;;  %v358_v10 = vld [vmem:[%s3801_s12 + $0x728] sm:$0xff] }
 0x1bb   : > { %vm1890_vm14 = vcmp.lt.s32.totalorder %v1378_v19, 4800  ;;  %v2912_v32 = vmul.f32 %v2399_v23, %v2399_v23 }
 0x1bc   : > { %v3411_v35 = vadd.f32 %v3410_v29, %v2900_v22  ;;  %v867_v22 = vadd.s32 1800, %v3806_v2  ;;  %v2400_v29 = vsel %vm1888_vm12, %v349_v18, 0.0  ;;  %v1380_v31 = vadd.s32 %v3809_v4, %v866_v16  ;;  %v359_v16 = vld [vmem:[%s3801_s12 + $0x730] sm:$0xff] }
 0x1bd   : > { %vm1891_vm15 = vcmp.lt.s32.totalorder %v1379_v25, 4800  ;;  %v2913_v38 = vmul.f32 %v2400_v29, %v2400_v29 }
 0x1be   : > { %v3412_v41 = vadd.f32 %v3411_v35, %v2901_v28  ;;  %v868_v28 = vadd.s32 1808, %v3806_v2  ;;  %v2401_v35 = vsel %vm1889_vm13, %v350_v24, 0.0  ;;  %v1381_v37 = vadd.s32 %v3809_v4, %v867_v22  ;;  %v360_v22 = vld [vmem:[%s3801_s12 + $0x738] sm:$0xff] }
 0x1bf   : > { %vm1892_vm0 = vcmp.lt.s32.totalorder %v1380_v31, 4800  ;;  %v2914_v44 = vmul.f32 %v2401_v35, %v2401_v35 }
 0x1c0   : > { %v3413_v47 = vadd.f32 %v3412_v41, %v2902_v34  ;;  %v869_v34 = vadd.s32 1816, %v3806_v2  ;;  %v2402_v41 = vsel %vm1890_vm14, %v351_v30, 0.0  ;;  %v1382_v43 = vadd.s32 %v3809_v4, %v868_v28  ;;  %v361_v28 = vld [vmem:[%s3801_s12 + $0x740] sm:$0xff] }
 0x1c1   : > { %vm1893_vm1 = vcmp.lt.s32.totalorder %v1381_v37, 4800  ;;  %v2915_v50 = vmul.f32 %v2402_v41, %v2402_v41 }
 0x1c2   : > { %v3414_v53 = vadd.f32 %v3413_v47, %v2903_v40  ;;  %v870_v40 = vadd.s32 1824, %v3806_v2  ;;  %v2403_v47 = vsel %vm1891_vm15, %v352_v36, 0.0  ;;  %v1383_v49 = vadd.s32 %v3809_v4, %v869_v34  ;;  %v362_v34 = vld [vmem:[%s3801_s12 + $0x748] sm:$0xff] }
 0x1c3   : > { %vm1894_vm2 = vcmp.lt.s32.totalorder %v1382_v43, 4800  ;;  %v2916_v56 = vmul.f32 %v2403_v47, %v2403_v47 }
 0x1c4   : > { %v3415_v59 = vadd.f32 %v3414_v53, %v2904_v46  ;;  %v871_v46 = vadd.s32 1832, %v3806_v2  ;;  %v2404_v53 = vsel %vm1892_vm0, %v353_v42, 0.0  ;;  %v1384_v55 = vadd.s32 %v3809_v4, %v870_v40  ;;  %v363_v40 = vld [vmem:[%s3801_s12 + $0x750] sm:$0xff] }
 0x1c5   : > { %vm1895_vm3 = vcmp.lt.s32.totalorder %v1383_v49, 4800  ;;  %v2917_v62 = vmul.f32 %v2404_v53, %v2404_v53 }
 0x1c6   : > { %v3416_v1 = vadd.f32 %v3415_v59, %v2905_v52  ;;  %v872_v52 = vadd.s32 1840, %v3806_v2  ;;  %v2405_v59 = vsel %vm1893_vm1, %v354_v48, 0.0  ;;  %v1385_v61 = vadd.s32 %v3809_v4, %v871_v46  ;;  %v364_v46 = vld [vmem:[%s3801_s12 + $0x758] sm:$0xff] }
 0x1c7   : > { %vm1896_vm4 = vcmp.lt.s32.totalorder %v1384_v55, 4800  ;;  %v2918_v6 = vmul.f32 %v2405_v59, %v2405_v59 }
 0x1c8   : > { %v3417_v9 = vadd.f32 %v3416_v1, %v2906_v58  ;;  %v873_v58 = vadd.s32 1848, %v3806_v2  ;;  %v2406_v1 = vsel %vm1894_vm2, %v355_v54, 0.0  ;;  %v1386_v5 = vadd.s32 %v3809_v4, %v872_v52  ;;  %v365_v52 = vld [vmem:[%s3801_s12 + $0x760] sm:$0xff] }
 0x1c9   : > { %vm1897_vm5 = vcmp.lt.s32.totalorder %v1385_v61, 4800  ;;  %v2919_v12 = vmul.f32 %v2406_v1, %v2406_v1 }
 0x1ca   : > { %v3418_v15 = vadd.f32 %v3417_v9, %v2907_v0  ;;  %v874_v0 = vadd.s32 1856, %v3806_v2  ;;  %v2407_v9 = vsel %vm1895_vm3, %v356_v60, 0.0  ;;  %v1387_v11 = vadd.s32 %v3809_v4, %v873_v58  ;;  %v366_v58 = vld [vmem:[%s3801_s12 + $0x768] sm:$0xff] }
 0x1cb   : > { %vm1898_vm6 = vcmp.lt.s32.totalorder %v1386_v5, 4800  ;;  %v2920_v18 = vmul.f32 %v2407_v9, %v2407_v9 }
 0x1cc   : > { %v3419_v21 = vadd.f32 %v3418_v15, %v2908_v8  ;;  %v875_v8 = vadd.s32 1864, %v3806_v2  ;;  %v2408_v15 = vsel %vm1896_vm4, %v357_v3, 0.0  ;;  %v1388_v17 = vadd.s32 %v3809_v4, %v874_v0  ;;  %v367_v0 = vld [vmem:[%s3801_s12 + $0x770] sm:$0xff] }
 0x1cd   : > { %vm1899_vm7 = vcmp.lt.s32.totalorder %v1387_v11, 4800  ;;  %v2921_v24 = vmul.f32 %v2408_v15, %v2408_v15 }
 0x1ce   : > { %v3420_v27 = vadd.f32 %v3419_v21, %v2909_v14  ;;  %v876_v14 = vadd.s32 1872, %v3806_v2  ;;  %v2409_v21 = vsel %vm1897_vm5, %v358_v10, 0.0  ;;  %v1389_v23 = vadd.s32 %v3809_v4, %v875_v8  ;;  %v368_v8 = vld [vmem:[%s3801_s12 + $0x778] sm:$0xff] }
 0x1cf   : > { %vm1900_vm8 = vcmp.lt.s32.totalorder %v1388_v17, 4800  ;;  %v2922_v30 = vmul.f32 %v2409_v21, %v2409_v21 }
 0x1d0   : > { %v3421_v33 = vadd.f32 %v3420_v27, %v2910_v20  ;;  %v877_v20 = vadd.s32 1880, %v3806_v2  ;;  %v2410_v27 = vsel %vm1898_vm6, %v359_v16, 0.0  ;;  %v1390_v29 = vadd.s32 %v3809_v4, %v876_v14  ;;  %v369_v14 = vld [vmem:[%s3801_s12 + $0x780] sm:$0xff] }
 0x1d1   : > { %vm1901_vm9 = vcmp.lt.s32.totalorder %v1389_v23, 4800  ;;  %v2923_v36 = vmul.f32 %v2410_v27, %v2410_v27 }
 0x1d2   : > { %v3422_v39 = vadd.f32 %v3421_v33, %v2911_v26  ;;  %v878_v26 = vadd.s32 1888, %v3806_v2  ;;  %v2411_v33 = vsel %vm1899_vm7, %v360_v22, 0.0  ;;  %v1391_v35 = vadd.s32 %v3809_v4, %v877_v20  ;;  %v370_v20 = vld [vmem:[%s3801_s12 + $0x788] sm:$0xff] }
 0x1d3   : > { %vm1902_vm10 = vcmp.lt.s32.totalorder %v1390_v29, 4800  ;;  %v2924_v42 = vmul.f32 %v2411_v33, %v2411_v33 }
 0x1d4   : > { %v3423_v45 = vadd.f32 %v3422_v39, %v2912_v32  ;;  %v879_v32 = vadd.s32 1896, %v3806_v2  ;;  %v2412_v39 = vsel %vm1900_vm8, %v361_v28, 0.0  ;;  %v1392_v41 = vadd.s32 %v3809_v4, %v878_v26  ;;  %v371_v26 = vld [vmem:[%s3801_s12 + $0x790] sm:$0xff] }
 0x1d5   : > { %vm1903_vm11 = vcmp.lt.s32.totalorder %v1391_v35, 4800  ;;  %v2925_v48 = vmul.f32 %v2412_v39, %v2412_v39 }
 0x1d6   : > { %v3424_v51 = vadd.f32 %v3423_v45, %v2913_v38  ;;  %v880_v38 = vadd.s32 1904, %v3806_v2  ;;  %v2413_v45 = vsel %vm1901_vm9, %v362_v34, 0.0  ;;  %v1393_v47 = vadd.s32 %v3809_v4, %v879_v32  ;;  %v372_v32 = vld [vmem:[%s3801_s12 + $0x798] sm:$0xff] }
 0x1d7   : > { %vm1904_vm12 = vcmp.lt.s32.totalorder %v1392_v41, 4800  ;;  %v2926_v54 = vmul.f32 %v2413_v45, %v2413_v45 }
 0x1d8   : > { %v3425_v57 = vadd.f32 %v3424_v51, %v2914_v44  ;;  %v881_v44 = vadd.s32 1912, %v3806_v2  ;;  %v2414_v51 = vsel %vm1902_vm10, %v363_v40, 0.0  ;;  %v1394_v53 = vadd.s32 %v3809_v4, %v880_v38  ;;  %v373_v38 = vld [vmem:[%s3801_s12 + $0x7a0] sm:$0xff] }
 0x1d9   : > { %vm1905_vm13 = vcmp.lt.s32.totalorder %v1393_v47, 4800  ;;  %v2927_v60 = vmul.f32 %v2414_v51, %v2414_v51 }
 0x1da   : > { %v3426_v63 = vadd.f32 %v3425_v57, %v2915_v50  ;;  %v882_v50 = vadd.s32 1920, %v3806_v2  ;;  %v2415_v57 = vsel %vm1903_vm11, %v364_v46, 0.0  ;;  %v1395_v59 = vadd.s32 %v3809_v4, %v881_v44  ;;  %v374_v44 = vld [vmem:[%s3801_s12 + $0x7a8] sm:$0xff] }
 0x1db   : > { %vm1906_vm14 = vcmp.lt.s32.totalorder %v1394_v53, 4800  ;;  %v2928_v3 = vmul.f32 %v2415_v57, %v2415_v57 }
 0x1dc   : > { %v3427_v7 = vadd.f32 %v3426_v63, %v2916_v56  ;;  %v883_v56 = vadd.s32 1928, %v3806_v2  ;;  %v2416_v63 = vsel %vm1904_vm12, %v365_v52, 0.0  ;;  %v1396_v1 = vadd.s32 %v3809_v4, %v882_v50  ;;  %v375_v50 = vld [vmem:[%s3801_s12 + $0x7b0] sm:$0xff] }
 0x1dd   : > { %vm1907_vm15 = vcmp.lt.s32.totalorder %v1395_v59, 4800  ;;  %v2929_v10 = vmul.f32 %v2416_v63, %v2416_v63 }
 0x1de   : > { %v3428_v13 = vadd.f32 %v3427_v7, %v2917_v62  ;;  %v884_v62 = vadd.s32 1936, %v3806_v2  ;;  %v2417_v7 = vsel %vm1905_vm13, %v366_v58, 0.0  ;;  %v1397_v9 = vadd.s32 %v3809_v4, %v883_v56  ;;  %v376_v56 = vld [vmem:[%s3801_s12 + $0x7b8] sm:$0xff] }
 0x1df   : > { %vm1908_vm0 = vcmp.lt.s32.totalorder %v1396_v1, 4800  ;;  %v2930_v16 = vmul.f32 %v2417_v7, %v2417_v7 }
 0x1e0   : > { %v3429_v19 = vadd.f32 %v3428_v13, %v2918_v6  ;;  %v885_v6 = vadd.s32 1944, %v3806_v2  ;;  %v2418_v13 = vsel %vm1906_vm14, %v367_v0, 0.0  ;;  %v1398_v15 = vadd.s32 %v3809_v4, %v884_v62  ;;  %v377_v62 = vld [vmem:[%s3801_s12 + $0x7c0] sm:$0xff] }
 0x1e1   : > { %vm1909_vm1 = vcmp.lt.s32.totalorder %v1397_v9, 4800  ;;  %v2931_v22 = vmul.f32 %v2418_v13, %v2418_v13 }
 0x1e2   : > { %v3430_v25 = vadd.f32 %v3429_v19, %v2919_v12  ;;  %v886_v12 = vadd.s32 1952, %v3806_v2  ;;  %v2419_v19 = vsel %vm1907_vm15, %v368_v8, 0.0  ;;  %v1399_v21 = vadd.s32 %v3809_v4, %v885_v6  ;;  %v378_v6 = vld [vmem:[%s3801_s12 + $0x7c8] sm:$0xff] }
 0x1e3   : > { %vm1910_vm2 = vcmp.lt.s32.totalorder %v1398_v15, 4800  ;;  %v2932_v28 = vmul.f32 %v2419_v19, %v2419_v19 }
 0x1e4   : > { %v3431_v31 = vadd.f32 %v3430_v25, %v2920_v18  ;;  %v887_v18 = vadd.s32 1960, %v3806_v2  ;;  %v2420_v25 = vsel %vm1908_vm0, %v369_v14, 0.0  ;;  %v1400_v27 = vadd.s32 %v3809_v4, %v886_v12  ;;  %v379_v12 = vld [vmem:[%s3801_s12 + $0x7d0] sm:$0xff] }
 0x1e5   : > { %vm1911_vm3 = vcmp.lt.s32.totalorder %v1399_v21, 4800  ;;  %v2933_v34 = vmul.f32 %v2420_v25, %v2420_v25 }
 0x1e6   : > { %v3432_v37 = vadd.f32 %v3431_v31, %v2921_v24  ;;  %v888_v24 = vadd.s32 1968, %v3806_v2  ;;  %v2421_v31 = vsel %vm1909_vm1, %v370_v20, 0.0  ;;  %v1401_v33 = vadd.s32 %v3809_v4, %v887_v18  ;;  %v380_v18 = vld [vmem:[%s3801_s12 + $0x7d8] sm:$0xff] }
 0x1e7   : > { %vm1912_vm4 = vcmp.lt.s32.totalorder %v1400_v27, 4800  ;;  %v2934_v40 = vmul.f32 %v2421_v31, %v2421_v31 }
 0x1e8   : > { %v3433_v43 = vadd.f32 %v3432_v37, %v2922_v30  ;;  %v889_v30 = vadd.s32 1976, %v3806_v2  ;;  %v2422_v37 = vsel %vm1910_vm2, %v371_v26, 0.0  ;;  %v1402_v39 = vadd.s32 %v3809_v4, %v888_v24  ;;  %v381_v24 = vld [vmem:[%s3801_s12 + $0x7e0] sm:$0xff] }
 0x1e9   : > { %vm1913_vm5 = vcmp.lt.s32.totalorder %v1401_v33, 4800  ;;  %v2935_v46 = vmul.f32 %v2422_v37, %v2422_v37 }
 0x1ea   : > { %v3434_v49 = vadd.f32 %v3433_v43, %v2923_v36  ;;  %v890_v36 = vadd.s32 1984, %v3806_v2  ;;  %v2423_v43 = vsel %vm1911_vm3, %v372_v32, 0.0  ;;  %v1403_v45 = vadd.s32 %v3809_v4, %v889_v30  ;;  %v382_v30 = vld [vmem:[%s3801_s12 + $0x7e8] sm:$0xff] }
 0x1eb   : > { %vm1914_vm6 = vcmp.lt.s32.totalorder %v1402_v39, 4800  ;;  %v2936_v52 = vmul.f32 %v2423_v43, %v2423_v43 }
 0x1ec   : > { %v3435_v55 = vadd.f32 %v3434_v49, %v2924_v42  ;;  %v891_v42 = vadd.s32 1992, %v3806_v2  ;;  %v2424_v49 = vsel %vm1912_vm4, %v373_v38, 0.0  ;;  %v1404_v51 = vadd.s32 %v3809_v4, %v890_v36  ;;  %v383_v36 = vld [vmem:[%s3801_s12 + $0x7f0] sm:$0xff] }
 0x1ed   : > { %vm1915_vm7 = vcmp.lt.s32.totalorder %v1403_v45, 4800  ;;  %v2937_v58 = vmul.f32 %v2424_v49, %v2424_v49 }
 0x1ee   : > { %v3436_v61 = vadd.f32 %v3435_v55, %v2925_v48  ;;  %v892_v48 = vadd.s32 2000, %v3806_v2  ;;  %v2425_v55 = vsel %vm1913_vm5, %v374_v44, 0.0  ;;  %v1405_v57 = vadd.s32 %v3809_v4, %v891_v42  ;;  %v384_v42 = vld [vmem:[%s3801_s12 + $0x7f8] sm:$0xff] }
 0x1ef   : > { %vm1916_vm8 = vcmp.lt.s32.totalorder %v1404_v51, 4800  ;;  %v2938_v0 = vmul.f32 %v2425_v55, %v2425_v55 }
 0x1f0   : > { %v3437_v5 = vadd.f32 %v3436_v61, %v2926_v54  ;;  %v893_v54 = vadd.s32 2008, %v3806_v2  ;;  %v2426_v61 = vsel %vm1914_vm6, %v375_v50, 0.0  ;;  %v1406_v63 = vadd.s32 %v3809_v4, %v892_v48  ;;  %v385_v48 = vld [vmem:[%s3801_s12 + $0x800] sm:$0xff] }
 0x1f1   : > { %vm1917_vm9 = vcmp.lt.s32.totalorder %v1405_v57, 4800  ;;  %v2939_v8 = vmul.f32 %v2426_v61, %v2426_v61 }
 0x1f2   : > { %v3438_v11 = vadd.f32 %v3437_v5, %v2927_v60  ;;  %v894_v60 = vadd.s32 2016, %v3806_v2  ;;  %v2427_v5 = vsel %vm1915_vm7, %v376_v56, 0.0  ;;  %v1407_v7 = vadd.s32 %v3809_v4, %v893_v54  ;;  %v386_v54 = vld [vmem:[%s3801_s12 + $0x808] sm:$0xff] }
 0x1f3   : > { %vm1918_vm10 = vcmp.lt.s32.totalorder %v1406_v63, 4800  ;;  %v2940_v14 = vmul.f32 %v2427_v5, %v2427_v5 }
 0x1f4   : > { %v3439_v17 = vadd.f32 %v3438_v11, %v2928_v3  ;;  %v895_v3 = vadd.s32 2024, %v3806_v2  ;;  %v2428_v11 = vsel %vm1916_vm8, %v377_v62, 0.0  ;;  %v1408_v13 = vadd.s32 %v3809_v4, %v894_v60  ;;  %v387_v60 = vld [vmem:[%s3801_s12 + $0x810] sm:$0xff] }
 0x1f5   : > { %vm1919_vm11 = vcmp.lt.s32.totalorder %v1407_v7, 4800  ;;  %v2941_v20 = vmul.f32 %v2428_v11, %v2428_v11 }
 0x1f6   : > { %v3440_v23 = vadd.f32 %v3439_v17, %v2929_v10  ;;  %v896_v10 = vadd.s32 2032, %v3806_v2  ;;  %v2429_v17 = vsel %vm1917_vm9, %v378_v6, 0.0  ;;  %v1409_v19 = vadd.s32 %v3809_v4, %v895_v3  ;;  %v388_v3 = vld [vmem:[%s3801_s12 + $0x818] sm:$0xff] }
 0x1f7   : > { %vm1920_vm12 = vcmp.lt.s32.totalorder %v1408_v13, 4800  ;;  %v2942_v26 = vmul.f32 %v2429_v17, %v2429_v17 }
 0x1f8   : > { %v3441_v29 = vadd.f32 %v3440_v23, %v2930_v16  ;;  %v897_v16 = vadd.s32 2040, %v3806_v2  ;;  %v2430_v23 = vsel %vm1918_vm10, %v379_v12, 0.0  ;;  %v1410_v25 = vadd.s32 %v3809_v4, %v896_v10  ;;  %v389_v10 = vld [vmem:[%s3801_s12 + $0x820] sm:$0xff] }
 0x1f9   : > { %vm1921_vm13 = vcmp.lt.s32.totalorder %v1409_v19, 4800  ;;  %v2943_v32 = vmul.f32 %v2430_v23, %v2430_v23 }
 0x1fa   : > { %v3442_v35 = vadd.f32 %v3441_v29, %v2931_v22  ;;  %v898_v22 = vadd.s32 2048, %v3806_v2  ;;  %v2431_v29 = vsel %vm1919_vm11, %v380_v18, 0.0  ;;  %v1411_v31 = vadd.s32 %v3809_v4, %v897_v16  ;;  %v390_v16 = vld [vmem:[%s3801_s12 + $0x828] sm:$0xff] }
 0x1fb   : > { %vm1922_vm14 = vcmp.lt.s32.totalorder %v1410_v25, 4800  ;;  %v2944_v38 = vmul.f32 %v2431_v29, %v2431_v29 }
 0x1fc   : > { %v3443_v41 = vadd.f32 %v3442_v35, %v2932_v28  ;;  %v899_v28 = vadd.s32 2056, %v3806_v2  ;;  %v2432_v35 = vsel %vm1920_vm12, %v381_v24, 0.0  ;;  %v1412_v37 = vadd.s32 %v3809_v4, %v898_v22  ;;  %v391_v22 = vld [vmem:[%s3801_s12 + $0x830] sm:$0xff] }
 0x1fd   : > { %vm1923_vm15 = vcmp.lt.s32.totalorder %v1411_v31, 4800  ;;  %v2945_v44 = vmul.f32 %v2432_v35, %v2432_v35 }
 0x1fe   : > { %v3444_v47 = vadd.f32 %v3443_v41, %v2933_v34  ;;  %v900_v34 = vadd.s32 2064, %v3806_v2  ;;  %v2433_v41 = vsel %vm1921_vm13, %v382_v30, 0.0  ;;  %v1413_v43 = vadd.s32 %v3809_v4, %v899_v28  ;;  %v392_v28 = vld [vmem:[%s3801_s12 + $0x838] sm:$0xff] }
 0x1ff   : > { %vm1924_vm0 = vcmp.lt.s32.totalorder %v1412_v37, 4800  ;;  %v2946_v50 = vmul.f32 %v2433_v41, %v2433_v41 }
 0x200   : > { %v3445_v53 = vadd.f32 %v3444_v47, %v2934_v40  ;;  %v901_v40 = vadd.s32 2072, %v3806_v2  ;;  %v2434_v47 = vsel %vm1922_vm14, %v383_v36, 0.0  ;;  %v1414_v49 = vadd.s32 %v3809_v4, %v900_v34  ;;  %v393_v34 = vld [vmem:[%s3801_s12 + $0x840] sm:$0xff] }
 0x201   : > { %vm1925_vm1 = vcmp.lt.s32.totalorder %v1413_v43, 4800  ;;  %v2947_v56 = vmul.f32 %v2434_v47, %v2434_v47 }
 0x202   : > { %v3446_v59 = vadd.f32 %v3445_v53, %v2935_v46  ;;  %v902_v46 = vadd.s32 2080, %v3806_v2  ;;  %v2435_v53 = vsel %vm1923_vm15, %v384_v42, 0.0  ;;  %v1415_v55 = vadd.s32 %v3809_v4, %v901_v40  ;;  %v394_v40 = vld [vmem:[%s3801_s12 + $0x848] sm:$0xff] }
 0x203   : > { %vm1926_vm2 = vcmp.lt.s32.totalorder %v1414_v49, 4800  ;;  %v2948_v62 = vmul.f32 %v2435_v53, %v2435_v53 }
 0x204   : > { %v3447_v1 = vadd.f32 %v3446_v59, %v2936_v52  ;;  %v903_v52 = vadd.s32 2088, %v3806_v2  ;;  %v2436_v59 = vsel %vm1924_vm0, %v385_v48, 0.0  ;;  %v1416_v61 = vadd.s32 %v3809_v4, %v902_v46  ;;  %v395_v46 = vld [vmem:[%s3801_s12 + $0x850] sm:$0xff] }
 0x205   : > { %vm1927_vm3 = vcmp.lt.s32.totalorder %v1415_v55, 4800  ;;  %v2949_v6 = vmul.f32 %v2436_v59, %v2436_v59 }
 0x206   : > { %v3448_v9 = vadd.f32 %v3447_v1, %v2937_v58  ;;  %v904_v58 = vadd.s32 2096, %v3806_v2  ;;  %v2437_v1 = vsel %vm1925_vm1, %v386_v54, 0.0  ;;  %v1417_v5 = vadd.s32 %v3809_v4, %v903_v52  ;;  %v396_v52 = vld [vmem:[%s3801_s12 + $0x858] sm:$0xff] }
 0x207   : > { %vm1928_vm4 = vcmp.lt.s32.totalorder %v1416_v61, 4800  ;;  %v2950_v12 = vmul.f32 %v2437_v1, %v2437_v1 }
 0x208   : > { %v3449_v15 = vadd.f32 %v3448_v9, %v2938_v0  ;;  %v905_v0 = vadd.s32 2104, %v3806_v2  ;;  %v2438_v9 = vsel %vm1926_vm2, %v387_v60, 0.0  ;;  %v1418_v11 = vadd.s32 %v3809_v4, %v904_v58  ;;  %v397_v58 = vld [vmem:[%s3801_s12 + $0x860] sm:$0xff] }
 0x209   : > { %vm1929_vm5 = vcmp.lt.s32.totalorder %v1417_v5, 4800  ;;  %v2951_v18 = vmul.f32 %v2438_v9, %v2438_v9 }
 0x20a   : > { %v3450_v21 = vadd.f32 %v3449_v15, %v2939_v8  ;;  %v906_v8 = vadd.s32 2112, %v3806_v2  ;;  %v2439_v15 = vsel %vm1927_vm3, %v388_v3, 0.0  ;;  %v1419_v17 = vadd.s32 %v3809_v4, %v905_v0  ;;  %v398_v0 = vld [vmem:[%s3801_s12 + $0x868] sm:$0xff] }
 0x20b   : > { %vm1930_vm6 = vcmp.lt.s32.totalorder %v1418_v11, 4800  ;;  %v2952_v24 = vmul.f32 %v2439_v15, %v2439_v15 }
 0x20c   : > { %v3451_v27 = vadd.f32 %v3450_v21, %v2940_v14  ;;  %v907_v14 = vadd.s32 2120, %v3806_v2  ;;  %v2440_v21 = vsel %vm1928_vm4, %v389_v10, 0.0  ;;  %v1420_v23 = vadd.s32 %v3809_v4, %v906_v8  ;;  %v399_v8 = vld [vmem:[%s3801_s12 + $0x870] sm:$0xff] }
 0x20d   : > { %vm1931_vm7 = vcmp.lt.s32.totalorder %v1419_v17, 4800  ;;  %v2953_v30 = vmul.f32 %v2440_v21, %v2440_v21 }
 0x20e   : > { %v3452_v33 = vadd.f32 %v3451_v27, %v2941_v20  ;;  %v908_v20 = vadd.s32 2128, %v3806_v2  ;;  %v2441_v27 = vsel %vm1929_vm5, %v390_v16, 0.0  ;;  %v1421_v29 = vadd.s32 %v3809_v4, %v907_v14  ;;  %v400_v14 = vld [vmem:[%s3801_s12 + $0x878] sm:$0xff] }
 0x20f   : > { %vm1932_vm8 = vcmp.lt.s32.totalorder %v1420_v23, 4800  ;;  %v2954_v36 = vmul.f32 %v2441_v27, %v2441_v27 }
 0x210   : > { %v3453_v39 = vadd.f32 %v3452_v33, %v2942_v26  ;;  %v909_v26 = vadd.s32 2136, %v3806_v2  ;;  %v2442_v33 = vsel %vm1930_vm6, %v391_v22, 0.0  ;;  %v1422_v35 = vadd.s32 %v3809_v4, %v908_v20  ;;  %v401_v20 = vld [vmem:[%s3801_s12 + $0x880] sm:$0xff] }
 0x211   : > { %vm1933_vm9 = vcmp.lt.s32.totalorder %v1421_v29, 4800  ;;  %v2955_v42 = vmul.f32 %v2442_v33, %v2442_v33 }
 0x212   : > { %v3454_v45 = vadd.f32 %v3453_v39, %v2943_v32  ;;  %v910_v32 = vadd.s32 2144, %v3806_v2  ;;  %v2443_v39 = vsel %vm1931_vm7, %v392_v28, 0.0  ;;  %v1423_v41 = vadd.s32 %v3809_v4, %v909_v26  ;;  %v402_v26 = vld [vmem:[%s3801_s12 + $0x888] sm:$0xff] }
 0x213   : > { %vm1934_vm10 = vcmp.lt.s32.totalorder %v1422_v35, 4800  ;;  %v2956_v48 = vmul.f32 %v2443_v39, %v2443_v39 }
 0x214   : > { %v3455_v51 = vadd.f32 %v3454_v45, %v2944_v38  ;;  %v911_v38 = vadd.s32 2152, %v3806_v2  ;;  %v2444_v45 = vsel %vm1932_vm8, %v393_v34, 0.0  ;;  %v1424_v47 = vadd.s32 %v3809_v4, %v910_v32  ;;  %v403_v32 = vld [vmem:[%s3801_s12 + $0x890] sm:$0xff] }
 0x215   : > { %vm1935_vm11 = vcmp.lt.s32.totalorder %v1423_v41, 4800  ;;  %v2957_v54 = vmul.f32 %v2444_v45, %v2444_v45 }
 0x216   : > { %v3456_v57 = vadd.f32 %v3455_v51, %v2945_v44  ;;  %v912_v44 = vadd.s32 2160, %v3806_v2  ;;  %v2445_v51 = vsel %vm1933_vm9, %v394_v40, 0.0  ;;  %v1425_v53 = vadd.s32 %v3809_v4, %v911_v38  ;;  %v404_v38 = vld [vmem:[%s3801_s12 + $0x898] sm:$0xff] }
 0x217   : > { %vm1936_vm12 = vcmp.lt.s32.totalorder %v1424_v47, 4800  ;;  %v2958_v60 = vmul.f32 %v2445_v51, %v2445_v51 }
 0x218   : > { %v3457_v63 = vadd.f32 %v3456_v57, %v2946_v50  ;;  %v913_v50 = vadd.s32 2168, %v3806_v2  ;;  %v2446_v57 = vsel %vm1934_vm10, %v395_v46, 0.0  ;;  %v1426_v59 = vadd.s32 %v3809_v4, %v912_v44  ;;  %v405_v44 = vld [vmem:[%s3801_s12 + $0x8a0] sm:$0xff] }
 0x219   : > { %vm1937_vm13 = vcmp.lt.s32.totalorder %v1425_v53, 4800  ;;  %v2959_v3 = vmul.f32 %v2446_v57, %v2446_v57 }
 0x21a   : > { %v3458_v7 = vadd.f32 %v3457_v63, %v2947_v56  ;;  %v914_v56 = vadd.s32 2176, %v3806_v2  ;;  %v2447_v63 = vsel %vm1935_vm11, %v396_v52, 0.0  ;;  %v1427_v1 = vadd.s32 %v3809_v4, %v913_v50  ;;  %v406_v50 = vld [vmem:[%s3801_s12 + $0x8a8] sm:$0xff] }
 0x21b   : > { %vm1938_vm14 = vcmp.lt.s32.totalorder %v1426_v59, 4800  ;;  %v2960_v10 = vmul.f32 %v2447_v63, %v2447_v63 }
 0x21c   : > { %v3459_v13 = vadd.f32 %v3458_v7, %v2948_v62  ;;  %v915_v62 = vadd.s32 2184, %v3806_v2  ;;  %v2448_v7 = vsel %vm1936_vm12, %v397_v58, 0.0  ;;  %v1428_v9 = vadd.s32 %v3809_v4, %v914_v56  ;;  %v407_v56 = vld [vmem:[%s3801_s12 + $0x8b0] sm:$0xff] }
 0x21d   : > { %vm1939_vm15 = vcmp.lt.s32.totalorder %v1427_v1, 4800  ;;  %v2961_v16 = vmul.f32 %v2448_v7, %v2448_v7 }
 0x21e   : > { %v3460_v19 = vadd.f32 %v3459_v13, %v2949_v6  ;;  %v916_v6 = vadd.s32 2192, %v3806_v2  ;;  %v2449_v13 = vsel %vm1937_vm13, %v398_v0, 0.0  ;;  %v1429_v15 = vadd.s32 %v3809_v4, %v915_v62  ;;  %v408_v62 = vld [vmem:[%s3801_s12 + $0x8b8] sm:$0xff] }
 0x21f   : > { %vm1940_vm0 = vcmp.lt.s32.totalorder %v1428_v9, 4800  ;;  %v2962_v22 = vmul.f32 %v2449_v13, %v2449_v13 }
 0x220   : > { %v3461_v25 = vadd.f32 %v3460_v19, %v2950_v12  ;;  %v917_v12 = vadd.s32 2200, %v3806_v2  ;;  %v2450_v19 = vsel %vm1938_vm14, %v399_v8, 0.0  ;;  %v1430_v21 = vadd.s32 %v3809_v4, %v916_v6  ;;  %v409_v6 = vld [vmem:[%s3801_s12 + $0x8c0] sm:$0xff] }
 0x221   : > { %vm1941_vm1 = vcmp.lt.s32.totalorder %v1429_v15, 4800  ;;  %v2963_v28 = vmul.f32 %v2450_v19, %v2450_v19 }
 0x222   : > { %v3462_v31 = vadd.f32 %v3461_v25, %v2951_v18  ;;  %v918_v18 = vadd.s32 2208, %v3806_v2  ;;  %v2451_v25 = vsel %vm1939_vm15, %v400_v14, 0.0  ;;  %v1431_v27 = vadd.s32 %v3809_v4, %v917_v12  ;;  %v410_v12 = vld [vmem:[%s3801_s12 + $0x8c8] sm:$0xff] }
 0x223   : > { %vm1942_vm2 = vcmp.lt.s32.totalorder %v1430_v21, 4800  ;;  %v2964_v34 = vmul.f32 %v2451_v25, %v2451_v25 }
 0x224   : > { %v3463_v37 = vadd.f32 %v3462_v31, %v2952_v24  ;;  %v919_v24 = vadd.s32 2216, %v3806_v2  ;;  %v2452_v31 = vsel %vm1940_vm0, %v401_v20, 0.0  ;;  %v1432_v33 = vadd.s32 %v3809_v4, %v918_v18  ;;  %v411_v18 = vld [vmem:[%s3801_s12 + $0x8d0] sm:$0xff] }
 0x225   : > { %vm1943_vm3 = vcmp.lt.s32.totalorder %v1431_v27, 4800  ;;  %v2965_v40 = vmul.f32 %v2452_v31, %v2452_v31 }
 0x226   : > { %v3464_v43 = vadd.f32 %v3463_v37, %v2953_v30  ;;  %v920_v30 = vadd.s32 2224, %v3806_v2  ;;  %v2453_v37 = vsel %vm1941_vm1, %v402_v26, 0.0  ;;  %v1433_v39 = vadd.s32 %v3809_v4, %v919_v24  ;;  %v412_v24 = vld [vmem:[%s3801_s12 + $0x8d8] sm:$0xff] }
 0x227   : > { %vm1944_vm4 = vcmp.lt.s32.totalorder %v1432_v33, 4800  ;;  %v2966_v46 = vmul.f32 %v2453_v37, %v2453_v37 }
 0x228   : > { %v3465_v49 = vadd.f32 %v3464_v43, %v2954_v36  ;;  %v921_v36 = vadd.s32 2232, %v3806_v2  ;;  %v2454_v43 = vsel %vm1942_vm2, %v403_v32, 0.0  ;;  %v1434_v45 = vadd.s32 %v3809_v4, %v920_v30  ;;  %v413_v30 = vld [vmem:[%s3801_s12 + $0x8e0] sm:$0xff] }
 0x229   : > { %vm1945_vm5 = vcmp.lt.s32.totalorder %v1433_v39, 4800  ;;  %v2967_v52 = vmul.f32 %v2454_v43, %v2454_v43 }
 0x22a   : > { %v3466_v55 = vadd.f32 %v3465_v49, %v2955_v42  ;;  %v922_v42 = vadd.s32 2240, %v3806_v2  ;;  %v2455_v49 = vsel %vm1943_vm3, %v404_v38, 0.0  ;;  %v1435_v51 = vadd.s32 %v3809_v4, %v921_v36  ;;  %v414_v36 = vld [vmem:[%s3801_s12 + $0x8e8] sm:$0xff] }
 0x22b   : > { %vm1946_vm6 = vcmp.lt.s32.totalorder %v1434_v45, 4800  ;;  %v2968_v58 = vmul.f32 %v2455_v49, %v2455_v49 }
 0x22c   : > { %v3467_v61 = vadd.f32 %v3466_v55, %v2956_v48  ;;  %v923_v48 = vadd.s32 2248, %v3806_v2  ;;  %v2456_v55 = vsel %vm1944_vm4, %v405_v44, 0.0  ;;  %v1436_v57 = vadd.s32 %v3809_v4, %v922_v42  ;;  %v415_v42 = vld [vmem:[%s3801_s12 + $0x8f0] sm:$0xff] }
 0x22d   : > { %vm1947_vm7 = vcmp.lt.s32.totalorder %v1435_v51, 4800  ;;  %v2969_v0 = vmul.f32 %v2456_v55, %v2456_v55 }
 0x22e   : > { %v3468_v5 = vadd.f32 %v3467_v61, %v2957_v54  ;;  %v924_v54 = vadd.s32 2256, %v3806_v2  ;;  %v2457_v61 = vsel %vm1945_vm5, %v406_v50, 0.0  ;;  %v1437_v63 = vadd.s32 %v3809_v4, %v923_v48  ;;  %v416_v48 = vld [vmem:[%s3801_s12 + $0x8f8] sm:$0xff] }
 0x22f   : > { %vm1948_vm8 = vcmp.lt.s32.totalorder %v1436_v57, 4800  ;;  %v2970_v8 = vmul.f32 %v2457_v61, %v2457_v61 }
 0x230   : > { %v3469_v11 = vadd.f32 %v3468_v5, %v2958_v60  ;;  %v925_v60 = vadd.s32 2264, %v3806_v2  ;;  %v2458_v5 = vsel %vm1946_vm6, %v407_v56, 0.0  ;;  %v1438_v7 = vadd.s32 %v3809_v4, %v924_v54  ;;  %v417_v54 = vld [vmem:[%s3801_s12 + $0x900] sm:$0xff] }
 0x231   : > { %vm1949_vm9 = vcmp.lt.s32.totalorder %v1437_v63, 4800  ;;  %v2971_v14 = vmul.f32 %v2458_v5, %v2458_v5 }
 0x232   : > { %v3470_v17 = vadd.f32 %v3469_v11, %v2959_v3  ;;  %v926_v3 = vadd.s32 2272, %v3806_v2  ;;  %v2459_v11 = vsel %vm1947_vm7, %v408_v62, 0.0  ;;  %v1439_v13 = vadd.s32 %v3809_v4, %v925_v60  ;;  %v418_v60 = vld [vmem:[%s3801_s12 + $0x908] sm:$0xff] }
 0x233   : > { %vm1950_vm10 = vcmp.lt.s32.totalorder %v1438_v7, 4800  ;;  %v2972_v20 = vmul.f32 %v2459_v11, %v2459_v11 }
 0x234   : > { %v3471_v23 = vadd.f32 %v3470_v17, %v2960_v10  ;;  %v927_v10 = vadd.s32 2280, %v3806_v2  ;;  %v2460_v17 = vsel %vm1948_vm8, %v409_v6, 0.0  ;;  %v1440_v19 = vadd.s32 %v3809_v4, %v926_v3  ;;  %v419_v3 = vld [vmem:[%s3801_s12 + $0x910] sm:$0xff] }
 0x235   : > { %vm1951_vm11 = vcmp.lt.s32.totalorder %v1439_v13, 4800  ;;  %v2973_v26 = vmul.f32 %v2460_v17, %v2460_v17 }
 0x236   : > { %v3472_v29 = vadd.f32 %v3471_v23, %v2961_v16  ;;  %v928_v16 = vadd.s32 2288, %v3806_v2  ;;  %v2461_v23 = vsel %vm1949_vm9, %v410_v12, 0.0  ;;  %v1441_v25 = vadd.s32 %v3809_v4, %v927_v10  ;;  %v420_v10 = vld [vmem:[%s3801_s12 + $0x918] sm:$0xff] }
 0x237   : > { %vm1952_vm12 = vcmp.lt.s32.totalorder %v1440_v19, 4800  ;;  %v2974_v32 = vmul.f32 %v2461_v23, %v2461_v23 }
 0x238   : > { %v3473_v35 = vadd.f32 %v3472_v29, %v2962_v22  ;;  %v929_v22 = vadd.s32 2296, %v3806_v2  ;;  %v2462_v29 = vsel %vm1950_vm10, %v411_v18, 0.0  ;;  %v1442_v31 = vadd.s32 %v3809_v4, %v928_v16  ;;  %v421_v16 = vld [vmem:[%s3801_s12 + $0x920] sm:$0xff] }
 0x239   : > { %vm1953_vm13 = vcmp.lt.s32.totalorder %v1441_v25, 4800  ;;  %v2975_v38 = vmul.f32 %v2462_v29, %v2462_v29 }
 0x23a   : > { %v3474_v41 = vadd.f32 %v3473_v35, %v2963_v28  ;;  %v930_v28 = vadd.s32 2304, %v3806_v2  ;;  %v2463_v35 = vsel %vm1951_vm11, %v412_v24, 0.0  ;;  %v1443_v37 = vadd.s32 %v3809_v4, %v929_v22  ;;  %v422_v22 = vld [vmem:[%s3801_s12 + $0x928] sm:$0xff] }
 0x23b   : > { %vm1954_vm14 = vcmp.lt.s32.totalorder %v1442_v31, 4800  ;;  %v2976_v44 = vmul.f32 %v2463_v35, %v2463_v35 }
 0x23c   : > { %v3475_v47 = vadd.f32 %v3474_v41, %v2964_v34  ;;  %v931_v34 = vadd.s32 2312, %v3806_v2  ;;  %v2464_v41 = vsel %vm1952_vm12, %v413_v30, 0.0  ;;  %v1444_v43 = vadd.s32 %v3809_v4, %v930_v28  ;;  %v423_v28 = vld [vmem:[%s3801_s12 + $0x930] sm:$0xff] }
 0x23d   : > { %vm1955_vm15 = vcmp.lt.s32.totalorder %v1443_v37, 4800  ;;  %v2977_v50 = vmul.f32 %v2464_v41, %v2464_v41 }
 0x23e   : > { %v3476_v53 = vadd.f32 %v3475_v47, %v2965_v40  ;;  %v932_v40 = vadd.s32 2320, %v3806_v2  ;;  %v2465_v47 = vsel %vm1953_vm13, %v414_v36, 0.0  ;;  %v1445_v49 = vadd.s32 %v3809_v4, %v931_v34  ;;  %v424_v34 = vld [vmem:[%s3801_s12 + $0x938] sm:$0xff] }
 0x23f   : > { %vm1956_vm0 = vcmp.lt.s32.totalorder %v1444_v43, 4800  ;;  %v2978_v56 = vmul.f32 %v2465_v47, %v2465_v47 }
 0x240   : > { %v3477_v59 = vadd.f32 %v3476_v53, %v2966_v46  ;;  %v933_v46 = vadd.s32 2328, %v3806_v2  ;;  %v2466_v53 = vsel %vm1954_vm14, %v415_v42, 0.0  ;;  %v1446_v55 = vadd.s32 %v3809_v4, %v932_v40  ;;  %v425_v40 = vld [vmem:[%s3801_s12 + $0x940] sm:$0xff] }
 0x241   : > { %vm1957_vm1 = vcmp.lt.s32.totalorder %v1445_v49, 4800  ;;  %v2979_v62 = vmul.f32 %v2466_v53, %v2466_v53 }
 0x242   : > { %v3478_v1 = vadd.f32 %v3477_v59, %v2967_v52  ;;  %v934_v52 = vadd.s32 2336, %v3806_v2  ;;  %v2467_v59 = vsel %vm1955_vm15, %v416_v48, 0.0  ;;  %v1447_v61 = vadd.s32 %v3809_v4, %v933_v46  ;;  %v426_v46 = vld [vmem:[%s3801_s12 + $0x948] sm:$0xff] }
 0x243   : > { %vm1958_vm2 = vcmp.lt.s32.totalorder %v1446_v55, 4800  ;;  %v2980_v6 = vmul.f32 %v2467_v59, %v2467_v59 }
 0x244   : > { %v3479_v9 = vadd.f32 %v3478_v1, %v2968_v58  ;;  %v935_v58 = vadd.s32 2344, %v3806_v2  ;;  %v2468_v1 = vsel %vm1956_vm0, %v417_v54, 0.0  ;;  %v1448_v5 = vadd.s32 %v3809_v4, %v934_v52  ;;  %v427_v52 = vld [vmem:[%s3801_s12 + $0x950] sm:$0xff] }
 0x245   : > { %vm1959_vm3 = vcmp.lt.s32.totalorder %v1447_v61, 4800  ;;  %v2981_v12 = vmul.f32 %v2468_v1, %v2468_v1 }
 0x246   : > { %v3480_v15 = vadd.f32 %v3479_v9, %v2969_v0  ;;  %v936_v0 = vadd.s32 2352, %v3806_v2  ;;  %v2469_v9 = vsel %vm1957_vm1, %v418_v60, 0.0  ;;  %v1449_v11 = vadd.s32 %v3809_v4, %v935_v58  ;;  %v428_v58 = vld [vmem:[%s3801_s12 + $0x958] sm:$0xff] }
 0x247   : > { %vm1960_vm4 = vcmp.lt.s32.totalorder %v1448_v5, 4800  ;;  %v2982_v18 = vmul.f32 %v2469_v9, %v2469_v9 }
 0x248   : > { %v3481_v21 = vadd.f32 %v3480_v15, %v2970_v8  ;;  %v937_v8 = vadd.s32 2360, %v3806_v2  ;;  %v2470_v15 = vsel %vm1958_vm2, %v419_v3, 0.0  ;;  %v1450_v17 = vadd.s32 %v3809_v4, %v936_v0  ;;  %v429_v0 = vld [vmem:[%s3801_s12 + $0x960] sm:$0xff] }
 0x249   : > { %vm1961_vm5 = vcmp.lt.s32.totalorder %v1449_v11, 4800  ;;  %v2983_v24 = vmul.f32 %v2470_v15, %v2470_v15 }
 0x24a   : > { %v3482_v27 = vadd.f32 %v3481_v21, %v2971_v14  ;;  %v938_v14 = vadd.s32 2368, %v3806_v2  ;;  %v2471_v21 = vsel %vm1959_vm3, %v420_v10, 0.0  ;;  %v1451_v23 = vadd.s32 %v3809_v4, %v937_v8  ;;  %v430_v8 = vld [vmem:[%s3801_s12 + $0x968] sm:$0xff] }
 0x24b   : > { %vm1962_vm6 = vcmp.lt.s32.totalorder %v1450_v17, 4800  ;;  %v2984_v30 = vmul.f32 %v2471_v21, %v2471_v21 }
 0x24c   : > { %v3483_v33 = vadd.f32 %v3482_v27, %v2972_v20  ;;  %v939_v20 = vadd.s32 2376, %v3806_v2  ;;  %v2472_v27 = vsel %vm1960_vm4, %v421_v16, 0.0  ;;  %v1452_v29 = vadd.s32 %v3809_v4, %v938_v14  ;;  %v431_v14 = vld [vmem:[%s3801_s12 + $0x970] sm:$0xff] }
 0x24d   : > { %vm1963_vm7 = vcmp.lt.s32.totalorder %v1451_v23, 4800  ;;  %v2985_v36 = vmul.f32 %v2472_v27, %v2472_v27 }
 0x24e   : > { %v3484_v39 = vadd.f32 %v3483_v33, %v2973_v26  ;;  %v940_v26 = vadd.s32 2384, %v3806_v2  ;;  %v2473_v33 = vsel %vm1961_vm5, %v422_v22, 0.0  ;;  %v1453_v35 = vadd.s32 %v3809_v4, %v939_v20  ;;  %v432_v20 = vld [vmem:[%s3801_s12 + $0x978] sm:$0xff] }
 0x24f   : > { %vm1964_vm8 = vcmp.lt.s32.totalorder %v1452_v29, 4800  ;;  %v2986_v42 = vmul.f32 %v2473_v33, %v2473_v33 }
 0x250   : > { %v3485_v45 = vadd.f32 %v3484_v39, %v2974_v32  ;;  %v941_v32 = vadd.s32 2392, %v3806_v2  ;;  %v2474_v39 = vsel %vm1962_vm6, %v423_v28, 0.0  ;;  %v1454_v41 = vadd.s32 %v3809_v4, %v940_v26  ;;  %v433_v26 = vld [vmem:[%s3801_s12 + $0x980] sm:$0xff] }
 0x251   : > { %vm1965_vm9 = vcmp.lt.s32.totalorder %v1453_v35, 4800  ;;  %v2987_v48 = vmul.f32 %v2474_v39, %v2474_v39 }
 0x252   : > { %v3486_v51 = vadd.f32 %v3485_v45, %v2975_v38  ;;  %v942_v38 = vadd.s32 2400, %v3806_v2  ;;  %v2475_v45 = vsel %vm1963_vm7, %v424_v34, 0.0  ;;  %v1455_v47 = vadd.s32 %v3809_v4, %v941_v32  ;;  %v434_v32 = vld [vmem:[%s3801_s12 + $0x988] sm:$0xff] }
 0x253   : > { %vm1966_vm10 = vcmp.lt.s32.totalorder %v1454_v41, 4800  ;;  %v2988_v54 = vmul.f32 %v2475_v45, %v2475_v45 }
 0x254   : > { %v3487_v57 = vadd.f32 %v3486_v51, %v2976_v44  ;;  %v943_v44 = vadd.s32 2408, %v3806_v2  ;;  %v2476_v51 = vsel %vm1964_vm8, %v425_v40, 0.0  ;;  %v1456_v53 = vadd.s32 %v3809_v4, %v942_v38  ;;  %v435_v38 = vld [vmem:[%s3801_s12 + $0x990] sm:$0xff] }
 0x255   : > { %vm1967_vm11 = vcmp.lt.s32.totalorder %v1455_v47, 4800  ;;  %v2989_v60 = vmul.f32 %v2476_v51, %v2476_v51 }
 0x256   : > { %v3488_v63 = vadd.f32 %v3487_v57, %v2977_v50  ;;  %v944_v50 = vadd.s32 2416, %v3806_v2  ;;  %v2477_v57 = vsel %vm1965_vm9, %v426_v46, 0.0  ;;  %v1457_v59 = vadd.s32 %v3809_v4, %v943_v44  ;;  %v436_v44 = vld [vmem:[%s3801_s12 + $0x998] sm:$0xff] }
 0x257   : > { %vm1968_vm12 = vcmp.lt.s32.totalorder %v1456_v53, 4800  ;;  %v2990_v3 = vmul.f32 %v2477_v57, %v2477_v57 }
 0x258   : > { %v3489_v7 = vadd.f32 %v3488_v63, %v2978_v56  ;;  %v945_v56 = vadd.s32 2424, %v3806_v2  ;;  %v2478_v63 = vsel %vm1966_vm10, %v427_v52, 0.0  ;;  %v1458_v1 = vadd.s32 %v3809_v4, %v944_v50  ;;  %v437_v50 = vld [vmem:[%s3801_s12 + $0x9a0] sm:$0xff] }
 0x259   : > { %vm1969_vm13 = vcmp.lt.s32.totalorder %v1457_v59, 4800  ;;  %v2991_v10 = vmul.f32 %v2478_v63, %v2478_v63 }
 0x25a   : > { %v3490_v13 = vadd.f32 %v3489_v7, %v2979_v62  ;;  %v946_v62 = vadd.s32 2432, %v3806_v2  ;;  %v2479_v7 = vsel %vm1967_vm11, %v428_v58, 0.0  ;;  %v1459_v9 = vadd.s32 %v3809_v4, %v945_v56  ;;  %v438_v56 = vld [vmem:[%s3801_s12 + $0x9a8] sm:$0xff] }
 0x25b   : > { %vm1970_vm14 = vcmp.lt.s32.totalorder %v1458_v1, 4800  ;;  %v2992_v16 = vmul.f32 %v2479_v7, %v2479_v7 }
 0x25c   : > { %v3491_v19 = vadd.f32 %v3490_v13, %v2980_v6  ;;  %v947_v6 = vadd.s32 2440, %v3806_v2  ;;  %v2480_v13 = vsel %vm1968_vm12, %v429_v0, 0.0  ;;  %v1460_v15 = vadd.s32 %v3809_v4, %v946_v62  ;;  %v439_v62 = vld [vmem:[%s3801_s12 + $0x9b0] sm:$0xff] }
 0x25d   : > { %vm1971_vm15 = vcmp.lt.s32.totalorder %v1459_v9, 4800  ;;  %v2993_v22 = vmul.f32 %v2480_v13, %v2480_v13 }
 0x25e   : > { %v3492_v25 = vadd.f32 %v3491_v19, %v2981_v12  ;;  %v948_v12 = vadd.s32 2448, %v3806_v2  ;;  %v2481_v19 = vsel %vm1969_vm13, %v430_v8, 0.0  ;;  %v1461_v21 = vadd.s32 %v3809_v4, %v947_v6  ;;  %v440_v6 = vld [vmem:[%s3801_s12 + $0x9b8] sm:$0xff] }
 0x25f   : > { %vm1972_vm0 = vcmp.lt.s32.totalorder %v1460_v15, 4800  ;;  %v2994_v28 = vmul.f32 %v2481_v19, %v2481_v19 }
 0x260   : > { %v3493_v31 = vadd.f32 %v3492_v25, %v2982_v18  ;;  %v949_v18 = vadd.s32 2456, %v3806_v2  ;;  %v2482_v25 = vsel %vm1970_vm14, %v431_v14, 0.0  ;;  %v1462_v27 = vadd.s32 %v3809_v4, %v948_v12  ;;  %v441_v12 = vld [vmem:[%s3801_s12 + $0x9c0] sm:$0xff] }
 0x261   : > { %vm1973_vm1 = vcmp.lt.s32.totalorder %v1461_v21, 4800  ;;  %v2995_v34 = vmul.f32 %v2482_v25, %v2482_v25 }
 0x262   : > { %v3494_v37 = vadd.f32 %v3493_v31, %v2983_v24  ;;  %v950_v24 = vadd.s32 2464, %v3806_v2  ;;  %v2483_v31 = vsel %vm1971_vm15, %v432_v20, 0.0  ;;  %v1463_v33 = vadd.s32 %v3809_v4, %v949_v18  ;;  %v442_v18 = vld [vmem:[%s3801_s12 + $0x9c8] sm:$0xff] }
 0x263   : > { %vm1974_vm2 = vcmp.lt.s32.totalorder %v1462_v27, 4800  ;;  %v2996_v40 = vmul.f32 %v2483_v31, %v2483_v31 }
 0x264   : > { %v3495_v43 = vadd.f32 %v3494_v37, %v2984_v30  ;;  %v951_v30 = vadd.s32 2472, %v3806_v2  ;;  %v2484_v37 = vsel %vm1972_vm0, %v433_v26, 0.0  ;;  %v1464_v39 = vadd.s32 %v3809_v4, %v950_v24  ;;  %v443_v24 = vld [vmem:[%s3801_s12 + $0x9d0] sm:$0xff] }
 0x265   : > { %vm1975_vm3 = vcmp.lt.s32.totalorder %v1463_v33, 4800  ;;  %v2997_v46 = vmul.f32 %v2484_v37, %v2484_v37 }
 0x266   : > { %v3496_v49 = vadd.f32 %v3495_v43, %v2985_v36  ;;  %v952_v36 = vadd.s32 2480, %v3806_v2  ;;  %v2485_v43 = vsel %vm1973_vm1, %v434_v32, 0.0  ;;  %v1465_v45 = vadd.s32 %v3809_v4, %v951_v30  ;;  %v444_v30 = vld [vmem:[%s3801_s12 + $0x9d8] sm:$0xff] }
 0x267   : > { %vm1976_vm4 = vcmp.lt.s32.totalorder %v1464_v39, 4800  ;;  %v2998_v52 = vmul.f32 %v2485_v43, %v2485_v43 }
 0x268   : > { %v3497_v55 = vadd.f32 %v3496_v49, %v2986_v42  ;;  %v953_v42 = vadd.s32 2488, %v3806_v2  ;;  %v2486_v49 = vsel %vm1974_vm2, %v435_v38, 0.0  ;;  %v1466_v51 = vadd.s32 %v3809_v4, %v952_v36  ;;  %v445_v36 = vld [vmem:[%s3801_s12 + $0x9e0] sm:$0xff] }
 0x269   : > { %vm1977_vm5 = vcmp.lt.s32.totalorder %v1465_v45, 4800  ;;  %v2999_v58 = vmul.f32 %v2486_v49, %v2486_v49 }
 0x26a   : > { %v3498_v61 = vadd.f32 %v3497_v55, %v2987_v48  ;;  %v954_v48 = vadd.s32 2496, %v3806_v2  ;;  %v2487_v55 = vsel %vm1975_vm3, %v436_v44, 0.0  ;;  %v1467_v57 = vadd.s32 %v3809_v4, %v953_v42  ;;  %v446_v42 = vld [vmem:[%s3801_s12 + $0x9e8] sm:$0xff] }
 0x26b   : > { %vm1978_vm6 = vcmp.lt.s32.totalorder %v1466_v51, 4800  ;;  %v3000_v0 = vmul.f32 %v2487_v55, %v2487_v55 }
 0x26c   : > { %v3499_v5 = vadd.f32 %v3498_v61, %v2988_v54  ;;  %v955_v54 = vadd.s32 2504, %v3806_v2  ;;  %v2488_v61 = vsel %vm1976_vm4, %v437_v50, 0.0  ;;  %v1468_v63 = vadd.s32 %v3809_v4, %v954_v48  ;;  %v447_v48 = vld [vmem:[%s3801_s12 + $0x9f0] sm:$0xff] }
 0x26d   : > { %vm1979_vm7 = vcmp.lt.s32.totalorder %v1467_v57, 4800  ;;  %v3001_v8 = vmul.f32 %v2488_v61, %v2488_v61 }
 0x26e   : > { %v3500_v11 = vadd.f32 %v3499_v5, %v2989_v60  ;;  %v956_v60 = vadd.s32 2512, %v3806_v2  ;;  %v2489_v5 = vsel %vm1977_vm5, %v438_v56, 0.0  ;;  %v1469_v7 = vadd.s32 %v3809_v4, %v955_v54  ;;  %v448_v54 = vld [vmem:[%s3801_s12 + $0x9f8] sm:$0xff] }
 0x26f   : > { %vm1980_vm8 = vcmp.lt.s32.totalorder %v1468_v63, 4800  ;;  %v3002_v14 = vmul.f32 %v2489_v5, %v2489_v5 }
 0x270   : > { %v3501_v17 = vadd.f32 %v3500_v11, %v2990_v3  ;;  %v957_v3 = vadd.s32 2520, %v3806_v2  ;;  %v2490_v11 = vsel %vm1978_vm6, %v439_v62, 0.0  ;;  %v1470_v13 = vadd.s32 %v3809_v4, %v956_v60  ;;  %v449_v60 = vld [vmem:[%s3801_s12 + $0xa00] sm:$0xff] }
 0x271   : > { %vm1981_vm9 = vcmp.lt.s32.totalorder %v1469_v7, 4800  ;;  %v3003_v20 = vmul.f32 %v2490_v11, %v2490_v11 }
 0x272   : > { %v3502_v23 = vadd.f32 %v3501_v17, %v2991_v10  ;;  %v958_v10 = vadd.s32 2528, %v3806_v2  ;;  %v2491_v17 = vsel %vm1979_vm7, %v440_v6, 0.0  ;;  %v1471_v19 = vadd.s32 %v3809_v4, %v957_v3  ;;  %v450_v3 = vld [vmem:[%s3801_s12 + $0xa08] sm:$0xff] }
 0x273   : > { %vm1982_vm10 = vcmp.lt.s32.totalorder %v1470_v13, 4800  ;;  %v3004_v26 = vmul.f32 %v2491_v17, %v2491_v17 }
 0x274   : > { %v3503_v29 = vadd.f32 %v3502_v23, %v2992_v16  ;;  %v959_v16 = vadd.s32 2536, %v3806_v2  ;;  %v2492_v23 = vsel %vm1980_vm8, %v441_v12, 0.0  ;;  %v1472_v25 = vadd.s32 %v3809_v4, %v958_v10  ;;  %v451_v10 = vld [vmem:[%s3801_s12 + $0xa10] sm:$0xff] }
 0x275   : > { %vm1983_vm11 = vcmp.lt.s32.totalorder %v1471_v19, 4800  ;;  %v3005_v32 = vmul.f32 %v2492_v23, %v2492_v23 }
 0x276   : > { %v3504_v35 = vadd.f32 %v3503_v29, %v2993_v22  ;;  %v960_v22 = vadd.s32 2544, %v3806_v2  ;;  %v2493_v29 = vsel %vm1981_vm9, %v442_v18, 0.0  ;;  %v1473_v31 = vadd.s32 %v3809_v4, %v959_v16  ;;  %v452_v16 = vld [vmem:[%s3801_s12 + $0xa18] sm:$0xff] }
 0x277   : > { %vm1984_vm12 = vcmp.lt.s32.totalorder %v1472_v25, 4800  ;;  %v3006_v38 = vmul.f32 %v2493_v29, %v2493_v29 }
 0x278   : > { %v3505_v41 = vadd.f32 %v3504_v35, %v2994_v28  ;;  %v961_v28 = vadd.s32 2552, %v3806_v2  ;;  %v2494_v35 = vsel %vm1982_vm10, %v443_v24, 0.0  ;;  %v1474_v37 = vadd.s32 %v3809_v4, %v960_v22  ;;  %v453_v22 = vld [vmem:[%s3801_s12 + $0xa20] sm:$0xff] }
 0x279   : > { %vm1985_vm13 = vcmp.lt.s32.totalorder %v1473_v31, 4800  ;;  %v3007_v44 = vmul.f32 %v2494_v35, %v2494_v35 }
 0x27a   : > { %v3506_v47 = vadd.f32 %v3505_v41, %v2995_v34  ;;  %v962_v34 = vadd.s32 2560, %v3806_v2  ;;  %v2495_v41 = vsel %vm1983_vm11, %v444_v30, 0.0  ;;  %v1475_v43 = vadd.s32 %v3809_v4, %v961_v28  ;;  %v454_v28 = vld [vmem:[%s3801_s12 + $0xa28] sm:$0xff] }
 0x27b   : > { %vm1986_vm14 = vcmp.lt.s32.totalorder %v1474_v37, 4800  ;;  %v3008_v50 = vmul.f32 %v2495_v41, %v2495_v41 }
 0x27c   : > { %v3507_v53 = vadd.f32 %v3506_v47, %v2996_v40  ;;  %v963_v40 = vadd.s32 2568, %v3806_v2  ;;  %v2496_v47 = vsel %vm1984_vm12, %v445_v36, 0.0  ;;  %v1476_v49 = vadd.s32 %v3809_v4, %v962_v34  ;;  %v455_v34 = vld [vmem:[%s3801_s12 + $0xa30] sm:$0xff] }
 0x27d   : > { %vm1987_vm15 = vcmp.lt.s32.totalorder %v1475_v43, 4800  ;;  %v3009_v56 = vmul.f32 %v2496_v47, %v2496_v47 }
 0x27e   : > { %v3508_v59 = vadd.f32 %v3507_v53, %v2997_v46  ;;  %v964_v46 = vadd.s32 2576, %v3806_v2  ;;  %v2497_v53 = vsel %vm1985_vm13, %v446_v42, 0.0  ;;  %v1477_v55 = vadd.s32 %v3809_v4, %v963_v40  ;;  %v456_v40 = vld [vmem:[%s3801_s12 + $0xa38] sm:$0xff] }
 0x27f   : > { %vm1988_vm0 = vcmp.lt.s32.totalorder %v1476_v49, 4800  ;;  %v3010_v62 = vmul.f32 %v2497_v53, %v2497_v53 }
 0x280   : > { %v3509_v1 = vadd.f32 %v3508_v59, %v2998_v52  ;;  %v965_v52 = vadd.s32 2584, %v3806_v2  ;;  %v2498_v59 = vsel %vm1986_vm14, %v447_v48, 0.0  ;;  %v1478_v61 = vadd.s32 %v3809_v4, %v964_v46  ;;  %v457_v46 = vld [vmem:[%s3801_s12 + $0xa40] sm:$0xff] }
 0x281   : > { %vm1989_vm1 = vcmp.lt.s32.totalorder %v1477_v55, 4800  ;;  %v3011_v6 = vmul.f32 %v2498_v59, %v2498_v59 }
 0x282   : > { %v3510_v9 = vadd.f32 %v3509_v1, %v2999_v58  ;;  %v966_v58 = vadd.s32 2592, %v3806_v2  ;;  %v2499_v1 = vsel %vm1987_vm15, %v448_v54, 0.0  ;;  %v1479_v5 = vadd.s32 %v3809_v4, %v965_v52  ;;  %v458_v52 = vld [vmem:[%s3801_s12 + $0xa48] sm:$0xff] }
 0x283   : > { %vm1990_vm2 = vcmp.lt.s32.totalorder %v1478_v61, 4800  ;;  %v3012_v12 = vmul.f32 %v2499_v1, %v2499_v1 }
 0x284   : > { %v3511_v15 = vadd.f32 %v3510_v9, %v3000_v0  ;;  %v967_v0 = vadd.s32 2600, %v3806_v2  ;;  %v2500_v9 = vsel %vm1988_vm0, %v449_v60, 0.0  ;;  %v1480_v11 = vadd.s32 %v3809_v4, %v966_v58  ;;  %v459_v58 = vld [vmem:[%s3801_s12 + $0xa50] sm:$0xff] }
 0x285   : > { %vm1991_vm3 = vcmp.lt.s32.totalorder %v1479_v5, 4800  ;;  %v3013_v18 = vmul.f32 %v2500_v9, %v2500_v9 }
 0x286   : > { %v3512_v21 = vadd.f32 %v3511_v15, %v3001_v8  ;;  %v968_v8 = vadd.s32 2608, %v3806_v2  ;;  %v2501_v15 = vsel %vm1989_vm1, %v450_v3, 0.0  ;;  %v1481_v17 = vadd.s32 %v3809_v4, %v967_v0  ;;  %v460_v0 = vld [vmem:[%s3801_s12 + $0xa58] sm:$0xff] }
 0x287   : > { %vm1992_vm4 = vcmp.lt.s32.totalorder %v1480_v11, 4800  ;;  %v3014_v24 = vmul.f32 %v2501_v15, %v2501_v15 }
 0x288   : > { %v3513_v27 = vadd.f32 %v3512_v21, %v3002_v14  ;;  %v969_v14 = vadd.s32 2616, %v3806_v2  ;;  %v2502_v21 = vsel %vm1990_vm2, %v451_v10, 0.0  ;;  %v1482_v23 = vadd.s32 %v3809_v4, %v968_v8  ;;  %v461_v8 = vld [vmem:[%s3801_s12 + $0xa60] sm:$0xff] }
 0x289   : > { %vm1993_vm5 = vcmp.lt.s32.totalorder %v1481_v17, 4800  ;;  %v3015_v30 = vmul.f32 %v2502_v21, %v2502_v21 }
 0x28a   : > { %v3514_v33 = vadd.f32 %v3513_v27, %v3003_v20  ;;  %v970_v20 = vadd.s32 2624, %v3806_v2  ;;  %v2503_v27 = vsel %vm1991_vm3, %v452_v16, 0.0  ;;  %v1483_v29 = vadd.s32 %v3809_v4, %v969_v14  ;;  %v462_v14 = vld [vmem:[%s3801_s12 + $0xa68] sm:$0xff] }
 0x28b   : > { %vm1994_vm6 = vcmp.lt.s32.totalorder %v1482_v23, 4800  ;;  %v3016_v36 = vmul.f32 %v2503_v27, %v2503_v27 }
 0x28c   : > { %v3515_v39 = vadd.f32 %v3514_v33, %v3004_v26  ;;  %v971_v26 = vadd.s32 2632, %v3806_v2  ;;  %v2504_v33 = vsel %vm1992_vm4, %v453_v22, 0.0  ;;  %v1484_v35 = vadd.s32 %v3809_v4, %v970_v20  ;;  %v463_v20 = vld [vmem:[%s3801_s12 + $0xa70] sm:$0xff] }
 0x28d   : > { %vm1995_vm7 = vcmp.lt.s32.totalorder %v1483_v29, 4800  ;;  %v3017_v42 = vmul.f32 %v2504_v33, %v2504_v33 }
 0x28e   : > { %v3516_v45 = vadd.f32 %v3515_v39, %v3005_v32  ;;  %v972_v32 = vadd.s32 2640, %v3806_v2  ;;  %v2505_v39 = vsel %vm1993_vm5, %v454_v28, 0.0  ;;  %v1485_v41 = vadd.s32 %v3809_v4, %v971_v26  ;;  %v464_v26 = vld [vmem:[%s3801_s12 + $0xa78] sm:$0xff] }
 0x28f   : > { %vm1996_vm8 = vcmp.lt.s32.totalorder %v1484_v35, 4800  ;;  %v3018_v48 = vmul.f32 %v2505_v39, %v2505_v39 }
 0x290   : > { %v3517_v51 = vadd.f32 %v3516_v45, %v3006_v38  ;;  %v973_v38 = vadd.s32 2648, %v3806_v2  ;;  %v2506_v45 = vsel %vm1994_vm6, %v455_v34, 0.0  ;;  %v1486_v47 = vadd.s32 %v3809_v4, %v972_v32  ;;  %v465_v32 = vld [vmem:[%s3801_s12 + $0xa80] sm:$0xff] }
 0x291   : > { %vm1997_vm9 = vcmp.lt.s32.totalorder %v1485_v41, 4800  ;;  %v3019_v54 = vmul.f32 %v2506_v45, %v2506_v45 }
 0x292   : > { %v3518_v57 = vadd.f32 %v3517_v51, %v3007_v44  ;;  %v974_v44 = vadd.s32 2656, %v3806_v2  ;;  %v2507_v51 = vsel %vm1995_vm7, %v456_v40, 0.0  ;;  %v1487_v53 = vadd.s32 %v3809_v4, %v973_v38  ;;  %v466_v38 = vld [vmem:[%s3801_s12 + $0xa88] sm:$0xff] }
 0x293   : > { %vm1998_vm10 = vcmp.lt.s32.totalorder %v1486_v47, 4800  ;;  %v3020_v60 = vmul.f32 %v2507_v51, %v2507_v51 }
 0x294   : > { %v3519_v63 = vadd.f32 %v3518_v57, %v3008_v50  ;;  %v975_v50 = vadd.s32 2664, %v3806_v2  ;;  %v2508_v57 = vsel %vm1996_vm8, %v457_v46, 0.0  ;;  %v1488_v59 = vadd.s32 %v3809_v4, %v974_v44  ;;  %v467_v44 = vld [vmem:[%s3801_s12 + $0xa90] sm:$0xff] }
 0x295   : > { %vm1999_vm11 = vcmp.lt.s32.totalorder %v1487_v53, 4800  ;;  %v3021_v3 = vmul.f32 %v2508_v57, %v2508_v57 }
 0x296   : > { %v3520_v7 = vadd.f32 %v3519_v63, %v3009_v56  ;;  %v976_v56 = vadd.s32 2672, %v3806_v2  ;;  %v2509_v63 = vsel %vm1997_vm9, %v458_v52, 0.0  ;;  %v1489_v1 = vadd.s32 %v3809_v4, %v975_v50  ;;  %v468_v50 = vld [vmem:[%s3801_s12 + $0xa98] sm:$0xff] }
 0x297   : > { %vm2000_vm12 = vcmp.lt.s32.totalorder %v1488_v59, 4800  ;;  %v3022_v10 = vmul.f32 %v2509_v63, %v2509_v63 }
 0x298   : > { %v3521_v13 = vadd.f32 %v3520_v7, %v3010_v62  ;;  %v977_v62 = vadd.s32 2680, %v3806_v2  ;;  %v2510_v7 = vsel %vm1998_vm10, %v459_v58, 0.0  ;;  %v1490_v9 = vadd.s32 %v3809_v4, %v976_v56  ;;  %v469_v56 = vld [vmem:[%s3801_s12 + $0xaa0] sm:$0xff] }
 0x299   : > { %vm2001_vm13 = vcmp.lt.s32.totalorder %v1489_v1, 4800  ;;  %v3023_v16 = vmul.f32 %v2510_v7, %v2510_v7 }
 0x29a   : > { %v3522_v19 = vadd.f32 %v3521_v13, %v3011_v6  ;;  %v978_v6 = vadd.s32 2688, %v3806_v2  ;;  %v2511_v13 = vsel %vm1999_vm11, %v460_v0, 0.0  ;;  %v1491_v15 = vadd.s32 %v3809_v4, %v977_v62  ;;  %v470_v62 = vld [vmem:[%s3801_s12 + $0xaa8] sm:$0xff] }
 0x29b   : > { %vm2002_vm14 = vcmp.lt.s32.totalorder %v1490_v9, 4800  ;;  %v3024_v22 = vmul.f32 %v2511_v13, %v2511_v13 }
 0x29c   : > { %v3523_v25 = vadd.f32 %v3522_v19, %v3012_v12  ;;  %v979_v12 = vadd.s32 2696, %v3806_v2  ;;  %v2512_v19 = vsel %vm2000_vm12, %v461_v8, 0.0  ;;  %v1492_v21 = vadd.s32 %v3809_v4, %v978_v6  ;;  %v471_v6 = vld [vmem:[%s3801_s12 + $0xab0] sm:$0xff] }
 0x29d   : > { %vm2003_vm15 = vcmp.lt.s32.totalorder %v1491_v15, 4800  ;;  %v3025_v28 = vmul.f32 %v2512_v19, %v2512_v19 }
 0x29e   : > { %v3524_v31 = vadd.f32 %v3523_v25, %v3013_v18  ;;  %v980_v18 = vadd.s32 2704, %v3806_v2  ;;  %v2513_v25 = vsel %vm2001_vm13, %v462_v14, 0.0  ;;  %v1493_v27 = vadd.s32 %v3809_v4, %v979_v12  ;;  %v472_v12 = vld [vmem:[%s3801_s12 + $0xab8] sm:$0xff] }
 0x29f   : > { %vm2004_vm0 = vcmp.lt.s32.totalorder %v1492_v21, 4800  ;;  %v3026_v34 = vmul.f32 %v2513_v25, %v2513_v25 }
 0x2a0   : > { %v3525_v37 = vadd.f32 %v3524_v31, %v3014_v24  ;;  %v981_v24 = vadd.s32 2712, %v3806_v2  ;;  %v2514_v31 = vsel %vm2002_vm14, %v463_v20, 0.0  ;;  %v1494_v33 = vadd.s32 %v3809_v4, %v980_v18  ;;  %v473_v18 = vld [vmem:[%s3801_s12 + $0xac0] sm:$0xff] }
 0x2a1   : > { %vm2005_vm1 = vcmp.lt.s32.totalorder %v1493_v27, 4800  ;;  %v3027_v40 = vmul.f32 %v2514_v31, %v2514_v31 }
 0x2a2   : > { %v3526_v43 = vadd.f32 %v3525_v37, %v3015_v30  ;;  %v982_v30 = vadd.s32 2720, %v3806_v2  ;;  %v2515_v37 = vsel %vm2003_vm15, %v464_v26, 0.0  ;;  %v1495_v39 = vadd.s32 %v3809_v4, %v981_v24  ;;  %v474_v24 = vld [vmem:[%s3801_s12 + $0xac8] sm:$0xff] }
 0x2a3   : > { %vm2006_vm2 = vcmp.lt.s32.totalorder %v1494_v33, 4800  ;;  %v3028_v46 = vmul.f32 %v2515_v37, %v2515_v37 }
 0x2a4   : > { %v3527_v49 = vadd.f32 %v3526_v43, %v3016_v36  ;;  %v983_v36 = vadd.s32 2728, %v3806_v2  ;;  %v2516_v43 = vsel %vm2004_vm0, %v465_v32, 0.0  ;;  %v1496_v45 = vadd.s32 %v3809_v4, %v982_v30  ;;  %v475_v30 = vld [vmem:[%s3801_s12 + $0xad0] sm:$0xff] }
 0x2a5   : > { %vm2007_vm3 = vcmp.lt.s32.totalorder %v1495_v39, 4800  ;;  %v3029_v52 = vmul.f32 %v2516_v43, %v2516_v43 }
 0x2a6   : > { %v3528_v55 = vadd.f32 %v3527_v49, %v3017_v42  ;;  %v984_v42 = vadd.s32 2736, %v3806_v2  ;;  %v2517_v49 = vsel %vm2005_vm1, %v466_v38, 0.0  ;;  %v1497_v51 = vadd.s32 %v3809_v4, %v983_v36  ;;  %v476_v36 = vld [vmem:[%s3801_s12 + $0xad8] sm:$0xff] }
 0x2a7   : > { %vm2008_vm4 = vcmp.lt.s32.totalorder %v1496_v45, 4800  ;;  %v3030_v58 = vmul.f32 %v2517_v49, %v2517_v49 }
 0x2a8   : > { %v3529_v61 = vadd.f32 %v3528_v55, %v3018_v48  ;;  %v985_v48 = vadd.s32 2744, %v3806_v2  ;;  %v2518_v55 = vsel %vm2006_vm2, %v467_v44, 0.0  ;;  %v1498_v57 = vadd.s32 %v3809_v4, %v984_v42  ;;  %v477_v42 = vld [vmem:[%s3801_s12 + $0xae0] sm:$0xff] }
 0x2a9   : > { %vm2009_vm5 = vcmp.lt.s32.totalorder %v1497_v51, 4800  ;;  %v3031_v0 = vmul.f32 %v2518_v55, %v2518_v55 }
 0x2aa   : > { %v3530_v5 = vadd.f32 %v3529_v61, %v3019_v54  ;;  %v986_v54 = vadd.s32 2752, %v3806_v2  ;;  %v2519_v61 = vsel %vm2007_vm3, %v468_v50, 0.0  ;;  %v1499_v63 = vadd.s32 %v3809_v4, %v985_v48  ;;  %v478_v48 = vld [vmem:[%s3801_s12 + $0xae8] sm:$0xff] }
 0x2ab   : > { %vm2010_vm6 = vcmp.lt.s32.totalorder %v1498_v57, 4800  ;;  %v3032_v8 = vmul.f32 %v2519_v61, %v2519_v61 }
 0x2ac   : > { %v3531_v11 = vadd.f32 %v3530_v5, %v3020_v60  ;;  %v987_v60 = vadd.s32 2760, %v3806_v2  ;;  %v2520_v5 = vsel %vm2008_vm4, %v469_v56, 0.0  ;;  %v1500_v7 = vadd.s32 %v3809_v4, %v986_v54  ;;  %v479_v54 = vld [vmem:[%s3801_s12 + $0xaf0] sm:$0xff] }
 0x2ad   : > { %vm2011_vm7 = vcmp.lt.s32.totalorder %v1499_v63, 4800  ;;  %v3033_v14 = vmul.f32 %v2520_v5, %v2520_v5 }
 0x2ae   : > { %v3532_v17 = vadd.f32 %v3531_v11, %v3021_v3  ;;  %v988_v3 = vadd.s32 2768, %v3806_v2  ;;  %v2521_v11 = vsel %vm2009_vm5, %v470_v62, 0.0  ;;  %v1501_v13 = vadd.s32 %v3809_v4, %v987_v60  ;;  %v480_v60 = vld [vmem:[%s3801_s12 + $0xaf8] sm:$0xff] }
 0x2af   : > { %vm2012_vm8 = vcmp.lt.s32.totalorder %v1500_v7, 4800  ;;  %v3034_v20 = vmul.f32 %v2521_v11, %v2521_v11 }
 0x2b0   : > { %v3533_v23 = vadd.f32 %v3532_v17, %v3022_v10  ;;  %v989_v10 = vadd.s32 2776, %v3806_v2  ;;  %v2522_v17 = vsel %vm2010_vm6, %v471_v6, 0.0  ;;  %v1502_v19 = vadd.s32 %v3809_v4, %v988_v3  ;;  %v481_v3 = vld [vmem:[%s3801_s12 + $0xb00] sm:$0xff] }
 0x2b1   : > { %vm2013_vm9 = vcmp.lt.s32.totalorder %v1501_v13, 4800  ;;  %v3035_v26 = vmul.f32 %v2522_v17, %v2522_v17 }
 0x2b2   : > { %v3534_v29 = vadd.f32 %v3533_v23, %v3023_v16  ;;  %v990_v16 = vadd.s32 2784, %v3806_v2  ;;  %v2523_v23 = vsel %vm2011_vm7, %v472_v12, 0.0  ;;  %v1503_v25 = vadd.s32 %v3809_v4, %v989_v10  ;;  %v482_v10 = vld [vmem:[%s3801_s12 + $0xb08] sm:$0xff] }
 0x2b3   : > { %vm2014_vm10 = vcmp.lt.s32.totalorder %v1502_v19, 4800  ;;  %v3036_v32 = vmul.f32 %v2523_v23, %v2523_v23 }
 0x2b4   : > { %v3535_v35 = vadd.f32 %v3534_v29, %v3024_v22  ;;  %v991_v22 = vadd.s32 2792, %v3806_v2  ;;  %v2524_v29 = vsel %vm2012_vm8, %v473_v18, 0.0  ;;  %v1504_v31 = vadd.s32 %v3809_v4, %v990_v16  ;;  %v483_v16 = vld [vmem:[%s3801_s12 + $0xb10] sm:$0xff] }
 0x2b5   : > { %vm2015_vm11 = vcmp.lt.s32.totalorder %v1503_v25, 4800  ;;  %v3037_v38 = vmul.f32 %v2524_v29, %v2524_v29 }
 0x2b6   : > { %v3536_v41 = vadd.f32 %v3535_v35, %v3025_v28  ;;  %v992_v28 = vadd.s32 2800, %v3806_v2  ;;  %v2525_v35 = vsel %vm2013_vm9, %v474_v24, 0.0  ;;  %v1505_v37 = vadd.s32 %v3809_v4, %v991_v22  ;;  %v484_v22 = vld [vmem:[%s3801_s12 + $0xb18] sm:$0xff] }
 0x2b7   : > { %vm2016_vm12 = vcmp.lt.s32.totalorder %v1504_v31, 4800  ;;  %v3038_v44 = vmul.f32 %v2525_v35, %v2525_v35 }
 0x2b8   : > { %v3537_v47 = vadd.f32 %v3536_v41, %v3026_v34  ;;  %v993_v34 = vadd.s32 2808, %v3806_v2  ;;  %v2526_v41 = vsel %vm2014_vm10, %v475_v30, 0.0  ;;  %v1506_v43 = vadd.s32 %v3809_v4, %v992_v28  ;;  %v485_v28 = vld [vmem:[%s3801_s12 + $0xb20] sm:$0xff] }
 0x2b9   : > { %vm2017_vm13 = vcmp.lt.s32.totalorder %v1505_v37, 4800  ;;  %v3039_v50 = vmul.f32 %v2526_v41, %v2526_v41 }
 0x2ba   : > { %v3538_v53 = vadd.f32 %v3537_v47, %v3027_v40  ;;  %v994_v40 = vadd.s32 2816, %v3806_v2  ;;  %v2527_v47 = vsel %vm2015_vm11, %v476_v36, 0.0  ;;  %v1507_v49 = vadd.s32 %v3809_v4, %v993_v34  ;;  %v486_v34 = vld [vmem:[%s3801_s12 + $0xb28] sm:$0xff] }
 0x2bb   : > { %vm2018_vm14 = vcmp.lt.s32.totalorder %v1506_v43, 4800  ;;  %v3040_v56 = vmul.f32 %v2527_v47, %v2527_v47 }
 0x2bc   : > { %v3539_v59 = vadd.f32 %v3538_v53, %v3028_v46  ;;  %v995_v46 = vadd.s32 2824, %v3806_v2  ;;  %v2528_v53 = vsel %vm2016_vm12, %v477_v42, 0.0  ;;  %v1508_v55 = vadd.s32 %v3809_v4, %v994_v40  ;;  %v487_v40 = vld [vmem:[%s3801_s12 + $0xb30] sm:$0xff] }
 0x2bd   : > { %vm2019_vm15 = vcmp.lt.s32.totalorder %v1507_v49, 4800  ;;  %v3041_v62 = vmul.f32 %v2528_v53, %v2528_v53 }
 0x2be   : > { %v3540_v1 = vadd.f32 %v3539_v59, %v3029_v52  ;;  %v996_v52 = vadd.s32 2832, %v3806_v2  ;;  %v2529_v59 = vsel %vm2017_vm13, %v478_v48, 0.0  ;;  %v1509_v61 = vadd.s32 %v3809_v4, %v995_v46  ;;  %v488_v46 = vld [vmem:[%s3801_s12 + $0xb38] sm:$0xff] }
 0x2bf   : > { %vm2020_vm0 = vcmp.lt.s32.totalorder %v1508_v55, 4800  ;;  %v3042_v6 = vmul.f32 %v2529_v59, %v2529_v59 }
 0x2c0   : > { %v3541_v9 = vadd.f32 %v3540_v1, %v3030_v58  ;;  %v997_v58 = vadd.s32 2840, %v3806_v2  ;;  %v2530_v1 = vsel %vm2018_vm14, %v479_v54, 0.0  ;;  %v1510_v5 = vadd.s32 %v3809_v4, %v996_v52  ;;  %v489_v52 = vld [vmem:[%s3801_s12 + $0xb40] sm:$0xff] }
 0x2c1   : > { %vm2021_vm1 = vcmp.lt.s32.totalorder %v1509_v61, 4800  ;;  %v3043_v12 = vmul.f32 %v2530_v1, %v2530_v1 }
 0x2c2   : > { %v3542_v15 = vadd.f32 %v3541_v9, %v3031_v0  ;;  %v998_v0 = vadd.s32 2848, %v3806_v2  ;;  %v2531_v9 = vsel %vm2019_vm15, %v480_v60, 0.0  ;;  %v1511_v11 = vadd.s32 %v3809_v4, %v997_v58  ;;  %v490_v58 = vld [vmem:[%s3801_s12 + $0xb48] sm:$0xff] }
 0x2c3   : > { %vm2022_vm2 = vcmp.lt.s32.totalorder %v1510_v5, 4800  ;;  %v3044_v18 = vmul.f32 %v2531_v9, %v2531_v9 }
 0x2c4   : > { %v3543_v21 = vadd.f32 %v3542_v15, %v3032_v8  ;;  %v999_v8 = vadd.s32 2856, %v3806_v2  ;;  %v2532_v15 = vsel %vm2020_vm0, %v481_v3, 0.0  ;;  %v1512_v17 = vadd.s32 %v3809_v4, %v998_v0  ;;  %v491_v0 = vld [vmem:[%s3801_s12 + $0xb50] sm:$0xff] }
 0x2c5   : > { %vm2023_vm3 = vcmp.lt.s32.totalorder %v1511_v11, 4800  ;;  %v3045_v24 = vmul.f32 %v2532_v15, %v2532_v15 }
 0x2c6   : > { %v3544_v27 = vadd.f32 %v3543_v21, %v3033_v14  ;;  %v1000_v14 = vadd.s32 2864, %v3806_v2  ;;  %v2533_v21 = vsel %vm2021_vm1, %v482_v10, 0.0  ;;  %v1513_v23 = vadd.s32 %v3809_v4, %v999_v8  ;;  %v492_v8 = vld [vmem:[%s3801_s12 + $0xb58] sm:$0xff] }
 0x2c7   : > { %vm2024_vm4 = vcmp.lt.s32.totalorder %v1512_v17, 4800  ;;  %v3046_v30 = vmul.f32 %v2533_v21, %v2533_v21 }
 0x2c8   : > { %v3545_v33 = vadd.f32 %v3544_v27, %v3034_v20  ;;  %v1001_v20 = vadd.s32 2872, %v3806_v2  ;;  %v2534_v27 = vsel %vm2022_vm2, %v483_v16, 0.0  ;;  %v1514_v29 = vadd.s32 %v3809_v4, %v1000_v14  ;;  %v493_v14 = vld [vmem:[%s3801_s12 + $0xb60] sm:$0xff] }
 0x2c9   : > { %vm2025_vm5 = vcmp.lt.s32.totalorder %v1513_v23, 4800  ;;  %v3047_v36 = vmul.f32 %v2534_v27, %v2534_v27 }
 0x2ca   : > { %v3546_v39 = vadd.f32 %v3545_v33, %v3035_v26  ;;  %v1002_v26 = vadd.s32 2880, %v3806_v2  ;;  %v2535_v33 = vsel %vm2023_vm3, %v484_v22, 0.0  ;;  %v1515_v35 = vadd.s32 %v3809_v4, %v1001_v20  ;;  %v494_v20 = vld [vmem:[%s3801_s12 + $0xb68] sm:$0xff] }
 0x2cb   : > { %vm2026_vm6 = vcmp.lt.s32.totalorder %v1514_v29, 4800  ;;  %v3048_v42 = vmul.f32 %v2535_v33, %v2535_v33 }
 0x2cc   : > { %v3547_v45 = vadd.f32 %v3546_v39, %v3036_v32  ;;  %v1003_v32 = vadd.s32 2888, %v3806_v2  ;;  %v2536_v39 = vsel %vm2024_vm4, %v485_v28, 0.0  ;;  %v1516_v41 = vadd.s32 %v3809_v4, %v1002_v26  ;;  %v495_v26 = vld [vmem:[%s3801_s12 + $0xb70] sm:$0xff] }
 0x2cd   : > { %vm2027_vm7 = vcmp.lt.s32.totalorder %v1515_v35, 4800  ;;  %v3049_v48 = vmul.f32 %v2536_v39, %v2536_v39 }
 0x2ce   : > { %v3548_v51 = vadd.f32 %v3547_v45, %v3037_v38  ;;  %v1004_v38 = vadd.s32 2896, %v3806_v2  ;;  %v2537_v45 = vsel %vm2025_vm5, %v486_v34, 0.0  ;;  %v1517_v47 = vadd.s32 %v3809_v4, %v1003_v32  ;;  %v496_v32 = vld [vmem:[%s3801_s12 + $0xb78] sm:$0xff] }
 0x2cf   : > { %vm2028_vm8 = vcmp.lt.s32.totalorder %v1516_v41, 4800  ;;  %v3050_v54 = vmul.f32 %v2537_v45, %v2537_v45 }
 0x2d0   : > { %v3549_v57 = vadd.f32 %v3548_v51, %v3038_v44  ;;  %v1005_v44 = vadd.s32 2904, %v3806_v2  ;;  %v2538_v51 = vsel %vm2026_vm6, %v487_v40, 0.0  ;;  %v1518_v53 = vadd.s32 %v3809_v4, %v1004_v38  ;;  %v497_v38 = vld [vmem:[%s3801_s12 + $0xb80] sm:$0xff] }
 0x2d1   : > { %vm2029_vm9 = vcmp.lt.s32.totalorder %v1517_v47, 4800  ;;  %v3051_v60 = vmul.f32 %v2538_v51, %v2538_v51 }
 0x2d2   : > { %v3550_v63 = vadd.f32 %v3549_v57, %v3039_v50  ;;  %v1006_v50 = vadd.s32 2912, %v3806_v2  ;;  %v2539_v57 = vsel %vm2027_vm7, %v488_v46, 0.0  ;;  %v1519_v59 = vadd.s32 %v3809_v4, %v1005_v44  ;;  %v498_v44 = vld [vmem:[%s3801_s12 + $0xb88] sm:$0xff] }
 0x2d3   : > { %vm2030_vm10 = vcmp.lt.s32.totalorder %v1518_v53, 4800  ;;  %v3052_v3 = vmul.f32 %v2539_v57, %v2539_v57 }
 0x2d4   : > { %v3551_v7 = vadd.f32 %v3550_v63, %v3040_v56  ;;  %v1007_v56 = vadd.s32 2920, %v3806_v2  ;;  %v2540_v63 = vsel %vm2028_vm8, %v489_v52, 0.0  ;;  %v1520_v1 = vadd.s32 %v3809_v4, %v1006_v50  ;;  %v499_v50 = vld [vmem:[%s3801_s12 + $0xb90] sm:$0xff] }
 0x2d5   : > { %vm2031_vm11 = vcmp.lt.s32.totalorder %v1519_v59, 4800  ;;  %v3053_v10 = vmul.f32 %v2540_v63, %v2540_v63 }
 0x2d6   : > { %v3552_v13 = vadd.f32 %v3551_v7, %v3041_v62  ;;  %v1008_v62 = vadd.s32 2928, %v3806_v2  ;;  %v2541_v7 = vsel %vm2029_vm9, %v490_v58, 0.0  ;;  %v1521_v9 = vadd.s32 %v3809_v4, %v1007_v56  ;;  %v500_v56 = vld [vmem:[%s3801_s12 + $0xb98] sm:$0xff] }
 0x2d7   : > { %vm2032_vm12 = vcmp.lt.s32.totalorder %v1520_v1, 4800  ;;  %v3054_v16 = vmul.f32 %v2541_v7, %v2541_v7 }
 0x2d8   : > { %v3553_v19 = vadd.f32 %v3552_v13, %v3042_v6  ;;  %v1009_v6 = vadd.s32 2936, %v3806_v2  ;;  %v2542_v13 = vsel %vm2030_vm10, %v491_v0, 0.0  ;;  %v1522_v15 = vadd.s32 %v3809_v4, %v1008_v62  ;;  %v501_v62 = vld [vmem:[%s3801_s12 + $0xba0] sm:$0xff] }
 0x2d9   : > { %vm2033_vm13 = vcmp.lt.s32.totalorder %v1521_v9, 4800  ;;  %v3055_v22 = vmul.f32 %v2542_v13, %v2542_v13 }
 0x2da   : > { %v3554_v25 = vadd.f32 %v3553_v19, %v3043_v12  ;;  %v1010_v12 = vadd.s32 2944, %v3806_v2  ;;  %v2543_v19 = vsel %vm2031_vm11, %v492_v8, 0.0  ;;  %v1523_v21 = vadd.s32 %v3809_v4, %v1009_v6  ;;  %v502_v6 = vld [vmem:[%s3801_s12 + $0xba8] sm:$0xff] }
 0x2db   : > { %vm2034_vm14 = vcmp.lt.s32.totalorder %v1522_v15, 4800  ;;  %v3056_v28 = vmul.f32 %v2543_v19, %v2543_v19 }
 0x2dc   : > { %v3555_v31 = vadd.f32 %v3554_v25, %v3044_v18  ;;  %v1011_v18 = vadd.s32 2952, %v3806_v2  ;;  %v2544_v25 = vsel %vm2032_vm12, %v493_v14, 0.0  ;;  %v1524_v27 = vadd.s32 %v3809_v4, %v1010_v12  ;;  %v503_v12 = vld [vmem:[%s3801_s12 + $0xbb0] sm:$0xff] }
 0x2dd   : > { %vm2035_vm15 = vcmp.lt.s32.totalorder %v1523_v21, 4800  ;;  %v3057_v34 = vmul.f32 %v2544_v25, %v2544_v25 }
 0x2de   : > { %v3556_v37 = vadd.f32 %v3555_v31, %v3045_v24  ;;  %v1012_v24 = vadd.s32 2960, %v3806_v2  ;;  %v2545_v31 = vsel %vm2033_vm13, %v494_v20, 0.0  ;;  %v1525_v33 = vadd.s32 %v3809_v4, %v1011_v18  ;;  %v504_v18 = vld [vmem:[%s3801_s12 + $0xbb8] sm:$0xff] }
 0x2df   : > { %vm2036_vm0 = vcmp.lt.s32.totalorder %v1524_v27, 4800  ;;  %v3058_v40 = vmul.f32 %v2545_v31, %v2545_v31 }
 0x2e0   : > { %v3557_v43 = vadd.f32 %v3556_v37, %v3046_v30  ;;  %v1013_v30 = vadd.s32 2968, %v3806_v2  ;;  %v2546_v37 = vsel %vm2034_vm14, %v495_v26, 0.0  ;;  %v1526_v39 = vadd.s32 %v3809_v4, %v1012_v24  ;;  %v505_v24 = vld [vmem:[%s3801_s12 + $0xbc0] sm:$0xff] }
 0x2e1   : > { %vm2037_vm1 = vcmp.lt.s32.totalorder %v1525_v33, 4800  ;;  %v3059_v46 = vmul.f32 %v2546_v37, %v2546_v37 }
 0x2e2   : > { %v3558_v49 = vadd.f32 %v3557_v43, %v3047_v36  ;;  %v1014_v36 = vadd.s32 2976, %v3806_v2  ;;  %v2547_v43 = vsel %vm2035_vm15, %v496_v32, 0.0  ;;  %v1527_v45 = vadd.s32 %v3809_v4, %v1013_v30  ;;  %v506_v30 = vld [vmem:[%s3801_s12 + $0xbc8] sm:$0xff] }
 0x2e3   : > { %vm2038_vm2 = vcmp.lt.s32.totalorder %v1526_v39, 4800  ;;  %v3060_v52 = vmul.f32 %v2547_v43, %v2547_v43 }
 0x2e4   : > { %v3559_v55 = vadd.f32 %v3558_v49, %v3048_v42  ;;  %v1015_v42 = vadd.s32 2984, %v3806_v2  ;;  %v2548_v49 = vsel %vm2036_vm0, %v497_v38, 0.0  ;;  %v1528_v51 = vadd.s32 %v3809_v4, %v1014_v36  ;;  %v507_v36 = vld [vmem:[%s3801_s12 + $0xbd0] sm:$0xff] }
 0x2e5   : > { %vm2039_vm3 = vcmp.lt.s32.totalorder %v1527_v45, 4800  ;;  %v3061_v58 = vmul.f32 %v2548_v49, %v2548_v49 }
 0x2e6   : > { %v3560_v61 = vadd.f32 %v3559_v55, %v3049_v48  ;;  %v1016_v48 = vadd.s32 2992, %v3806_v2  ;;  %v2549_v55 = vsel %vm2037_vm1, %v498_v44, 0.0  ;;  %v1529_v57 = vadd.s32 %v3809_v4, %v1015_v42  ;;  %v508_v42 = vld [vmem:[%s3801_s12 + $0xbd8] sm:$0xff] }
 0x2e7   : > { %vm2040_vm4 = vcmp.lt.s32.totalorder %v1528_v51, 4800  ;;  %v3062_v0 = vmul.f32 %v2549_v55, %v2549_v55 }
 0x2e8   : > { %v3561_v5 = vadd.f32 %v3560_v61, %v3050_v54  ;;  %v1017_v54 = vadd.s32 3000, %v3806_v2  ;;  %v2550_v61 = vsel %vm2038_vm2, %v499_v50, 0.0  ;;  %v1530_v63 = vadd.s32 %v3809_v4, %v1016_v48  ;;  %v509_v48 = vld [vmem:[%s3801_s12 + $0xbe0] sm:$0xff] }
 0x2e9   : > { %vm2041_vm5 = vcmp.lt.s32.totalorder %v1529_v57, 4800  ;;  %v3063_v8 = vmul.f32 %v2550_v61, %v2550_v61 }
 0x2ea   : > { %v3562_v11 = vadd.f32 %v3561_v5, %v3051_v60  ;;  %v1018_v60 = vadd.s32 3008, %v3806_v2  ;;  %v2551_v5 = vsel %vm2039_vm3, %v500_v56, 0.0  ;;  %v1531_v7 = vadd.s32 %v3809_v4, %v1017_v54  ;;  %v510_v54 = vld [vmem:[%s3801_s12 + $0xbe8] sm:$0xff] }
 0x2eb   : > { %vm2042_vm6 = vcmp.lt.s32.totalorder %v1530_v63, 4800  ;;  %v3064_v14 = vmul.f32 %v2551_v5, %v2551_v5 }
 0x2ec   : > { %v3563_v17 = vadd.f32 %v3562_v11, %v3052_v3  ;;  %v1019_v3 = vadd.s32 3016, %v3806_v2  ;;  %v2552_v11 = vsel %vm2040_vm4, %v501_v62, 0.0  ;;  %v1532_v13 = vadd.s32 %v3809_v4, %v1018_v60  ;;  %v511_v60 = vld [vmem:[%s3801_s12 + $0xbf0] sm:$0xff] }
 0x2ed   : > { %vm2043_vm7 = vcmp.lt.s32.totalorder %v1531_v7, 4800  ;;  %v3065_v20 = vmul.f32 %v2552_v11, %v2552_v11 }
 0x2ee   : > { %v3564_v23 = vadd.f32 %v3563_v17, %v3053_v10  ;;  %v1020_v10 = vadd.s32 3024, %v3806_v2  ;;  %v2553_v17 = vsel %vm2041_vm5, %v502_v6, 0.0  ;;  %v1533_v19 = vadd.s32 %v3809_v4, %v1019_v3  ;;  %v512_v3 = vld [vmem:[%s3801_s12 + $0xbf8] sm:$0xff] }
 0x2ef   : > { %vm2044_vm8 = vcmp.lt.s32.totalorder %v1532_v13, 4800  ;;  %v3066_v26 = vmul.f32 %v2553_v17, %v2553_v17 }
 0x2f0   : > { %v3565_v29 = vadd.f32 %v3564_v23, %v3054_v16  ;;  %v1021_v16 = vadd.s32 3032, %v3806_v2  ;;  %v2554_v23 = vsel %vm2042_vm6, %v503_v12, 0.0  ;;  %v1534_v25 = vadd.s32 %v3809_v4, %v1020_v10  ;;  %v513_v10 = vld [vmem:[%s3801_s12 + $0xc00] sm:$0xff] }
 0x2f1   : > { %vm2045_vm9 = vcmp.lt.s32.totalorder %v1533_v19, 4800  ;;  %v3067_v32 = vmul.f32 %v2554_v23, %v2554_v23 }
 0x2f2   : > { %v3566_v35 = vadd.f32 %v3565_v29, %v3055_v22  ;;  %v1022_v22 = vadd.s32 3040, %v3806_v2  ;;  %v2555_v29 = vsel %vm2043_vm7, %v504_v18, 0.0  ;;  %v1535_v31 = vadd.s32 %v3809_v4, %v1021_v16  ;;  %v514_v16 = vld [vmem:[%s3801_s12 + $0xc08] sm:$0xff] }
 0x2f3   : > { %vm2046_vm10 = vcmp.lt.s32.totalorder %v1534_v25, 4800  ;;  %v3068_v38 = vmul.f32 %v2555_v29, %v2555_v29 }
 0x2f4   : > { %v3567_v41 = vadd.f32 %v3566_v35, %v3056_v28  ;;  %v1023_v28 = vadd.s32 3048, %v3806_v2  ;;  %v2556_v35 = vsel %vm2044_vm8, %v505_v24, 0.0  ;;  %v1536_v37 = vadd.s32 %v3809_v4, %v1022_v22  ;;  %v515_v22 = vld [vmem:[%s3801_s12 + $0xc10] sm:$0xff] }
 0x2f5   : > { %vm2047_vm11 = vcmp.lt.s32.totalorder %v1535_v31, 4800  ;;  %v3069_v44 = vmul.f32 %v2556_v35, %v2556_v35 }
 0x2f6   : > { %v3568_v47 = vadd.f32 %v3567_v41, %v3057_v34  ;;  %v1024_v34 = vadd.s32 3056, %v3806_v2  ;;  %v2557_v41 = vsel %vm2045_vm9, %v506_v30, 0.0  ;;  %v1537_v43 = vadd.s32 %v3809_v4, %v1023_v28  ;;  %v516_v28 = vld [vmem:[%s3801_s12 + $0xc18] sm:$0xff] }
 0x2f7   : > { %vm2048_vm12 = vcmp.lt.s32.totalorder %v1536_v37, 4800  ;;  %v3070_v50 = vmul.f32 %v2557_v41, %v2557_v41 }
 0x2f8   : > { %v3569_v53 = vadd.f32 %v3568_v47, %v3058_v40  ;;  %v1025_v40 = vadd.s32 3064, %v3806_v2  ;;  %v2558_v47 = vsel %vm2046_vm10, %v507_v36, 0.0  ;;  %v1538_v49 = vadd.s32 %v3809_v4, %v1024_v34  ;;  %v517_v34 = vld [vmem:[%s3801_s12 + $0xc20] sm:$0xff] }
 0x2f9   : > { %vm2049_vm13 = vcmp.lt.s32.totalorder %v1537_v43, 4800  ;;  %v3071_v56 = vmul.f32 %v2558_v47, %v2558_v47 }
 0x2fa   : > { %v3570_v59 = vadd.f32 %v3569_v53, %v3059_v46  ;;  %v1026_v46 = vadd.s32 3072, %v3806_v2  ;;  %v2559_v53 = vsel %vm2047_vm11, %v508_v42, 0.0  ;;  %v1539_v55 = vadd.s32 %v3809_v4, %v1025_v40  ;;  %v518_v40 = vld [vmem:[%s3801_s12 + $0xc28] sm:$0xff] }
 0x2fb   : > { %vm2050_vm14 = vcmp.lt.s32.totalorder %v1538_v49, 4800  ;;  %v3072_v62 = vmul.f32 %v2559_v53, %v2559_v53 }
 0x2fc   : > { %v3571_v1 = vadd.f32 %v3570_v59, %v3060_v52  ;;  %v1027_v52 = vadd.s32 3080, %v3806_v2  ;;  %v2560_v59 = vsel %vm2048_vm12, %v509_v48, 0.0  ;;  %v1540_v61 = vadd.s32 %v3809_v4, %v1026_v46  ;;  %v519_v46 = vld [vmem:[%s3801_s12 + $0xc30] sm:$0xff] }
 0x2fd   : > { %vm2051_vm15 = vcmp.lt.s32.totalorder %v1539_v55, 4800  ;;  %v3073_v6 = vmul.f32 %v2560_v59, %v2560_v59 }
 0x2fe   : > { %v3572_v9 = vadd.f32 %v3571_v1, %v3061_v58  ;;  %v1028_v58 = vadd.s32 3088, %v3806_v2  ;;  %v2561_v1 = vsel %vm2049_vm13, %v510_v54, 0.0  ;;  %v1541_v5 = vadd.s32 %v3809_v4, %v1027_v52  ;;  %v520_v52 = vld [vmem:[%s3801_s12 + $0xc38] sm:$0xff] }
 0x2ff   : > { %vm2052_vm0 = vcmp.lt.s32.totalorder %v1540_v61, 4800  ;;  %v3074_v12 = vmul.f32 %v2561_v1, %v2561_v1 }
 0x300   : > { %v3573_v15 = vadd.f32 %v3572_v9, %v3062_v0  ;;  %v1029_v0 = vadd.s32 3096, %v3806_v2  ;;  %v2562_v9 = vsel %vm2050_vm14, %v511_v60, 0.0  ;;  %v1542_v11 = vadd.s32 %v3809_v4, %v1028_v58  ;;  %v521_v58 = vld [vmem:[%s3801_s12 + $0xc40] sm:$0xff] }
 0x301   : > { %vm2053_vm1 = vcmp.lt.s32.totalorder %v1541_v5, 4800  ;;  %v3075_v18 = vmul.f32 %v2562_v9, %v2562_v9 }
 0x302   : > { %v3574_v21 = vadd.f32 %v3573_v15, %v3063_v8  ;;  %v1030_v8 = vadd.s32 3104, %v3806_v2  ;;  %v2563_v15 = vsel %vm2051_vm15, %v512_v3, 0.0  ;;  %v1543_v17 = vadd.s32 %v3809_v4, %v1029_v0  ;;  %v522_v0 = vld [vmem:[%s3801_s12 + $0xc48] sm:$0xff] }
 0x303   : > { %vm2054_vm2 = vcmp.lt.s32.totalorder %v1542_v11, 4800  ;;  %v3076_v24 = vmul.f32 %v2563_v15, %v2563_v15 }
 0x304   : > { %v3575_v27 = vadd.f32 %v3574_v21, %v3064_v14  ;;  %v1031_v14 = vadd.s32 3112, %v3806_v2  ;;  %v2564_v21 = vsel %vm2052_vm0, %v513_v10, 0.0  ;;  %v1544_v23 = vadd.s32 %v3809_v4, %v1030_v8  ;;  %v523_v8 = vld [vmem:[%s3801_s12 + $0xc50] sm:$0xff] }
 0x305   : > { %vm2055_vm3 = vcmp.lt.s32.totalorder %v1543_v17, 4800  ;;  %v3077_v30 = vmul.f32 %v2564_v21, %v2564_v21 }
 0x306   : > { %v3576_v33 = vadd.f32 %v3575_v27, %v3065_v20  ;;  %v1032_v20 = vadd.s32 3120, %v3806_v2  ;;  %v2565_v27 = vsel %vm2053_vm1, %v514_v16, 0.0  ;;  %v1545_v29 = vadd.s32 %v3809_v4, %v1031_v14  ;;  %v524_v14 = vld [vmem:[%s3801_s12 + $0xc58] sm:$0xff] }
 0x307   : > { %vm2056_vm4 = vcmp.lt.s32.totalorder %v1544_v23, 4800  ;;  %v3078_v36 = vmul.f32 %v2565_v27, %v2565_v27 }
 0x308   : > { %v3577_v39 = vadd.f32 %v3576_v33, %v3066_v26  ;;  %v1033_v26 = vadd.s32 3128, %v3806_v2  ;;  %v2566_v33 = vsel %vm2054_vm2, %v515_v22, 0.0  ;;  %v1546_v35 = vadd.s32 %v3809_v4, %v1032_v20  ;;  %v525_v20 = vld [vmem:[%s3801_s12 + $0xc60] sm:$0xff] }
 0x309   : > { %vm2057_vm5 = vcmp.lt.s32.totalorder %v1545_v29, 4800  ;;  %v3079_v42 = vmul.f32 %v2566_v33, %v2566_v33 }
 0x30a   : > { %v3578_v45 = vadd.f32 %v3577_v39, %v3067_v32  ;;  %v1034_v32 = vadd.s32 3136, %v3806_v2  ;;  %v2567_v39 = vsel %vm2055_vm3, %v516_v28, 0.0  ;;  %v1547_v41 = vadd.s32 %v3809_v4, %v1033_v26  ;;  %v526_v26 = vld [vmem:[%s3801_s12 + $0xc68] sm:$0xff] }
 0x30b   : > { %vm2058_vm6 = vcmp.lt.s32.totalorder %v1546_v35, 4800  ;;  %v3080_v48 = vmul.f32 %v2567_v39, %v2567_v39 }
 0x30c   : > { %v3579_v51 = vadd.f32 %v3578_v45, %v3068_v38  ;;  %v1035_v38 = vadd.s32 3144, %v3806_v2  ;;  %v2568_v45 = vsel %vm2056_vm4, %v517_v34, 0.0  ;;  %v1548_v47 = vadd.s32 %v3809_v4, %v1034_v32  ;;  %v527_v32 = vld [vmem:[%s3801_s12 + $0xc70] sm:$0xff] }
 0x30d   : > { %vm2059_vm7 = vcmp.lt.s32.totalorder %v1547_v41, 4800  ;;  %v3081_v54 = vmul.f32 %v2568_v45, %v2568_v45 }
 0x30e   : > { %v3580_v57 = vadd.f32 %v3579_v51, %v3069_v44  ;;  %v1036_v44 = vadd.s32 3152, %v3806_v2  ;;  %v2569_v51 = vsel %vm2057_vm5, %v518_v40, 0.0  ;;  %v1549_v53 = vadd.s32 %v3809_v4, %v1035_v38  ;;  %v528_v38 = vld [vmem:[%s3801_s12 + $0xc78] sm:$0xff] }
 0x30f   : > { %vm2060_vm8 = vcmp.lt.s32.totalorder %v1548_v47, 4800  ;;  %v3082_v60 = vmul.f32 %v2569_v51, %v2569_v51 }
 0x310   : > { %v3581_v63 = vadd.f32 %v3580_v57, %v3070_v50  ;;  %v1037_v50 = vadd.s32 3160, %v3806_v2  ;;  %v2570_v57 = vsel %vm2058_vm6, %v519_v46, 0.0  ;;  %v1550_v59 = vadd.s32 %v3809_v4, %v1036_v44  ;;  %v529_v44 = vld [vmem:[%s3801_s12 + $0xc80] sm:$0xff] }
 0x311   : > { %vm2061_vm9 = vcmp.lt.s32.totalorder %v1549_v53, 4800  ;;  %v3083_v3 = vmul.f32 %v2570_v57, %v2570_v57 }
 0x312   : > { %v3582_v7 = vadd.f32 %v3581_v63, %v3071_v56  ;;  %v1038_v56 = vadd.s32 3168, %v3806_v2  ;;  %v2571_v63 = vsel %vm2059_vm7, %v520_v52, 0.0  ;;  %v1551_v1 = vadd.s32 %v3809_v4, %v1037_v50  ;;  %v530_v50 = vld [vmem:[%s3801_s12 + $0xc88] sm:$0xff] }
 0x313   : > { %vm2062_vm10 = vcmp.lt.s32.totalorder %v1550_v59, 4800  ;;  %v3084_v10 = vmul.f32 %v2571_v63, %v2571_v63 }
 0x314   : > { %v3583_v13 = vadd.f32 %v3582_v7, %v3072_v62  ;;  %v1039_v62 = vadd.s32 3176, %v3806_v2  ;;  %v2572_v7 = vsel %vm2060_vm8, %v521_v58, 0.0  ;;  %v1552_v9 = vadd.s32 %v3809_v4, %v1038_v56  ;;  %v531_v56 = vld [vmem:[%s3801_s12 + $0xc90] sm:$0xff] }
 0x315   : > { %vm2063_vm11 = vcmp.lt.s32.totalorder %v1551_v1, 4800  ;;  %v3085_v16 = vmul.f32 %v2572_v7, %v2572_v7 }
 0x316   : > { %v3584_v19 = vadd.f32 %v3583_v13, %v3073_v6  ;;  %v1040_v6 = vadd.s32 3184, %v3806_v2  ;;  %v2573_v13 = vsel %vm2061_vm9, %v522_v0, 0.0  ;;  %v1553_v15 = vadd.s32 %v3809_v4, %v1039_v62  ;;  %v532_v62 = vld [vmem:[%s3801_s12 + $0xc98] sm:$0xff] }
 0x317   : > { %vm2064_vm12 = vcmp.lt.s32.totalorder %v1552_v9, 4800  ;;  %v3086_v22 = vmul.f32 %v2573_v13, %v2573_v13 }
 0x318   : > { %v3585_v25 = vadd.f32 %v3584_v19, %v3074_v12  ;;  %v1041_v12 = vadd.s32 3192, %v3806_v2  ;;  %v2574_v19 = vsel %vm2062_vm10, %v523_v8, 0.0  ;;  %v1554_v21 = vadd.s32 %v3809_v4, %v1040_v6  ;;  %v533_v6 = vld [vmem:[%s3801_s12 + $0xca0] sm:$0xff] }
 0x319   : > { %vm2065_vm13 = vcmp.lt.s32.totalorder %v1553_v15, 4800  ;;  %v3087_v28 = vmul.f32 %v2574_v19, %v2574_v19 }
 0x31a   : > { %v3586_v31 = vadd.f32 %v3585_v25, %v3075_v18  ;;  %v1042_v18 = vadd.s32 3200, %v3806_v2  ;;  %v2575_v25 = vsel %vm2063_vm11, %v524_v14, 0.0  ;;  %v1555_v27 = vadd.s32 %v3809_v4, %v1041_v12  ;;  %v534_v12 = vld [vmem:[%s3801_s12 + $0xca8] sm:$0xff] }
 0x31b   : > { %vm2066_vm14 = vcmp.lt.s32.totalorder %v1554_v21, 4800  ;;  %v3088_v34 = vmul.f32 %v2575_v25, %v2575_v25 }
 0x31c   : > { %v3587_v37 = vadd.f32 %v3586_v31, %v3076_v24  ;;  %v1043_v24 = vadd.s32 3208, %v3806_v2  ;;  %v2576_v31 = vsel %vm2064_vm12, %v525_v20, 0.0  ;;  %v1556_v33 = vadd.s32 %v3809_v4, %v1042_v18  ;;  %v535_v18 = vld [vmem:[%s3801_s12 + $0xcb0] sm:$0xff] }
 0x31d   : > { %vm2067_vm15 = vcmp.lt.s32.totalorder %v1555_v27, 4800  ;;  %v3089_v40 = vmul.f32 %v2576_v31, %v2576_v31 }
 0x31e   : > { %v3588_v43 = vadd.f32 %v3587_v37, %v3077_v30  ;;  %v1044_v30 = vadd.s32 3216, %v3806_v2  ;;  %v2577_v37 = vsel %vm2065_vm13, %v526_v26, 0.0  ;;  %v1557_v39 = vadd.s32 %v3809_v4, %v1043_v24  ;;  %v536_v24 = vld [vmem:[%s3801_s12 + $0xcb8] sm:$0xff] }
 0x31f   : > { %vm2068_vm0 = vcmp.lt.s32.totalorder %v1556_v33, 4800  ;;  %v3090_v46 = vmul.f32 %v2577_v37, %v2577_v37 }
 0x320   : > { %v3589_v49 = vadd.f32 %v3588_v43, %v3078_v36  ;;  %v1045_v36 = vadd.s32 3224, %v3806_v2  ;;  %v2578_v43 = vsel %vm2066_vm14, %v527_v32, 0.0  ;;  %v1558_v45 = vadd.s32 %v3809_v4, %v1044_v30  ;;  %v537_v30 = vld [vmem:[%s3801_s12 + $0xcc0] sm:$0xff] }
 0x321   : > { %vm2069_vm1 = vcmp.lt.s32.totalorder %v1557_v39, 4800  ;;  %v3091_v52 = vmul.f32 %v2578_v43, %v2578_v43 }
 0x322   : > { %v3590_v55 = vadd.f32 %v3589_v49, %v3079_v42  ;;  %v1046_v42 = vadd.s32 3232, %v3806_v2  ;;  %v2579_v49 = vsel %vm2067_vm15, %v528_v38, 0.0  ;;  %v1559_v51 = vadd.s32 %v3809_v4, %v1045_v36  ;;  %v538_v36 = vld [vmem:[%s3801_s12 + $0xcc8] sm:$0xff] }
 0x323   : > { %vm2070_vm2 = vcmp.lt.s32.totalorder %v1558_v45, 4800  ;;  %v3092_v58 = vmul.f32 %v2579_v49, %v2579_v49 }
 0x324   : > { %v3591_v61 = vadd.f32 %v3590_v55, %v3080_v48  ;;  %v1047_v48 = vadd.s32 3240, %v3806_v2  ;;  %v2580_v55 = vsel %vm2068_vm0, %v529_v44, 0.0  ;;  %v1560_v57 = vadd.s32 %v3809_v4, %v1046_v42  ;;  %v539_v42 = vld [vmem:[%s3801_s12 + $0xcd0] sm:$0xff] }
 0x325   : > { %vm2071_vm3 = vcmp.lt.s32.totalorder %v1559_v51, 4800  ;;  %v3093_v0 = vmul.f32 %v2580_v55, %v2580_v55 }
 0x326   : > { %v3592_v5 = vadd.f32 %v3591_v61, %v3081_v54  ;;  %v1048_v54 = vadd.s32 3248, %v3806_v2  ;;  %v2581_v61 = vsel %vm2069_vm1, %v530_v50, 0.0  ;;  %v1561_v63 = vadd.s32 %v3809_v4, %v1047_v48  ;;  %v540_v48 = vld [vmem:[%s3801_s12 + $0xcd8] sm:$0xff] }
 0x327   : > { %vm2072_vm4 = vcmp.lt.s32.totalorder %v1560_v57, 4800  ;;  %v3094_v8 = vmul.f32 %v2581_v61, %v2581_v61 }
 0x328   : > { %v3593_v11 = vadd.f32 %v3592_v5, %v3082_v60  ;;  %v1049_v60 = vadd.s32 3256, %v3806_v2  ;;  %v2582_v5 = vsel %vm2070_vm2, %v531_v56, 0.0  ;;  %v1562_v7 = vadd.s32 %v3809_v4, %v1048_v54  ;;  %v541_v54 = vld [vmem:[%s3801_s12 + $0xce0] sm:$0xff] }
 0x329   : > { %vm2073_vm5 = vcmp.lt.s32.totalorder %v1561_v63, 4800  ;;  %v3095_v14 = vmul.f32 %v2582_v5, %v2582_v5 }
 0x32a   : > { %v3594_v17 = vadd.f32 %v3593_v11, %v3083_v3  ;;  %v1050_v3 = vadd.s32 3264, %v3806_v2  ;;  %v2583_v11 = vsel %vm2071_vm3, %v532_v62, 0.0  ;;  %v1563_v13 = vadd.s32 %v3809_v4, %v1049_v60  ;;  %v542_v60 = vld [vmem:[%s3801_s12 + $0xce8] sm:$0xff] }
 0x32b   : > { %vm2074_vm6 = vcmp.lt.s32.totalorder %v1562_v7, 4800  ;;  %v3096_v20 = vmul.f32 %v2583_v11, %v2583_v11 }
 0x32c   : > { %v3595_v23 = vadd.f32 %v3594_v17, %v3084_v10  ;;  %v1051_v10 = vadd.s32 3272, %v3806_v2  ;;  %v2584_v17 = vsel %vm2072_vm4, %v533_v6, 0.0  ;;  %v1564_v19 = vadd.s32 %v3809_v4, %v1050_v3  ;;  %v543_v3 = vld [vmem:[%s3801_s12 + $0xcf0] sm:$0xff] }
 0x32d   : > { %vm2075_vm7 = vcmp.lt.s32.totalorder %v1563_v13, 4800  ;;  %v3097_v26 = vmul.f32 %v2584_v17, %v2584_v17 }
 0x32e   : > { %v3596_v29 = vadd.f32 %v3595_v23, %v3085_v16  ;;  %v1052_v16 = vadd.s32 3280, %v3806_v2  ;;  %v2585_v23 = vsel %vm2073_vm5, %v534_v12, 0.0  ;;  %v1565_v25 = vadd.s32 %v3809_v4, %v1051_v10  ;;  %v544_v10 = vld [vmem:[%s3801_s12 + $0xcf8] sm:$0xff] }
 0x32f   : > { %vm2076_vm8 = vcmp.lt.s32.totalorder %v1564_v19, 4800  ;;  %v3098_v32 = vmul.f32 %v2585_v23, %v2585_v23 }
 0x330   : > { %v3597_v35 = vadd.f32 %v3596_v29, %v3086_v22  ;;  %v1053_v22 = vadd.s32 3288, %v3806_v2  ;;  %v2586_v29 = vsel %vm2074_vm6, %v535_v18, 0.0  ;;  %v1566_v31 = vadd.s32 %v3809_v4, %v1052_v16  ;;  %v545_v16 = vld [vmem:[%s3801_s12 + $0xd00] sm:$0xff] }
 0x331   : > { %vm2077_vm9 = vcmp.lt.s32.totalorder %v1565_v25, 4800  ;;  %v3099_v38 = vmul.f32 %v2586_v29, %v2586_v29 }
 0x332   : > { %v3598_v41 = vadd.f32 %v3597_v35, %v3087_v28  ;;  %v1054_v28 = vadd.s32 3296, %v3806_v2  ;;  %v2587_v35 = vsel %vm2075_vm7, %v536_v24, 0.0  ;;  %v1567_v37 = vadd.s32 %v3809_v4, %v1053_v22  ;;  %v546_v22 = vld [vmem:[%s3801_s12 + $0xd08] sm:$0xff] }
 0x333   : > { %vm2078_vm10 = vcmp.lt.s32.totalorder %v1566_v31, 4800  ;;  %v3100_v44 = vmul.f32 %v2587_v35, %v2587_v35 }
 0x334   : > { %v3599_v47 = vadd.f32 %v3598_v41, %v3088_v34  ;;  %v1055_v34 = vadd.s32 3304, %v3806_v2  ;;  %v2588_v41 = vsel %vm2076_vm8, %v537_v30, 0.0  ;;  %v1568_v43 = vadd.s32 %v3809_v4, %v1054_v28  ;;  %v547_v28 = vld [vmem:[%s3801_s12 + $0xd10] sm:$0xff] }
 0x335   : > { %vm2079_vm11 = vcmp.lt.s32.totalorder %v1567_v37, 4800  ;;  %v3101_v50 = vmul.f32 %v2588_v41, %v2588_v41 }
 0x336   : > { %v3600_v53 = vadd.f32 %v3599_v47, %v3089_v40  ;;  %v1056_v40 = vadd.s32 3312, %v3806_v2  ;;  %v2589_v47 = vsel %vm2077_vm9, %v538_v36, 0.0  ;;  %v1569_v49 = vadd.s32 %v3809_v4, %v1055_v34  ;;  %v548_v34 = vld [vmem:[%s3801_s12 + $0xd18] sm:$0xff] }
 0x337   : > { %vm2080_vm12 = vcmp.lt.s32.totalorder %v1568_v43, 4800  ;;  %v3102_v56 = vmul.f32 %v2589_v47, %v2589_v47 }
 0x338   : > { %v3601_v59 = vadd.f32 %v3600_v53, %v3090_v46  ;;  %v1057_v46 = vadd.s32 3320, %v3806_v2  ;;  %v2590_v53 = vsel %vm2078_vm10, %v539_v42, 0.0  ;;  %v1570_v55 = vadd.s32 %v3809_v4, %v1056_v40  ;;  %v549_v40 = vld [vmem:[%s3801_s12 + $0xd20] sm:$0xff] }
 0x339   : > { %vm2081_vm13 = vcmp.lt.s32.totalorder %v1569_v49, 4800  ;;  %v3103_v62 = vmul.f32 %v2590_v53, %v2590_v53 }
 0x33a   : > { %v3602_v1 = vadd.f32 %v3601_v59, %v3091_v52  ;;  %v1058_v52 = vadd.s32 3328, %v3806_v2  ;;  %v2591_v59 = vsel %vm2079_vm11, %v540_v48, 0.0  ;;  %v1571_v61 = vadd.s32 %v3809_v4, %v1057_v46  ;;  %v550_v46 = vld [vmem:[%s3801_s12 + $0xd28] sm:$0xff] }
 0x33b   : > { %vm2082_vm14 = vcmp.lt.s32.totalorder %v1570_v55, 4800  ;;  %v3104_v6 = vmul.f32 %v2591_v59, %v2591_v59 }
 0x33c   : > { %v3603_v9 = vadd.f32 %v3602_v1, %v3092_v58  ;;  %v1059_v58 = vadd.s32 3336, %v3806_v2  ;;  %v2592_v1 = vsel %vm2080_vm12, %v541_v54, 0.0  ;;  %v1572_v5 = vadd.s32 %v3809_v4, %v1058_v52  ;;  %v551_v52 = vld [vmem:[%s3801_s12 + $0xd30] sm:$0xff] }
 0x33d   : > { %vm2083_vm15 = vcmp.lt.s32.totalorder %v1571_v61, 4800  ;;  %v3105_v12 = vmul.f32 %v2592_v1, %v2592_v1 }
 0x33e   : > { %v3604_v15 = vadd.f32 %v3603_v9, %v3093_v0  ;;  %v1060_v0 = vadd.s32 3344, %v3806_v2  ;;  %v2593_v9 = vsel %vm2081_vm13, %v542_v60, 0.0  ;;  %v1573_v11 = vadd.s32 %v3809_v4, %v1059_v58  ;;  %v552_v58 = vld [vmem:[%s3801_s12 + $0xd38] sm:$0xff] }
 0x33f   : > { %vm2084_vm0 = vcmp.lt.s32.totalorder %v1572_v5, 4800  ;;  %v3106_v18 = vmul.f32 %v2593_v9, %v2593_v9 }
 0x340   : > { %v3605_v21 = vadd.f32 %v3604_v15, %v3094_v8  ;;  %v1061_v8 = vadd.s32 3352, %v3806_v2  ;;  %v2594_v15 = vsel %vm2082_vm14, %v543_v3, 0.0  ;;  %v1574_v17 = vadd.s32 %v3809_v4, %v1060_v0  ;;  %v553_v0 = vld [vmem:[%s3801_s12 + $0xd40] sm:$0xff] }
 0x341   : > { %vm2085_vm1 = vcmp.lt.s32.totalorder %v1573_v11, 4800  ;;  %v3107_v24 = vmul.f32 %v2594_v15, %v2594_v15 }
 0x342   : > { %v3606_v27 = vadd.f32 %v3605_v21, %v3095_v14  ;;  %v1062_v14 = vadd.s32 3360, %v3806_v2  ;;  %v2595_v21 = vsel %vm2083_vm15, %v544_v10, 0.0  ;;  %v1575_v23 = vadd.s32 %v3809_v4, %v1061_v8  ;;  %v554_v8 = vld [vmem:[%s3801_s12 + $0xd48] sm:$0xff] }
 0x343   : > { %vm2086_vm2 = vcmp.lt.s32.totalorder %v1574_v17, 4800  ;;  %v3108_v30 = vmul.f32 %v2595_v21, %v2595_v21 }
 0x344   : > { %v3607_v33 = vadd.f32 %v3606_v27, %v3096_v20  ;;  %v1063_v20 = vadd.s32 3368, %v3806_v2  ;;  %v2596_v27 = vsel %vm2084_vm0, %v545_v16, 0.0  ;;  %v1576_v29 = vadd.s32 %v3809_v4, %v1062_v14  ;;  %v555_v14 = vld [vmem:[%s3801_s12 + $0xd50] sm:$0xff] }
 0x345   : > { %vm2087_vm3 = vcmp.lt.s32.totalorder %v1575_v23, 4800  ;;  %v3109_v36 = vmul.f32 %v2596_v27, %v2596_v27 }
 0x346   : > { %v3608_v39 = vadd.f32 %v3607_v33, %v3097_v26  ;;  %v1064_v26 = vadd.s32 3376, %v3806_v2  ;;  %v2597_v33 = vsel %vm2085_vm1, %v546_v22, 0.0  ;;  %v1577_v35 = vadd.s32 %v3809_v4, %v1063_v20  ;;  %v556_v20 = vld [vmem:[%s3801_s12 + $0xd58] sm:$0xff] }
 0x347   : > { %vm2088_vm4 = vcmp.lt.s32.totalorder %v1576_v29, 4800  ;;  %v3110_v42 = vmul.f32 %v2597_v33, %v2597_v33 }
 0x348   : > { %v3609_v45 = vadd.f32 %v3608_v39, %v3098_v32  ;;  %v1065_v32 = vadd.s32 3384, %v3806_v2  ;;  %v2598_v39 = vsel %vm2086_vm2, %v547_v28, 0.0  ;;  %v1578_v41 = vadd.s32 %v3809_v4, %v1064_v26  ;;  %v557_v26 = vld [vmem:[%s3801_s12 + $0xd60] sm:$0xff] }
 0x349   : > { %vm2089_vm5 = vcmp.lt.s32.totalorder %v1577_v35, 4800  ;;  %v3111_v48 = vmul.f32 %v2598_v39, %v2598_v39 }
 0x34a   : > { %v3610_v51 = vadd.f32 %v3609_v45, %v3099_v38  ;;  %v1066_v38 = vadd.s32 3392, %v3806_v2  ;;  %v2599_v45 = vsel %vm2087_vm3, %v548_v34, 0.0  ;;  %v1579_v47 = vadd.s32 %v3809_v4, %v1065_v32  ;;  %v558_v32 = vld [vmem:[%s3801_s12 + $0xd68] sm:$0xff] }
 0x34b   : > { %vm2090_vm6 = vcmp.lt.s32.totalorder %v1578_v41, 4800  ;;  %v3112_v54 = vmul.f32 %v2599_v45, %v2599_v45 }
 0x34c   : > { %v3611_v57 = vadd.f32 %v3610_v51, %v3100_v44  ;;  %v1067_v44 = vadd.s32 3400, %v3806_v2  ;;  %v2600_v51 = vsel %vm2088_vm4, %v549_v40, 0.0  ;;  %v1580_v53 = vadd.s32 %v3809_v4, %v1066_v38  ;;  %v559_v38 = vld [vmem:[%s3801_s12 + $0xd70] sm:$0xff] }
 0x34d   : > { %vm2091_vm7 = vcmp.lt.s32.totalorder %v1579_v47, 4800  ;;  %v3113_v60 = vmul.f32 %v2600_v51, %v2600_v51 }
 0x34e   : > { %v3612_v63 = vadd.f32 %v3611_v57, %v3101_v50  ;;  %v1068_v50 = vadd.s32 3408, %v3806_v2  ;;  %v2601_v57 = vsel %vm2089_vm5, %v550_v46, 0.0  ;;  %v1581_v59 = vadd.s32 %v3809_v4, %v1067_v44  ;;  %v560_v44 = vld [vmem:[%s3801_s12 + $0xd78] sm:$0xff] }
 0x34f   : > { %vm2092_vm8 = vcmp.lt.s32.totalorder %v1580_v53, 4800  ;;  %v3114_v3 = vmul.f32 %v2601_v57, %v2601_v57 }
 0x350   : > { %v3613_v7 = vadd.f32 %v3612_v63, %v3102_v56  ;;  %v1069_v56 = vadd.s32 3416, %v3806_v2  ;;  %v2602_v63 = vsel %vm2090_vm6, %v551_v52, 0.0  ;;  %v1582_v1 = vadd.s32 %v3809_v4, %v1068_v50  ;;  %v561_v50 = vld [vmem:[%s3801_s12 + $0xd80] sm:$0xff] }
 0x351   : > { %vm2093_vm9 = vcmp.lt.s32.totalorder %v1581_v59, 4800  ;;  %v3115_v10 = vmul.f32 %v2602_v63, %v2602_v63 }
 0x352   : > { %v3614_v13 = vadd.f32 %v3613_v7, %v3103_v62  ;;  %v1070_v62 = vadd.s32 3424, %v3806_v2  ;;  %v2603_v7 = vsel %vm2091_vm7, %v552_v58, 0.0  ;;  %v1583_v9 = vadd.s32 %v3809_v4, %v1069_v56  ;;  %v562_v56 = vld [vmem:[%s3801_s12 + $0xd88] sm:$0xff] }
 0x353   : > { %vm2094_vm10 = vcmp.lt.s32.totalorder %v1582_v1, 4800  ;;  %v3116_v16 = vmul.f32 %v2603_v7, %v2603_v7 }
 0x354   : > { %v3615_v19 = vadd.f32 %v3614_v13, %v3104_v6  ;;  %v1071_v6 = vadd.s32 3432, %v3806_v2  ;;  %v2604_v13 = vsel %vm2092_vm8, %v553_v0, 0.0  ;;  %v1584_v15 = vadd.s32 %v3809_v4, %v1070_v62  ;;  %v563_v62 = vld [vmem:[%s3801_s12 + $0xd90] sm:$0xff] }
 0x355   : > { %vm2095_vm11 = vcmp.lt.s32.totalorder %v1583_v9, 4800  ;;  %v3117_v22 = vmul.f32 %v2604_v13, %v2604_v13 }
 0x356   : > { %v3616_v25 = vadd.f32 %v3615_v19, %v3105_v12  ;;  %v1072_v12 = vadd.s32 3440, %v3806_v2  ;;  %v2605_v19 = vsel %vm2093_vm9, %v554_v8, 0.0  ;;  %v1585_v21 = vadd.s32 %v3809_v4, %v1071_v6  ;;  %v564_v6 = vld [vmem:[%s3801_s12 + $0xd98] sm:$0xff] }
 0x357   : > { %vm2096_vm12 = vcmp.lt.s32.totalorder %v1584_v15, 4800  ;;  %v3118_v28 = vmul.f32 %v2605_v19, %v2605_v19 }
 0x358   : > { %v3617_v31 = vadd.f32 %v3616_v25, %v3106_v18  ;;  %v1073_v18 = vadd.s32 3448, %v3806_v2  ;;  %v2606_v25 = vsel %vm2094_vm10, %v555_v14, 0.0  ;;  %v1586_v27 = vadd.s32 %v3809_v4, %v1072_v12  ;;  %v565_v12 = vld [vmem:[%s3801_s12 + $0xda0] sm:$0xff] }
 0x359   : > { %vm2097_vm13 = vcmp.lt.s32.totalorder %v1585_v21, 4800  ;;  %v3119_v34 = vmul.f32 %v2606_v25, %v2606_v25 }
 0x35a   : > { %v3618_v37 = vadd.f32 %v3617_v31, %v3107_v24  ;;  %v1074_v24 = vadd.s32 3456, %v3806_v2  ;;  %v2607_v31 = vsel %vm2095_vm11, %v556_v20, 0.0  ;;  %v1587_v33 = vadd.s32 %v3809_v4, %v1073_v18  ;;  %v566_v18 = vld [vmem:[%s3801_s12 + $0xda8] sm:$0xff] }
 0x35b   : > { %vm2098_vm14 = vcmp.lt.s32.totalorder %v1586_v27, 4800  ;;  %v3120_v40 = vmul.f32 %v2607_v31, %v2607_v31 }
 0x35c   : > { %v3619_v43 = vadd.f32 %v3618_v37, %v3108_v30  ;;  %v1075_v30 = vadd.s32 3464, %v3806_v2  ;;  %v2608_v37 = vsel %vm2096_vm12, %v557_v26, 0.0  ;;  %v1588_v39 = vadd.s32 %v3809_v4, %v1074_v24  ;;  %v567_v24 = vld [vmem:[%s3801_s12 + $0xdb0] sm:$0xff] }
 0x35d   : > { %vm2099_vm15 = vcmp.lt.s32.totalorder %v1587_v33, 4800  ;;  %v3121_v46 = vmul.f32 %v2608_v37, %v2608_v37 }
 0x35e   : > { %v3620_v49 = vadd.f32 %v3619_v43, %v3109_v36  ;;  %v1076_v36 = vadd.s32 3472, %v3806_v2  ;;  %v2609_v43 = vsel %vm2097_vm13, %v558_v32, 0.0  ;;  %v1589_v45 = vadd.s32 %v3809_v4, %v1075_v30  ;;  %v568_v30 = vld [vmem:[%s3801_s12 + $0xdb8] sm:$0xff] }
 0x35f   : > { %vm2100_vm0 = vcmp.lt.s32.totalorder %v1588_v39, 4800  ;;  %v3122_v52 = vmul.f32 %v2609_v43, %v2609_v43 }
 0x360   : > { %v3621_v55 = vadd.f32 %v3620_v49, %v3110_v42  ;;  %v1077_v42 = vadd.s32 3480, %v3806_v2  ;;  %v2610_v49 = vsel %vm2098_vm14, %v559_v38, 0.0  ;;  %v1590_v51 = vadd.s32 %v3809_v4, %v1076_v36  ;;  %v569_v36 = vld [vmem:[%s3801_s12 + $0xdc0] sm:$0xff] }
 0x361   : > { %vm2101_vm1 = vcmp.lt.s32.totalorder %v1589_v45, 4800  ;;  %v3123_v58 = vmul.f32 %v2610_v49, %v2610_v49 }
 0x362   : > { %v3622_v61 = vadd.f32 %v3621_v55, %v3111_v48  ;;  %v1078_v48 = vadd.s32 3488, %v3806_v2  ;;  %v2611_v55 = vsel %vm2099_vm15, %v560_v44, 0.0  ;;  %v1591_v57 = vadd.s32 %v3809_v4, %v1077_v42  ;;  %v570_v42 = vld [vmem:[%s3801_s12 + $0xdc8] sm:$0xff] }
 0x363   : > { %vm2102_vm2 = vcmp.lt.s32.totalorder %v1590_v51, 4800  ;;  %v3124_v0 = vmul.f32 %v2611_v55, %v2611_v55 }
 0x364   : > { %v3623_v5 = vadd.f32 %v3622_v61, %v3112_v54  ;;  %v1079_v54 = vadd.s32 3496, %v3806_v2  ;;  %v2612_v61 = vsel %vm2100_vm0, %v561_v50, 0.0  ;;  %v1592_v63 = vadd.s32 %v3809_v4, %v1078_v48  ;;  %v571_v48 = vld [vmem:[%s3801_s12 + $0xdd0] sm:$0xff] }
 0x365   : > { %vm2103_vm3 = vcmp.lt.s32.totalorder %v1591_v57, 4800  ;;  %v3125_v8 = vmul.f32 %v2612_v61, %v2612_v61 }
 0x366   : > { %v3624_v11 = vadd.f32 %v3623_v5, %v3113_v60  ;;  %v1080_v60 = vadd.s32 3504, %v3806_v2  ;;  %v2613_v5 = vsel %vm2101_vm1, %v562_v56, 0.0  ;;  %v1593_v7 = vadd.s32 %v3809_v4, %v1079_v54  ;;  %v572_v54 = vld [vmem:[%s3801_s12 + $0xdd8] sm:$0xff] }
 0x367   : > { %vm2104_vm4 = vcmp.lt.s32.totalorder %v1592_v63, 4800  ;;  %v3126_v14 = vmul.f32 %v2613_v5, %v2613_v5 }
 0x368   : > { %v3625_v17 = vadd.f32 %v3624_v11, %v3114_v3  ;;  %v1081_v3 = vadd.s32 3512, %v3806_v2  ;;  %v2614_v11 = vsel %vm2102_vm2, %v563_v62, 0.0  ;;  %v1594_v13 = vadd.s32 %v3809_v4, %v1080_v60  ;;  %v573_v60 = vld [vmem:[%s3801_s12 + $0xde0] sm:$0xff] }
 0x369   : > { %vm2105_vm5 = vcmp.lt.s32.totalorder %v1593_v7, 4800  ;;  %v3127_v20 = vmul.f32 %v2614_v11, %v2614_v11 }
 0x36a   : > { %v3626_v23 = vadd.f32 %v3625_v17, %v3115_v10  ;;  %v1082_v10 = vadd.s32 3520, %v3806_v2  ;;  %v2615_v17 = vsel %vm2103_vm3, %v564_v6, 0.0  ;;  %v1595_v19 = vadd.s32 %v3809_v4, %v1081_v3  ;;  %v574_v3 = vld [vmem:[%s3801_s12 + $0xde8] sm:$0xff] }
 0x36b   : > { %vm2106_vm6 = vcmp.lt.s32.totalorder %v1594_v13, 4800  ;;  %v3128_v26 = vmul.f32 %v2615_v17, %v2615_v17 }
 0x36c   : > { %v3627_v29 = vadd.f32 %v3626_v23, %v3116_v16  ;;  %v1083_v16 = vadd.s32 3528, %v3806_v2  ;;  %v2616_v23 = vsel %vm2104_vm4, %v565_v12, 0.0  ;;  %v1596_v25 = vadd.s32 %v3809_v4, %v1082_v10  ;;  %v575_v10 = vld [vmem:[%s3801_s12 + $0xdf0] sm:$0xff] }
 0x36d   : > { %vm2107_vm7 = vcmp.lt.s32.totalorder %v1595_v19, 4800  ;;  %v3129_v32 = vmul.f32 %v2616_v23, %v2616_v23 }
 0x36e   : > { %v3628_v35 = vadd.f32 %v3627_v29, %v3117_v22  ;;  %v1084_v22 = vadd.s32 3536, %v3806_v2  ;;  %v2617_v29 = vsel %vm2105_vm5, %v566_v18, 0.0  ;;  %v1597_v31 = vadd.s32 %v3809_v4, %v1083_v16  ;;  %v576_v16 = vld [vmem:[%s3801_s12 + $0xdf8] sm:$0xff] }
 0x36f   : > { %vm2108_vm8 = vcmp.lt.s32.totalorder %v1596_v25, 4800  ;;  %v3130_v38 = vmul.f32 %v2617_v29, %v2617_v29 }
 0x370   : > { %v3629_v41 = vadd.f32 %v3628_v35, %v3118_v28  ;;  %v1085_v28 = vadd.s32 3544, %v3806_v2  ;;  %v2618_v35 = vsel %vm2106_vm6, %v567_v24, 0.0  ;;  %v1598_v37 = vadd.s32 %v3809_v4, %v1084_v22  ;;  %v577_v22 = vld [vmem:[%s3801_s12 + $0xe00] sm:$0xff] }
 0x371   : > { %vm2109_vm9 = vcmp.lt.s32.totalorder %v1597_v31, 4800  ;;  %v3131_v44 = vmul.f32 %v2618_v35, %v2618_v35 }
 0x372   : > { %v3630_v47 = vadd.f32 %v3629_v41, %v3119_v34  ;;  %v1086_v34 = vadd.s32 3552, %v3806_v2  ;;  %v2619_v41 = vsel %vm2107_vm7, %v568_v30, 0.0  ;;  %v1599_v43 = vadd.s32 %v3809_v4, %v1085_v28  ;;  %v578_v28 = vld [vmem:[%s3801_s12 + $0xe08] sm:$0xff] }
 0x373   : > { %vm2110_vm10 = vcmp.lt.s32.totalorder %v1598_v37, 4800  ;;  %v3132_v50 = vmul.f32 %v2619_v41, %v2619_v41 }
 0x374   : > { %v3631_v53 = vadd.f32 %v3630_v47, %v3120_v40  ;;  %v1087_v40 = vadd.s32 3560, %v3806_v2  ;;  %v2620_v47 = vsel %vm2108_vm8, %v569_v36, 0.0  ;;  %v1600_v49 = vadd.s32 %v3809_v4, %v1086_v34  ;;  %v579_v34 = vld [vmem:[%s3801_s12 + $0xe10] sm:$0xff] }
 0x375   : > { %vm2111_vm11 = vcmp.lt.s32.totalorder %v1599_v43, 4800  ;;  %v3133_v56 = vmul.f32 %v2620_v47, %v2620_v47 }
 0x376   : > { %v3632_v59 = vadd.f32 %v3631_v53, %v3121_v46  ;;  %v1088_v46 = vadd.s32 3568, %v3806_v2  ;;  %v2621_v53 = vsel %vm2109_vm9, %v570_v42, 0.0  ;;  %v1601_v55 = vadd.s32 %v3809_v4, %v1087_v40  ;;  %v580_v40 = vld [vmem:[%s3801_s12 + $0xe18] sm:$0xff] }
 0x377   : > { %vm2112_vm12 = vcmp.lt.s32.totalorder %v1600_v49, 4800  ;;  %v3134_v62 = vmul.f32 %v2621_v53, %v2621_v53 }
 0x378   : > { %v3633_v1 = vadd.f32 %v3632_v59, %v3122_v52  ;;  %v1089_v52 = vadd.s32 3576, %v3806_v2  ;;  %v2622_v59 = vsel %vm2110_vm10, %v571_v48, 0.0  ;;  %v1602_v61 = vadd.s32 %v3809_v4, %v1088_v46  ;;  %v581_v46 = vld [vmem:[%s3801_s12 + $0xe20] sm:$0xff] }
 0x379   : > { %vm2113_vm13 = vcmp.lt.s32.totalorder %v1601_v55, 4800  ;;  %v3135_v6 = vmul.f32 %v2622_v59, %v2622_v59 }
 0x37a   : > { %v3634_v9 = vadd.f32 %v3633_v1, %v3123_v58  ;;  %v1090_v58 = vadd.s32 3584, %v3806_v2  ;;  %v2623_v1 = vsel %vm2111_vm11, %v572_v54, 0.0  ;;  %v1603_v5 = vadd.s32 %v3809_v4, %v1089_v52  ;;  %v582_v52 = vld [vmem:[%s3801_s12 + $0xe28] sm:$0xff] }
 0x37b   : > { %vm2114_vm14 = vcmp.lt.s32.totalorder %v1602_v61, 4800  ;;  %v3136_v12 = vmul.f32 %v2623_v1, %v2623_v1 }
 0x37c   : > { %v3635_v15 = vadd.f32 %v3634_v9, %v3124_v0  ;;  %v1091_v0 = vadd.s32 3592, %v3806_v2  ;;  %v2624_v9 = vsel %vm2112_vm12, %v573_v60, 0.0  ;;  %v1604_v11 = vadd.s32 %v3809_v4, %v1090_v58  ;;  %v583_v58 = vld [vmem:[%s3801_s12 + $0xe30] sm:$0xff] }
 0x37d   : > { %vm2115_vm15 = vcmp.lt.s32.totalorder %v1603_v5, 4800  ;;  %v3137_v18 = vmul.f32 %v2624_v9, %v2624_v9 }
 0x37e   : > { %v3636_v21 = vadd.f32 %v3635_v15, %v3125_v8  ;;  %v1092_v8 = vadd.s32 3600, %v3806_v2  ;;  %v2625_v15 = vsel %vm2113_vm13, %v574_v3, 0.0  ;;  %v1605_v17 = vadd.s32 %v3809_v4, %v1091_v0  ;;  %v584_v0 = vld [vmem:[%s3801_s12 + $0xe38] sm:$0xff] }
 0x37f   : > { %vm2116_vm0 = vcmp.lt.s32.totalorder %v1604_v11, 4800  ;;  %v3138_v24 = vmul.f32 %v2625_v15, %v2625_v15 }
 0x380   : > { %v3637_v27 = vadd.f32 %v3636_v21, %v3126_v14  ;;  %v1093_v14 = vadd.s32 3608, %v3806_v2  ;;  %v2626_v21 = vsel %vm2114_vm14, %v575_v10, 0.0  ;;  %v1606_v23 = vadd.s32 %v3809_v4, %v1092_v8  ;;  %v585_v8 = vld [vmem:[%s3801_s12 + $0xe40] sm:$0xff] }
 0x381   : > { %vm2117_vm1 = vcmp.lt.s32.totalorder %v1605_v17, 4800  ;;  %v3139_v30 = vmul.f32 %v2626_v21, %v2626_v21 }
 0x382   : > { %v3638_v33 = vadd.f32 %v3637_v27, %v3127_v20  ;;  %v1094_v20 = vadd.s32 3616, %v3806_v2  ;;  %v2627_v27 = vsel %vm2115_vm15, %v576_v16, 0.0  ;;  %v1607_v29 = vadd.s32 %v3809_v4, %v1093_v14  ;;  %v586_v14 = vld [vmem:[%s3801_s12 + $0xe48] sm:$0xff] }
 0x383   : > { %vm2118_vm2 = vcmp.lt.s32.totalorder %v1606_v23, 4800  ;;  %v3140_v36 = vmul.f32 %v2627_v27, %v2627_v27 }
 0x384   : > { %v3639_v39 = vadd.f32 %v3638_v33, %v3128_v26  ;;  %v1095_v26 = vadd.s32 3624, %v3806_v2  ;;  %v2628_v33 = vsel %vm2116_vm0, %v577_v22, 0.0  ;;  %v1608_v35 = vadd.s32 %v3809_v4, %v1094_v20  ;;  %v587_v20 = vld [vmem:[%s3801_s12 + $0xe50] sm:$0xff] }
 0x385   : > { %vm2119_vm3 = vcmp.lt.s32.totalorder %v1607_v29, 4800  ;;  %v3141_v42 = vmul.f32 %v2628_v33, %v2628_v33 }
 0x386   : > { %v3640_v45 = vadd.f32 %v3639_v39, %v3129_v32  ;;  %v1096_v32 = vadd.s32 3632, %v3806_v2  ;;  %v2629_v39 = vsel %vm2117_vm1, %v578_v28, 0.0  ;;  %v1609_v41 = vadd.s32 %v3809_v4, %v1095_v26  ;;  %v588_v26 = vld [vmem:[%s3801_s12 + $0xe58] sm:$0xff] }
 0x387   : > { %vm2120_vm4 = vcmp.lt.s32.totalorder %v1608_v35, 4800  ;;  %v3142_v48 = vmul.f32 %v2629_v39, %v2629_v39 }
 0x388   : > { %v3641_v51 = vadd.f32 %v3640_v45, %v3130_v38  ;;  %v1097_v38 = vadd.s32 3640, %v3806_v2  ;;  %v2630_v45 = vsel %vm2118_vm2, %v579_v34, 0.0  ;;  %v1610_v47 = vadd.s32 %v3809_v4, %v1096_v32  ;;  %v589_v32 = vld [vmem:[%s3801_s12 + $0xe60] sm:$0xff] }
 0x389   : > { %vm2121_vm5 = vcmp.lt.s32.totalorder %v1609_v41, 4800  ;;  %v3143_v54 = vmul.f32 %v2630_v45, %v2630_v45 }
 0x38a   : > { %v3642_v57 = vadd.f32 %v3641_v51, %v3131_v44  ;;  %v1098_v44 = vadd.s32 3648, %v3806_v2  ;;  %v2631_v51 = vsel %vm2119_vm3, %v580_v40, 0.0  ;;  %v1611_v53 = vadd.s32 %v3809_v4, %v1097_v38  ;;  %v590_v38 = vld [vmem:[%s3801_s12 + $0xe68] sm:$0xff] }
 0x38b   : > { %vm2122_vm6 = vcmp.lt.s32.totalorder %v1610_v47, 4800  ;;  %v3144_v60 = vmul.f32 %v2631_v51, %v2631_v51 }
 0x38c   : > { %v3643_v63 = vadd.f32 %v3642_v57, %v3132_v50  ;;  %v1099_v50 = vadd.s32 3656, %v3806_v2  ;;  %v2632_v57 = vsel %vm2120_vm4, %v581_v46, 0.0  ;;  %v1612_v59 = vadd.s32 %v3809_v4, %v1098_v44  ;;  %v591_v44 = vld [vmem:[%s3801_s12 + $0xe70] sm:$0xff] }
 0x38d   : > { %vm2123_vm7 = vcmp.lt.s32.totalorder %v1611_v53, 4800  ;;  %v3145_v3 = vmul.f32 %v2632_v57, %v2632_v57 }
 0x38e   : > { %v3644_v7 = vadd.f32 %v3643_v63, %v3133_v56  ;;  %v1100_v56 = vadd.s32 3664, %v3806_v2  ;;  %v2633_v63 = vsel %vm2121_vm5, %v582_v52, 0.0  ;;  %v1613_v1 = vadd.s32 %v3809_v4, %v1099_v50  ;;  %v592_v50 = vld [vmem:[%s3801_s12 + $0xe78] sm:$0xff] }
 0x38f   : > { %vm2124_vm8 = vcmp.lt.s32.totalorder %v1612_v59, 4800  ;;  %v3146_v10 = vmul.f32 %v2633_v63, %v2633_v63 }
 0x390   : > { %v3645_v13 = vadd.f32 %v3644_v7, %v3134_v62  ;;  %v1101_v62 = vadd.s32 3672, %v3806_v2  ;;  %v2634_v7 = vsel %vm2122_vm6, %v583_v58, 0.0  ;;  %v1614_v9 = vadd.s32 %v3809_v4, %v1100_v56  ;;  %v593_v56 = vld [vmem:[%s3801_s12 + $0xe80] sm:$0xff] }
 0x391   : > { %vm2125_vm9 = vcmp.lt.s32.totalorder %v1613_v1, 4800  ;;  %v3147_v16 = vmul.f32 %v2634_v7, %v2634_v7 }
 0x392   : > { %v3646_v19 = vadd.f32 %v3645_v13, %v3135_v6  ;;  %v1102_v6 = vadd.s32 3680, %v3806_v2  ;;  %v2635_v13 = vsel %vm2123_vm7, %v584_v0, 0.0  ;;  %v1615_v15 = vadd.s32 %v3809_v4, %v1101_v62  ;;  %v594_v62 = vld [vmem:[%s3801_s12 + $0xe88] sm:$0xff] }
 0x393   : > { %vm2126_vm10 = vcmp.lt.s32.totalorder %v1614_v9, 4800  ;;  %v3148_v22 = vmul.f32 %v2635_v13, %v2635_v13 }
 0x394   : > { %v3647_v25 = vadd.f32 %v3646_v19, %v3136_v12  ;;  %v1103_v12 = vadd.s32 3688, %v3806_v2  ;;  %v2636_v19 = vsel %vm2124_vm8, %v585_v8, 0.0  ;;  %v1616_v21 = vadd.s32 %v3809_v4, %v1102_v6  ;;  %v595_v6 = vld [vmem:[%s3801_s12 + $0xe90] sm:$0xff] }
 0x395   : > { %vm2127_vm11 = vcmp.lt.s32.totalorder %v1615_v15, 4800  ;;  %v3149_v28 = vmul.f32 %v2636_v19, %v2636_v19 }
 0x396   : > { %v3648_v31 = vadd.f32 %v3647_v25, %v3137_v18  ;;  %v1104_v18 = vadd.s32 3696, %v3806_v2  ;;  %v2637_v25 = vsel %vm2125_vm9, %v586_v14, 0.0  ;;  %v1617_v27 = vadd.s32 %v3809_v4, %v1103_v12  ;;  %v596_v12 = vld [vmem:[%s3801_s12 + $0xe98] sm:$0xff] }
 0x397   : > { %vm2128_vm12 = vcmp.lt.s32.totalorder %v1616_v21, 4800  ;;  %v3150_v34 = vmul.f32 %v2637_v25, %v2637_v25 }
 0x398   : > { %v3649_v37 = vadd.f32 %v3648_v31, %v3138_v24  ;;  %v1105_v24 = vadd.s32 3704, %v3806_v2  ;;  %v2638_v31 = vsel %vm2126_vm10, %v587_v20, 0.0  ;;  %v1618_v33 = vadd.s32 %v3809_v4, %v1104_v18  ;;  %v597_v18 = vld [vmem:[%s3801_s12 + $0xea0] sm:$0xff] }
 0x399   : > { %vm2129_vm13 = vcmp.lt.s32.totalorder %v1617_v27, 4800  ;;  %v3151_v40 = vmul.f32 %v2638_v31, %v2638_v31 }
 0x39a   : > { %v3650_v43 = vadd.f32 %v3649_v37, %v3139_v30  ;;  %v1106_v30 = vadd.s32 3712, %v3806_v2  ;;  %v2639_v37 = vsel %vm2127_vm11, %v588_v26, 0.0  ;;  %v1619_v39 = vadd.s32 %v3809_v4, %v1105_v24  ;;  %v598_v24 = vld [vmem:[%s3801_s12 + $0xea8] sm:$0xff] }
 0x39b   : > { %vm2130_vm14 = vcmp.lt.s32.totalorder %v1618_v33, 4800  ;;  %v3152_v46 = vmul.f32 %v2639_v37, %v2639_v37 }
 0x39c   : > { %v3651_v49 = vadd.f32 %v3650_v43, %v3140_v36  ;;  %v1107_v36 = vadd.s32 3720, %v3806_v2  ;;  %v2640_v43 = vsel %vm2128_vm12, %v589_v32, 0.0  ;;  %v1620_v45 = vadd.s32 %v3809_v4, %v1106_v30  ;;  %v599_v30 = vld [vmem:[%s3801_s12 + $0xeb0] sm:$0xff] }
 0x39d   : > { %vm2131_vm15 = vcmp.lt.s32.totalorder %v1619_v39, 4800  ;;  %v3153_v52 = vmul.f32 %v2640_v43, %v2640_v43 }
 0x39e   : > { %v3652_v55 = vadd.f32 %v3651_v49, %v3141_v42  ;;  %v1108_v42 = vadd.s32 3728, %v3806_v2  ;;  %v2641_v49 = vsel %vm2129_vm13, %v590_v38, 0.0  ;;  %v1621_v51 = vadd.s32 %v3809_v4, %v1107_v36  ;;  %v600_v36 = vld [vmem:[%s3801_s12 + $0xeb8] sm:$0xff] }
 0x39f   : > { %vm2132_vm0 = vcmp.lt.s32.totalorder %v1620_v45, 4800  ;;  %v3154_v58 = vmul.f32 %v2641_v49, %v2641_v49 }
 0x3a0   : > { %v3653_v61 = vadd.f32 %v3652_v55, %v3142_v48  ;;  %v1109_v48 = vadd.s32 3736, %v3806_v2  ;;  %v2642_v55 = vsel %vm2130_vm14, %v591_v44, 0.0  ;;  %v1622_v57 = vadd.s32 %v3809_v4, %v1108_v42  ;;  %v601_v42 = vld [vmem:[%s3801_s12 + $0xec0] sm:$0xff] }
 0x3a1   : > { %vm2133_vm1 = vcmp.lt.s32.totalorder %v1621_v51, 4800  ;;  %v3155_v0 = vmul.f32 %v2642_v55, %v2642_v55 }
 0x3a2   : > { %v3654_v5 = vadd.f32 %v3653_v61, %v3143_v54  ;;  %v1110_v54 = vadd.s32 3744, %v3806_v2  ;;  %v2643_v61 = vsel %vm2131_vm15, %v592_v50, 0.0  ;;  %v1623_v63 = vadd.s32 %v3809_v4, %v1109_v48  ;;  %v602_v48 = vld [vmem:[%s3801_s12 + $0xec8] sm:$0xff] }
 0x3a3   : > { %vm2134_vm2 = vcmp.lt.s32.totalorder %v1622_v57, 4800  ;;  %v3156_v8 = vmul.f32 %v2643_v61, %v2643_v61 }
 0x3a4   : > { %v3655_v11 = vadd.f32 %v3654_v5, %v3144_v60  ;;  %v1111_v60 = vadd.s32 3752, %v3806_v2  ;;  %v2644_v5 = vsel %vm2132_vm0, %v593_v56, 0.0  ;;  %v1624_v7 = vadd.s32 %v3809_v4, %v1110_v54  ;;  %v603_v54 = vld [vmem:[%s3801_s12 + $0xed0] sm:$0xff] }
 0x3a5   : > { %vm2135_vm3 = vcmp.lt.s32.totalorder %v1623_v63, 4800  ;;  %v3157_v14 = vmul.f32 %v2644_v5, %v2644_v5 }
 0x3a6   : > { %v3656_v17 = vadd.f32 %v3655_v11, %v3145_v3  ;;  %v1112_v3 = vadd.s32 3760, %v3806_v2  ;;  %v2645_v11 = vsel %vm2133_vm1, %v594_v62, 0.0  ;;  %v1625_v13 = vadd.s32 %v3809_v4, %v1111_v60  ;;  %v604_v60 = vld [vmem:[%s3801_s12 + $0xed8] sm:$0xff] }
 0x3a7   : > { %vm2136_vm4 = vcmp.lt.s32.totalorder %v1624_v7, 4800  ;;  %v3158_v20 = vmul.f32 %v2645_v11, %v2645_v11 }
 0x3a8   : > { %v3657_v23 = vadd.f32 %v3656_v17, %v3146_v10  ;;  %v1113_v10 = vadd.s32 3768, %v3806_v2  ;;  %v2646_v17 = vsel %vm2134_vm2, %v595_v6, 0.0  ;;  %v1626_v19 = vadd.s32 %v3809_v4, %v1112_v3  ;;  %v605_v3 = vld [vmem:[%s3801_s12 + $0xee0] sm:$0xff] }
 0x3a9   : > { %vm2137_vm5 = vcmp.lt.s32.totalorder %v1625_v13, 4800  ;;  %v3159_v26 = vmul.f32 %v2646_v17, %v2646_v17 }
 0x3aa   : > { %v3658_v29 = vadd.f32 %v3657_v23, %v3147_v16  ;;  %v1114_v16 = vadd.s32 3776, %v3806_v2  ;;  %v2647_v23 = vsel %vm2135_vm3, %v596_v12, 0.0  ;;  %v1627_v25 = vadd.s32 %v3809_v4, %v1113_v10  ;;  %v606_v10 = vld [vmem:[%s3801_s12 + $0xee8] sm:$0xff] }
 0x3ab   : > { %vm2138_vm6 = vcmp.lt.s32.totalorder %v1626_v19, 4800  ;;  %v3160_v32 = vmul.f32 %v2647_v23, %v2647_v23 }
 0x3ac   : > { %v3659_v35 = vadd.f32 %v3658_v29, %v3148_v22  ;;  %v1115_v22 = vadd.s32 3784, %v3806_v2  ;;  %v2648_v29 = vsel %vm2136_vm4, %v597_v18, 0.0  ;;  %v1628_v31 = vadd.s32 %v3809_v4, %v1114_v16  ;;  %v607_v16 = vld [vmem:[%s3801_s12 + $0xef0] sm:$0xff] }
 0x3ad   : > { %vm2139_vm7 = vcmp.lt.s32.totalorder %v1627_v25, 4800  ;;  %v3161_v38 = vmul.f32 %v2648_v29, %v2648_v29 }
 0x3ae   : > { %v3660_v41 = vadd.f32 %v3659_v35, %v3149_v28  ;;  %v1116_v28 = vadd.s32 3792, %v3806_v2  ;;  %v2649_v35 = vsel %vm2137_vm5, %v598_v24, 0.0  ;;  %v1629_v37 = vadd.s32 %v3809_v4, %v1115_v22  ;;  %v608_v22 = vld [vmem:[%s3801_s12 + $0xef8] sm:$0xff] }
 0x3af   : > { %vm2140_vm8 = vcmp.lt.s32.totalorder %v1628_v31, 4800  ;;  %v3162_v44 = vmul.f32 %v2649_v35, %v2649_v35 }
 0x3b0   : > { %v3661_v47 = vadd.f32 %v3660_v41, %v3150_v34  ;;  %v1117_v34 = vadd.s32 3800, %v3806_v2  ;;  %v2650_v41 = vsel %vm2138_vm6, %v599_v30, 0.0  ;;  %v1630_v43 = vadd.s32 %v3809_v4, %v1116_v28  ;;  %v609_v28 = vld [vmem:[%s3801_s12 + $0xf00] sm:$0xff] }
 0x3b1   : > { %vm2141_vm9 = vcmp.lt.s32.totalorder %v1629_v37, 4800  ;;  %v3163_v50 = vmul.f32 %v2650_v41, %v2650_v41 }
 0x3b2   : > { %v3662_v53 = vadd.f32 %v3661_v47, %v3151_v40  ;;  %v1118_v40 = vadd.s32 3808, %v3806_v2  ;;  %v2651_v47 = vsel %vm2139_vm7, %v600_v36, 0.0  ;;  %v1631_v49 = vadd.s32 %v3809_v4, %v1117_v34  ;;  %v610_v34 = vld [vmem:[%s3801_s12 + $0xf08] sm:$0xff] }
 0x3b3   : > { %vm2142_vm10 = vcmp.lt.s32.totalorder %v1630_v43, 4800  ;;  %v3164_v56 = vmul.f32 %v2651_v47, %v2651_v47 }
 0x3b4   : > { %v3663_v59 = vadd.f32 %v3662_v53, %v3152_v46  ;;  %v1119_v46 = vadd.s32 3816, %v3806_v2  ;;  %v2652_v53 = vsel %vm2140_vm8, %v601_v42, 0.0  ;;  %v1632_v55 = vadd.s32 %v3809_v4, %v1118_v40  ;;  %v611_v40 = vld [vmem:[%s3801_s12 + $0xf10] sm:$0xff] }
 0x3b5   : > { %vm2143_vm11 = vcmp.lt.s32.totalorder %v1631_v49, 4800  ;;  %v3165_v62 = vmul.f32 %v2652_v53, %v2652_v53 }
 0x3b6   : > { %v3664_v1 = vadd.f32 %v3663_v59, %v3153_v52  ;;  %v1120_v52 = vadd.s32 3824, %v3806_v2  ;;  %v2653_v59 = vsel %vm2141_vm9, %v602_v48, 0.0  ;;  %v1633_v61 = vadd.s32 %v3809_v4, %v1119_v46  ;;  %v612_v46 = vld [vmem:[%s3801_s12 + $0xf18] sm:$0xff] }
 0x3b7   : > { %vm2144_vm12 = vcmp.lt.s32.totalorder %v1632_v55, 4800  ;;  %v3166_v6 = vmul.f32 %v2653_v59, %v2653_v59 }
 0x3b8   : > { %v3665_v9 = vadd.f32 %v3664_v1, %v3154_v58  ;;  %v1121_v58 = vadd.s32 3832, %v3806_v2  ;;  %v2654_v1 = vsel %vm2142_vm10, %v603_v54, 0.0  ;;  %v1634_v5 = vadd.s32 %v3809_v4, %v1120_v52  ;;  %v613_v52 = vld [vmem:[%s3801_s12 + $0xf20] sm:$0xff] }
 0x3b9   : > { %vm2145_vm13 = vcmp.lt.s32.totalorder %v1633_v61, 4800  ;;  %v3167_v12 = vmul.f32 %v2654_v1, %v2654_v1 }
 0x3ba   : > { %v3666_v15 = vadd.f32 %v3665_v9, %v3155_v0  ;;  %v1122_v0 = vadd.s32 3840, %v3806_v2  ;;  %v2655_v9 = vsel %vm2143_vm11, %v604_v60, 0.0  ;;  %v1635_v11 = vadd.s32 %v3809_v4, %v1121_v58  ;;  %v614_v58 = vld [vmem:[%s3801_s12 + $0xf28] sm:$0xff] }
 0x3bb   : > { %vm2146_vm14 = vcmp.lt.s32.totalorder %v1634_v5, 4800  ;;  %v3168_v18 = vmul.f32 %v2655_v9, %v2655_v9 }
 0x3bc   : > { %v3667_v21 = vadd.f32 %v3666_v15, %v3156_v8  ;;  %v1123_v8 = vadd.s32 3848, %v3806_v2  ;;  %v2656_v15 = vsel %vm2144_vm12, %v605_v3, 0.0  ;;  %v1636_v17 = vadd.s32 %v3809_v4, %v1122_v0  ;;  %v615_v0 = vld [vmem:[%s3801_s12 + $0xf30] sm:$0xff] }
 0x3bd   : > { %vm2147_vm15 = vcmp.lt.s32.totalorder %v1635_v11, 4800  ;;  %v3169_v24 = vmul.f32 %v2656_v15, %v2656_v15 }
 0x3be   : > { %v3668_v27 = vadd.f32 %v3667_v21, %v3157_v14  ;;  %v1124_v14 = vadd.s32 3856, %v3806_v2  ;;  %v2657_v21 = vsel %vm2145_vm13, %v606_v10, 0.0  ;;  %v1637_v23 = vadd.s32 %v3809_v4, %v1123_v8  ;;  %v616_v8 = vld [vmem:[%s3801_s12 + $0xf38] sm:$0xff] }
 0x3bf   : > { %vm2148_vm0 = vcmp.lt.s32.totalorder %v1636_v17, 4800  ;;  %v3170_v30 = vmul.f32 %v2657_v21, %v2657_v21 }
 0x3c0   : > { %v3669_v33 = vadd.f32 %v3668_v27, %v3158_v20  ;;  %v1125_v20 = vadd.s32 3864, %v3806_v2  ;;  %v2658_v27 = vsel %vm2146_vm14, %v607_v16, 0.0  ;;  %v1638_v29 = vadd.s32 %v3809_v4, %v1124_v14  ;;  %v617_v14 = vld [vmem:[%s3801_s12 + $0xf40] sm:$0xff] }
 0x3c1   : > { %vm2149_vm1 = vcmp.lt.s32.totalorder %v1637_v23, 4800  ;;  %v3171_v36 = vmul.f32 %v2658_v27, %v2658_v27 }
 0x3c2   : > { %v3670_v39 = vadd.f32 %v3669_v33, %v3159_v26  ;;  %v1126_v26 = vadd.s32 3872, %v3806_v2  ;;  %v2659_v33 = vsel %vm2147_vm15, %v608_v22, 0.0  ;;  %v1639_v35 = vadd.s32 %v3809_v4, %v1125_v20  ;;  %v618_v20 = vld [vmem:[%s3801_s12 + $0xf48] sm:$0xff] }
 0x3c3   : > { %vm2150_vm2 = vcmp.lt.s32.totalorder %v1638_v29, 4800  ;;  %v3172_v42 = vmul.f32 %v2659_v33, %v2659_v33 }
 0x3c4   : > { %v3671_v45 = vadd.f32 %v3670_v39, %v3160_v32  ;;  %v1127_v32 = vadd.s32 3880, %v3806_v2  ;;  %v2660_v39 = vsel %vm2148_vm0, %v609_v28, 0.0  ;;  %v1640_v41 = vadd.s32 %v3809_v4, %v1126_v26  ;;  %v619_v26 = vld [vmem:[%s3801_s12 + $0xf50] sm:$0xff] }
 0x3c5   : > { %vm2151_vm3 = vcmp.lt.s32.totalorder %v1639_v35, 4800  ;;  %v3173_v48 = vmul.f32 %v2660_v39, %v2660_v39 }
 0x3c6   : > { %v3672_v51 = vadd.f32 %v3671_v45, %v3161_v38  ;;  %v1128_v38 = vadd.s32 3888, %v3806_v2  ;;  %v2661_v45 = vsel %vm2149_vm1, %v610_v34, 0.0  ;;  %v1641_v47 = vadd.s32 %v3809_v4, %v1127_v32  ;;  %v620_v32 = vld [vmem:[%s3801_s12 + $0xf58] sm:$0xff] }
 0x3c7   : > { %vm2152_vm4 = vcmp.lt.s32.totalorder %v1640_v41, 4800  ;;  %v3174_v54 = vmul.f32 %v2661_v45, %v2661_v45 }
 0x3c8   : > { %v3673_v57 = vadd.f32 %v3672_v51, %v3162_v44  ;;  %v1129_v44 = vadd.s32 3896, %v3806_v2  ;;  %v2662_v51 = vsel %vm2150_vm2, %v611_v40, 0.0  ;;  %v1642_v53 = vadd.s32 %v3809_v4, %v1128_v38  ;;  %v621_v38 = vld [vmem:[%s3801_s12 + $0xf60] sm:$0xff] }
 0x3c9   : > { %vm2153_vm5 = vcmp.lt.s32.totalorder %v1641_v47, 4800  ;;  %v3175_v60 = vmul.f32 %v2662_v51, %v2662_v51 }
 0x3ca   : > { %v3674_v63 = vadd.f32 %v3673_v57, %v3163_v50  ;;  %v1130_v50 = vadd.s32 3904, %v3806_v2  ;;  %v2663_v57 = vsel %vm2151_vm3, %v612_v46, 0.0  ;;  %v1643_v59 = vadd.s32 %v3809_v4, %v1129_v44  ;;  %v622_v44 = vld [vmem:[%s3801_s12 + $0xf68] sm:$0xff] }
 0x3cb   : > { %vm2154_vm6 = vcmp.lt.s32.totalorder %v1642_v53, 4800  ;;  %v3176_v3 = vmul.f32 %v2663_v57, %v2663_v57 }
 0x3cc   : > { %v3675_v7 = vadd.f32 %v3674_v63, %v3164_v56  ;;  %v1131_v56 = vadd.s32 3912, %v3806_v2  ;;  %v2664_v63 = vsel %vm2152_vm4, %v613_v52, 0.0  ;;  %v1644_v1 = vadd.s32 %v3809_v4, %v1130_v50  ;;  %v623_v50 = vld [vmem:[%s3801_s12 + $0xf70] sm:$0xff] }
 0x3cd   : > { %vm2155_vm7 = vcmp.lt.s32.totalorder %v1643_v59, 4800  ;;  %v3177_v10 = vmul.f32 %v2664_v63, %v2664_v63 }
 0x3ce   : > { %v3676_v13 = vadd.f32 %v3675_v7, %v3165_v62  ;;  %v1132_v62 = vadd.s32 3920, %v3806_v2  ;;  %v2665_v7 = vsel %vm2153_vm5, %v614_v58, 0.0  ;;  %v1645_v9 = vadd.s32 %v3809_v4, %v1131_v56  ;;  %v624_v56 = vld [vmem:[%s3801_s12 + $0xf78] sm:$0xff] }
 0x3cf   : > { %vm2156_vm8 = vcmp.lt.s32.totalorder %v1644_v1, 4800  ;;  %v3178_v16 = vmul.f32 %v2665_v7, %v2665_v7 }
 0x3d0   : > { %v3677_v19 = vadd.f32 %v3676_v13, %v3166_v6  ;;  %v1133_v6 = vadd.s32 3928, %v3806_v2  ;;  %v2666_v13 = vsel %vm2154_vm6, %v615_v0, 0.0  ;;  %v1646_v15 = vadd.s32 %v3809_v4, %v1132_v62  ;;  %v625_v62 = vld [vmem:[%s3801_s12 + $0xf80] sm:$0xff] }
 0x3d1   : > { %vm2157_vm9 = vcmp.lt.s32.totalorder %v1645_v9, 4800  ;;  %v3179_v22 = vmul.f32 %v2666_v13, %v2666_v13 }
 0x3d2   : > { %v3678_v25 = vadd.f32 %v3677_v19, %v3167_v12  ;;  %v1134_v12 = vadd.s32 3936, %v3806_v2  ;;  %v2667_v19 = vsel %vm2155_vm7, %v616_v8, 0.0  ;;  %v1647_v21 = vadd.s32 %v3809_v4, %v1133_v6  ;;  %v626_v6 = vld [vmem:[%s3801_s12 + $0xf88] sm:$0xff] }
 0x3d3   : > { %vm2158_vm10 = vcmp.lt.s32.totalorder %v1646_v15, 4800  ;;  %v3180_v28 = vmul.f32 %v2667_v19, %v2667_v19 }
 0x3d4   : > { %v3679_v31 = vadd.f32 %v3678_v25, %v3168_v18  ;;  %v1135_v18 = vadd.s32 3944, %v3806_v2  ;;  %v2668_v25 = vsel %vm2156_vm8, %v617_v14, 0.0  ;;  %v1648_v27 = vadd.s32 %v3809_v4, %v1134_v12  ;;  %v627_v12 = vld [vmem:[%s3801_s12 + $0xf90] sm:$0xff] }
 0x3d5   : > { %vm2159_vm11 = vcmp.lt.s32.totalorder %v1647_v21, 4800  ;;  %v3181_v34 = vmul.f32 %v2668_v25, %v2668_v25 }
 0x3d6   : > { %v3680_v37 = vadd.f32 %v3679_v31, %v3169_v24  ;;  %v1136_v24 = vadd.s32 3952, %v3806_v2  ;;  %v2669_v31 = vsel %vm2157_vm9, %v618_v20, 0.0  ;;  %v1649_v33 = vadd.s32 %v3809_v4, %v1135_v18  ;;  %v628_v18 = vld [vmem:[%s3801_s12 + $0xf98] sm:$0xff] }
 0x3d7   : > { %vm2160_vm12 = vcmp.lt.s32.totalorder %v1648_v27, 4800  ;;  %v3182_v40 = vmul.f32 %v2669_v31, %v2669_v31 }
 0x3d8   : > { %v3681_v43 = vadd.f32 %v3680_v37, %v3170_v30  ;;  %v1137_v30 = vadd.s32 3960, %v3806_v2  ;;  %v2670_v37 = vsel %vm2158_vm10, %v619_v26, 0.0  ;;  %v1650_v39 = vadd.s32 %v3809_v4, %v1136_v24  ;;  %v629_v24 = vld [vmem:[%s3801_s12 + $0xfa0] sm:$0xff] }
 0x3d9   : > { %vm2161_vm13 = vcmp.lt.s32.totalorder %v1649_v33, 4800  ;;  %v3183_v46 = vmul.f32 %v2670_v37, %v2670_v37 }
 0x3da   : > { %v3682_v49 = vadd.f32 %v3681_v43, %v3171_v36  ;;  %v1138_v36 = vadd.s32 3968, %v3806_v2  ;;  %v2671_v43 = vsel %vm2159_vm11, %v620_v32, 0.0  ;;  %v1651_v45 = vadd.s32 %v3809_v4, %v1137_v30  ;;  %v630_v30 = vld [vmem:[%s3801_s12 + $0xfa8] sm:$0xff] }
 0x3db   : > { %vm2162_vm14 = vcmp.lt.s32.totalorder %v1650_v39, 4800  ;;  %v3184_v52 = vmul.f32 %v2671_v43, %v2671_v43 }
 0x3dc   : > { %v3683_v55 = vadd.f32 %v3682_v49, %v3172_v42  ;;  %v1139_v42 = vadd.s32 3976, %v3806_v2  ;;  %v2672_v49 = vsel %vm2160_vm12, %v621_v38, 0.0  ;;  %v1652_v51 = vadd.s32 %v3809_v4, %v1138_v36  ;;  %v631_v36 = vld [vmem:[%s3801_s12 + $0xfb0] sm:$0xff] }
 0x3dd   : > { %vm2163_vm15 = vcmp.lt.s32.totalorder %v1651_v45, 4800  ;;  %v3185_v58 = vmul.f32 %v2672_v49, %v2672_v49 }
 0x3de   : > { %v3684_v61 = vadd.f32 %v3683_v55, %v3173_v48  ;;  %v1140_v48 = vadd.s32 3984, %v3806_v2  ;;  %v2673_v55 = vsel %vm2161_vm13, %v622_v44, 0.0  ;;  %v1653_v57 = vadd.s32 %v3809_v4, %v1139_v42  ;;  %v632_v42 = vld [vmem:[%s3801_s12 + $0xfb8] sm:$0xff] }
 0x3df   : > { %vm2164_vm0 = vcmp.lt.s32.totalorder %v1652_v51, 4800  ;;  %v3186_v0 = vmul.f32 %v2673_v55, %v2673_v55 }
 0x3e0   : > { %v3685_v5 = vadd.f32 %v3684_v61, %v3174_v54  ;;  %v1141_v54 = vadd.s32 3992, %v3806_v2  ;;  %v2674_v61 = vsel %vm2162_vm14, %v623_v50, 0.0  ;;  %v1654_v63 = vadd.s32 %v3809_v4, %v1140_v48  ;;  %v633_v48 = vld [vmem:[%s3801_s12 + $0xfc0] sm:$0xff] }
 0x3e1   : > { %vm2165_vm1 = vcmp.lt.s32.totalorder %v1653_v57, 4800  ;;  %v3187_v8 = vmul.f32 %v2674_v61, %v2674_v61 }
 0x3e2   : > { %v3686_v11 = vadd.f32 %v3685_v5, %v3175_v60  ;;  %v1142_v60 = vadd.s32 4000, %v3806_v2  ;;  %v2675_v5 = vsel %vm2163_vm15, %v624_v56, 0.0  ;;  %v1655_v7 = vadd.s32 %v3809_v4, %v1141_v54  ;;  %v634_v54 = vld [vmem:[%s3801_s12 + $0xfc8] sm:$0xff] }
 0x3e3   : > { %vm2166_vm2 = vcmp.lt.s32.totalorder %v1654_v63, 4800  ;;  %v3188_v14 = vmul.f32 %v2675_v5, %v2675_v5 }
 0x3e4   : > { %v3687_v17 = vadd.f32 %v3686_v11, %v3176_v3  ;;  %v1143_v3 = vadd.s32 4008, %v3806_v2  ;;  %v2676_v11 = vsel %vm2164_vm0, %v625_v62, 0.0  ;;  %v1656_v13 = vadd.s32 %v3809_v4, %v1142_v60  ;;  %v635_v60 = vld [vmem:[%s3801_s12 + $0xfd0] sm:$0xff] }
 0x3e5   : > { %vm2167_vm3 = vcmp.lt.s32.totalorder %v1655_v7, 4800  ;;  %v3189_v20 = vmul.f32 %v2676_v11, %v2676_v11 }
 0x3e6   : > { %v3688_v23 = vadd.f32 %v3687_v17, %v3177_v10  ;;  %v1144_v10 = vadd.s32 4016, %v3806_v2  ;;  %v2677_v17 = vsel %vm2165_vm1, %v626_v6, 0.0  ;;  %v1657_v19 = vadd.s32 %v3809_v4, %v1143_v3  ;;  %v636_v3 = vld [vmem:[%s3801_s12 + $0xfd8] sm:$0xff] }
 0x3e7   : > { %vm2168_vm4 = vcmp.lt.s32.totalorder %v1656_v13, 4800  ;;  %v3190_v26 = vmul.f32 %v2677_v17, %v2677_v17 }
 0x3e8   : > { %v3689_v29 = vadd.f32 %v3688_v23, %v3178_v16  ;;  %v1145_v16 = vadd.s32 4024, %v3806_v2  ;;  %v2678_v23 = vsel %vm2166_vm2, %v627_v12, 0.0  ;;  %v1658_v25 = vadd.s32 %v3809_v4, %v1144_v10 }
 0x3e9   : > { %vm2169_vm5 = vcmp.lt.s32.totalorder %v1657_v19, 4800  ;;  %v3191_v32 = vmul.f32 %v2678_v23, %v2678_v23 }
 0x3ea   : > { %v3690_v35 = vadd.f32 %v3689_v29, %v3179_v22  ;;  %v1146_v22 = vadd.s32 4032, %v3806_v2  ;;  %v2679_v29 = vsel %vm2167_vm3, %v628_v18, 0.0  ;;  %v1659_v31 = vadd.s32 %v3809_v4, %v1145_v16  ;;  %v639_v18 = vld [vmem:[%s3801_s12 + $0xff0] sm:$0xff] }
 0x3eb   : > { %vm2170_vm6 = vcmp.lt.s32.totalorder %v1658_v25, 4800  ;;  %v3192_v38 = vmul.f32 %v2679_v29, %v2679_v29 }
 0x3ec   : > { %v3691_v41 = vadd.f32 %v3690_v35, %v3180_v28  ;;  %v1147_v28 = vadd.s32 4040, %v3806_v2  ;;  %v2680_v35 = vsel %vm2168_vm4, %v629_v24, 0.0  ;;  %v1660_v37 = vadd.s32 %v3809_v4, %v1146_v22  ;;  %v640_v22 = vld [vmem:[%s3801_s12 + $0xff8] sm:$0xff] }
 0x3ed   : > { %vm2171_vm7 = vcmp.lt.s32.totalorder %v1659_v31, 4800  ;;  %v3193_v44 = vmul.f32 %v2680_v35, %v2680_v35 }
 0x3ee   : > { %v3692_v47 = vadd.f32 %v3691_v41, %v3181_v34  ;;  %v1148_v34 = vadd.s32 4048, %v3806_v2  ;;  %v2681_v41 = vsel %vm2169_vm5, %v630_v30, 0.0  ;;  %v1661_v43 = vadd.s32 %v3809_v4, %v1147_v28 }
 0x3ef   : > { %vm2172_vm8 = vcmp.lt.s32.totalorder %v1660_v37, 4800  ;;  %v3194_v50 = vmul.f32 %v2681_v41, %v2681_v41 }
 0x3f0   : > { %v3693_v53 = vadd.f32 %v3692_v47, %v3182_v40  ;;  %v1149_v40 = vadd.s32 4056, %v3806_v2  ;;  %v2682_v47 = vsel %vm2170_vm6, %v631_v36, 0.0  ;;  %v1662_v49 = vadd.s32 %v3809_v4, %v1148_v34 }
 0x3f1   : > { %vm2173_vm9 = vcmp.lt.s32.totalorder %v1661_v43, 4800  ;;  %v3195_v56 = vmul.f32 %v2682_v47, %v2682_v47 }
 0x3f2   : > { %v3694_v59 = vadd.f32 %v3693_v53, %v3183_v46  ;;  %v1150_v46 = vadd.s32 4064, %v3806_v2  ;;  %v2683_v53 = vsel %vm2171_vm7, %v632_v42, 0.0  ;;  %v1663_v55 = vadd.s32 %v3809_v4, %v1149_v40 }
 0x3f3   : > { %vm2174_vm10 = vcmp.lt.s32.totalorder %v1662_v49, 4800  ;;  %v3196_v62 = vmul.f32 %v2683_v53, %v2683_v53 }
 0x3f4   : > { %v3695_v1 = vadd.f32 %v3694_v59, %v3184_v52  ;;  %v1151_v52 = vadd.s32 4072, %v3806_v2  ;;  %v2684_v59 = vsel %vm2172_vm8, %v633_v48, 0.0  ;;  %v1664_v61 = vadd.s32 %v3809_v4, %v1150_v46 }
 0x3f5   : > { %vm2175_vm11 = vcmp.lt.s32.totalorder %v1663_v55, 4800  ;;  %v3197_v6 = vmul.f32 %v2684_v59, %v2684_v59 }
 0x3f6   : > { %v3696_v9 = vadd.f32 %v3695_v1, %v3185_v58  ;;  %v1152_v58 = vadd.s32 4080, %v3806_v2  ;;  %v2685_v1 = vsel %vm2173_vm9, %v634_v54, 0.0  ;;  %v1665_v5 = vadd.s32 %v3809_v4, %v1151_v52 }
 0x3f7   : > { %vm2176_vm12 = vcmp.lt.s32.totalorder %v1664_v61, 4800  ;;  %v3198_v11 = vmul.f32 %v2685_v1, %v2685_v1  ;;  %v2687_v13 = vsel %vm2175_vm11, %v636_v3, 0.0 }
 0x3f8   : > { %v3697_v15 = vadd.f32 %v3696_v9, %v3186_v0  ;;  %v1153_v0 = vadd.s32 4088, %v3806_v2  ;;  %v637_v9 = vld [vmem:[%s3801_s12 + $0xfe0] sm:$0xff]  ;;  %v1666_v10 = vadd.s32 %v3809_v4, %v1152_v58  ;;  %vm2177_vm13 = vcmp.lt.s32.totalorder %v1665_v5, 4800 }
 0x3f9   : > { %v2688_v17 = vsel %vm2176_vm12, %v637_v9, 0.0  ;;  %v3200_v19 = vmul.f32 %v2687_v13, %v2687_v13 }
 0x3fa   : > { %v3698_v21 = vadd.f32 %v3697_v15, %v3187_v8  ;;  %v2686_v8 = vsel %vm2174_vm10, %v635_v60, 0.0  ;;  %v1667_v2 = vadd.s32 %v3809_v4, %v1153_v0  ;;  %vm2178_vm14 = vcmp.lt.s32.totalorder %v1666_v10, 4800 }
 0x3fb   : > { %v3199_v15 = vmul.f32 %v2686_v8, %v2686_v8  ;;  %v3201_v23 = vmul.f32 %v2688_v17, %v2688_v17  ;;  %v2690_v25 = vsel %vm2178_vm14, %v639_v18, 0.0 }
 0x3fc   : > { %v3699_v27 = vadd.f32 %v3698_v21, %v3188_v14  ;;  %v638_v14 = vld [vmem:[%s3801_s12 + $0xfe8] sm:$0xff]  ;;  %vm2179_vm15 = vcmp.lt.s32.totalorder %v1667_v2, 4800  ;;  %v3203_v29 = vmul.f32 %v2690_v25, %v2690_v25 }
 0x3fd   : > { %v2689_v21 = vsel %vm2177_vm13, %v638_v14, 0.0  ;;  %v2691_v28 = vsel %vm2179_vm15, %v640_v22, 0.0 }
 0x3fe   : > { %v3700_v33 = vadd.f32 %v3699_v27, %v3189_v20  ;;  %v3204_v4 = vmul.f32 %v2691_v28, %v2691_v28 }
 0x400   : > { %v3701_v39 = vadd.f32 %v3700_v33, %v3190_v26  ;;  %v3202_v26 = vmul.f32 %v2689_v21, %v2689_v21 }
 0x402   : > { %v3702_v45 = vadd.f32 %v3701_v39, %v3191_v32  ;;  %v2692_v39 = vld [vmem:[%s5356_s1] sm:$0x1] }
 0x404   : > { %v3703_v51 = vadd.f32 %v3702_v45, %v3192_v38 }
 0x406   : > { %v3704_v57 = vadd.f32 %v3703_v51, %v3193_v44 }
 0x408   : > { %v3705_v63 = vadd.f32 %v3704_v57, %v3194_v50 }
 0x40a   : > { %v3706_v7 = vadd.f32 %v3705_v63, %v3195_v56 }
 0x40c   : > { %v3707_v12 = vadd.f32 %v3706_v7, %v3196_v62 }
 0x40e   : > { %v3708_v16 = vadd.f32 %v3707_v12, %v3197_v6 }
 0x410   : > { %v3709_v20 = vadd.f32 %v3708_v16, %v3198_v11 }
 0x412   : > { %v3710_v24 = vadd.f32 %v3709_v20, %v3199_v15 }
 0x414   : > { %v3711_v27 = vadd.f32 %v3710_v24, %v3200_v19 }
 0x416   : > { %v3712_v30 = vadd.f32 %v3711_v27, %v3201_v23 }
 0x418   : > { %v3713_v31 = vadd.f32 %v3712_v30, %v3202_v26 }
 0x41a   : > { %v3714_v32 = vadd.f32 %v3713_v31, %v3203_v29 }
 0x41c   : > { %v3715_v33 = vadd.f32 %v3714_v32, %v3204_v4 }
 0x41e   : > { %v3716_v34 = vrot.slane %v3715_v33, 4 }
 0x420   : > { %v3717_v35 = vadd.f32 %v3716_v34, %v3715_v33 }
 0x422   : > { %v3718_v36 = vrot.slane %v3717_v35, 2 }
 0x424   : > { %v3719_v37 = vadd.f32 %v3718_v36, %v3717_v35 }
 0x426   : > { %v3720_v38 = vrot.slane %v3719_v37, 1 }
 0x428   : > { %v3721_v40 = vadd.f32 %v3720_v38, %v3719_v37 }
 0x42a   : > { %v3722_v41 = vadd.f32 %v3721_v40, %v2692_v39 }
 0x42c   : > { %3723 = vst [vmem:[%s5356_s1] sm:$0x1] %v3722_v41 }
 0x42d PF: > { %s11_s6 = sadd.s32 1, %s3777_s6  }
 0x42e   : > { %p8_p5 = scmp.ge.s32.totalorder %s11_s6, 4  }
 0x430   :  { %10 = sbr.rel (!%p8_p5) target bundleno = 1 (0x1), region = 54 }

</bundles_post_ra>
